<compile_context>
chip_gen: v7x
topology: tpu7x:2x2x1
jax: 0.10.0
libtpu: 0.0.40
codegen_flags: <defaults>
</compile_context>

<pallas_src>
import jax
import jax.numpy as jnp
from jax.experimental import pallas as pl
from jax.experimental.pallas import tpu as pltpu

nLatentDims = 56
H1 = 1024
H2 = 1024
H3 = 512
OUT_PAD = 128          # final Linear(512 -> 1) padded to 128 lanes for a lane-dense store
EPS = 1e-5


def _leaky_relu(x, slope=0.2):
    return jnp.where(x > 0, x, slope * x)


def _fused_batchnorm(x, gamma, beta):
    # training-mode BatchNorm1d, single pass over x:
    #   mean = E[x], var = max(E[x^2] - E[x]^2, 0)  (biased, clamped against f32 cancellation)
    #   y    = x * (gamma * rsqrt(var+eps)) + (beta - mean * scale)
    inv_n = 1.0 / x.shape[0]
    mean = jnp.sum(x, axis=0, keepdims=True) * inv_n
    meansq = jnp.sum(x * x, axis=0, keepdims=True) * inv_n
    var = jnp.maximum(meansq - mean * mean, 0.0)
    scale = gamma * jax.lax.rsqrt(var + EPS)
    shift = beta - mean * scale
    return x * scale + shift


def discriminator_kernel(
    x_ref,
    w1_ref, b1_ref,
    w2_ref, b2_ref, g2_ref, be2_ref,
    w3_ref, b3_ref, g3_ref, be3_ref,
    w4_ref, b4_ref,
    o_ref,
):
    x = x_ref[...].astype(jnp.bfloat16)

    # step1: Linear(56 -> 1024), step2: LeakyReLU(0.2)
    h = jnp.dot(x, w1_ref[...], preferred_element_type=jnp.float32) + b1_ref[...]
    h = _leaky_relu(h)

    # step3: Linear(1024 -> 1024), step4: BatchNorm1d(1024), step5: LeakyReLU(0.2)
    h = jnp.dot(h.astype(jnp.bfloat16), w2_ref[...],
                preferred_element_type=jnp.float32) + b2_ref[...]
    h = _leaky_relu(_fused_batchnorm(h, g2_ref[...], be2_ref[...]))

    # step6: Linear(1024 -> 512), step7: BatchNorm1d(512), step8: LeakyReLU(0.2)
    h = jnp.dot(h.astype(jnp.bfloat16), w3_ref[...],
                preferred_element_type=jnp.float32) + b3_ref[...]
    h = _leaky_relu(_fused_batchnorm(h, g3_ref[...], be3_ref[...]))

    # step9: Linear(512 -> 1) zero-padded to 128 lanes, step10: Sigmoid (EUP exp + approx recip)
    logits = jnp.dot(h.astype(jnp.bfloat16), w4_ref[...],
                     preferred_element_type=jnp.float32) + b4_ref[...]
    o_ref[...] = pl.reciprocal(1.0 + jnp.exp(-logits), approx=True)


def discriminator_forward(x, params):
    B = x.shape[0]
    args = (
        x,
        params["w1"], params["b1"],
        params["w2"], params["b2"], params["g2"], params["be2"],
        params["w3"], params["b3"], params["g3"], params["be3"],
        params["w4"], params["b4"],
    )

    flops = 2 * B * (nLatentDims * H1 + H1 * H2 + H2 * H3 + H3 * OUT_PAD)
    bytes_in = sum(int(a.size) * a.dtype.itemsize for a in args)
    bytes_accessed = bytes_in + B * OUT_PAD * 4

    # Tiny model (~3.3 MB of bf16 weights) + small batch: everything fits comfortably in VMEM,
    # so run as a single grid-less pallas_call with whole-array blocks.
    out = pl.pallas_call(
        discriminator_kernel,
        out_shape=jax.ShapeDtypeStruct((B, OUT_PAD), jnp.float32),
        in_specs=[pl.BlockSpec(memory_space=pltpu.MemorySpace.VMEM)] * len(args),
        out_specs=pl.BlockSpec(memory_space=pltpu.MemorySpace.VMEM),
        compiler_params=pltpu.CompilerParams(vmem_limit_bytes=64 << 20),
        cost_estimate=pl.CostEstimate(
            flops=flops,
            transcendentals=B * OUT_PAD,
            bytes_accessed=bytes_accessed,
        ),
    )(*args)
    return out[:, :1]


def init_params(key):
    """Deterministic synthetic init; shapes match the PyTorch module (weights transposed, bf16)."""
    ks = jax.random.split(key, 8)

    def linear(kw, kb, fan_in, fan_out):
        bound = 1.0 / jnp.sqrt(fan_in)
        w = jax.random.uniform(kw, (fan_in, fan_out), jnp.float32, -bound, bound)
        b = jax.random.uniform(kb, (1, fan_out), jnp.float32, -bound, bound)
        return w.astype(jnp.bfloat16), b

    w1, b1 = linear(ks[0], ks[1], nLatentDims, H1)
    w2, b2 = linear(ks[2], ks[3], H1, H2)
    w3, b3 = linear(ks[4], ks[5], H2, H3)
    w4_raw, b4_raw = linear(ks[6], ks[7], H3, 1)

    # Zero-pad the final (512 -> 1) layer to 128 output lanes (column 0 is the real one).
    w4 = jnp.zeros((H3, OUT_PAD), jnp.bfloat16).at[:, :1].set(w4_raw)
    b4 = jnp.zeros((1, OUT_PAD), jnp.float32).at[:, :1].set(b4_raw)

    return dict(
        w1=w1, b1=b1,
        w2=w2, b2=b2, g2=jnp.ones((1, H2), jnp.float32), be2=jnp.zeros((1, H2), jnp.float32),
        w3=w3, b3=b3, g3=jnp.ones((1, H3), jnp.float32), be3=jnp.zeros((1, H3), jnp.float32),
        w4=w4, b4=b4,
    )


def reference_forward(x, p):
    """Pure-JAX reference using the same bf16 weights / f32 accumulation as the kernel."""
    def dot(a, w):
        return jnp.dot(a.astype(jnp.bfloat16), w, preferred_element_type=jnp.float32)

    h = _leaky_relu(dot(x, p["w1"]) + p["b1"])
    h = _leaky_relu(_fused_batchnorm(dot(h, p["w2"]) + p["b2"], p["g2"], p["be2"]))
    h = _leaky_relu(_fused_batchnorm(dot(h, p["w3"]) + p["b3"], p["g3"], p["be3"]))
    logits = dot(h, p["w4"][:, :1]) + p["b4"][:, :1]
    return jax.nn.sigmoid(logits)


if __name__ == "__main__":
    key = jax.random.PRNGKey(0)
    k_x, k_p = jax.random.split(key)

    B = 8
    x = jax.random.normal(k_x, (B, nLatentDims), jnp.float32)
    params = init_params(k_p)

    out = discriminator_forward(x, params)
    out = jax.block_until_ready(out)

    ref = reference_forward(x, params)
    assert out.shape == (B, 1)
    assert jnp.allclose(out, ref, atol=5e-3, rtol=5e-3), "mismatch vs pure-JAX reference"

    print("KERNEL_OK")
</pallas_src>

<mosaic_0001>
module attributes {stable_mosaic.version = 11 : i64} {
  func.func @discriminator_kernel(%arg0: memref<8x56xf32, #tpu.memory_space<vmem>>, %arg1: memref<56x1024xbf16, #tpu.memory_space<vmem>>, %arg2: memref<1x1024xf32, #tpu.memory_space<vmem>>, %arg3: memref<1024x1024xbf16, #tpu.memory_space<vmem>>, %arg4: memref<1x1024xf32, #tpu.memory_space<vmem>>, %arg5: memref<1x1024xf32, #tpu.memory_space<vmem>>, %arg6: memref<1x1024xf32, #tpu.memory_space<vmem>>, %arg7: memref<1024x512xbf16, #tpu.memory_space<vmem>>, %arg8: memref<1x512xf32, #tpu.memory_space<vmem>>, %arg9: memref<1x512xf32, #tpu.memory_space<vmem>>, %arg10: memref<1x512xf32, #tpu.memory_space<vmem>>, %arg11: memref<512x128xbf16, #tpu.memory_space<vmem>>, %arg12: memref<1x128xf32, #tpu.memory_space<vmem>>, %arg13: memref<8x128xf32, #tpu.memory_space<vmem>>) attributes {dimension_semantics = [], scalar_prefetch = 0 : i64, scratch_operands = 0 : i64, tpu.core_type = #tpu.core_type<tc>} {
    %c0 = arith.constant 0 : index
    %c0_0 = arith.constant 0 : index
    %0 = vector.load %arg0[%c0, %c0_0] : memref<8x56xf32, #tpu.memory_space<vmem>>, vector<8x56xf32>
    %1 = arith.truncf %0 : vector<8x56xf32> to vector<8x56xbf16>
    %c0_1 = arith.constant 0 : index
    %c0_2 = arith.constant 0 : index
    %2 = vector.load %arg1[%c0_1, %c0_2] : memref<56x1024xbf16, #tpu.memory_space<vmem>>, vector<56x1024xbf16>
    %cst = arith.constant dense<0.000000e+00> : vector<8x1024xf32>
    %3 = tpu.matmul %1, %2, %cst {dimension_numbers = #tpu.dot_dimension_numbers<[1], [0], [0], [1], [0, 0, 1, 1], [], []>} : vector<8x56xbf16>, vector<56x1024xbf16>, vector<8x1024xf32> -> vector<8x1024xf32>
    %c0_3 = arith.constant 0 : index
    %c0_4 = arith.constant 0 : index
    %4 = vector.load %arg2[%c0_3, %c0_4] : memref<1x1024xf32, #tpu.memory_space<vmem>>, vector<1x1024xf32>
    %5 = vector.broadcast %4 : vector<1x1024xf32> to vector<8x1024xf32>
    %6 = arith.addf %3, %5 : vector<8x1024xf32>
    %cst_5 = arith.constant 0.000000e+00 : f32
    %7 = vector.broadcast %cst_5 : f32 to vector<8x1024xf32>
    %8 = arith.cmpf ogt, %6, %7 : vector<8x1024xf32>
    %cst_6 = arith.constant 2.000000e-01 : f32
    %9 = vector.broadcast %cst_6 : f32 to vector<8x1024xf32>
    %10 = arith.mulf %9, %6 : vector<8x1024xf32>
    %11 = arith.select %8, %6, %10 : vector<8x1024xi1>, vector<8x1024xf32>
    %12 = arith.truncf %11 : vector<8x1024xf32> to vector<8x1024xbf16>
    %c0_7 = arith.constant 0 : index
    %c0_8 = arith.constant 0 : index
    %13 = vector.load %arg3[%c0_7, %c0_8] : memref<1024x1024xbf16, #tpu.memory_space<vmem>>, vector<1024x1024xbf16>
    %cst_9 = arith.constant dense<0.000000e+00> : vector<8x1024xf32>
    %14 = tpu.matmul %12, %13, %cst_9 {dimension_numbers = #tpu.dot_dimension_numbers<[1], [0], [0], [1], [0, 0, 1, 1], [], []>} : vector<8x1024xbf16>, vector<1024x1024xbf16>, vector<8x1024xf32> -> vector<8x1024xf32>
    %c0_10 = arith.constant 0 : index
    %c0_11 = arith.constant 0 : index
    %15 = vector.load %arg4[%c0_10, %c0_11] : memref<1x1024xf32, #tpu.memory_space<vmem>>, vector<1x1024xf32>
    %16 = vector.broadcast %15 : vector<1x1024xf32> to vector<8x1024xf32>
    %17 = arith.addf %14, %16 : vector<8x1024xf32>
    %c0_12 = arith.constant 0 : index
    %c0_13 = arith.constant 0 : index
    %18 = vector.load %arg5[%c0_12, %c0_13] : memref<1x1024xf32, #tpu.memory_space<vmem>>, vector<1x1024xf32>
    %c0_14 = arith.constant 0 : index
    %c0_15 = arith.constant 0 : index
    %19 = vector.load %arg6[%c0_14, %c0_15] : memref<1x1024xf32, #tpu.memory_space<vmem>>, vector<1x1024xf32>
    %cst_16 = arith.constant dense<0.000000e+00> : vector<1024xf32>
    %20 = vector.multi_reduction <add>, %17, %cst_16 [0] : vector<8x1024xf32> to vector<1024xf32>
    %21 = vector.shape_cast %20 : vector<1024xf32> to vector<1x1024xf32>
    %cst_17 = arith.constant 1.250000e-01 : f32
    %22 = vector.broadcast %cst_17 : f32 to vector<1x1024xf32>
    %23 = arith.mulf %21, %22 : vector<1x1024xf32>
    %24 = arith.mulf %17, %17 : vector<8x1024xf32>
    %cst_18 = arith.constant dense<0.000000e+00> : vector<1024xf32>
    %25 = vector.multi_reduction <add>, %24, %cst_18 [0] : vector<8x1024xf32> to vector<1024xf32>
    %26 = vector.shape_cast %25 : vector<1024xf32> to vector<1x1024xf32>
    %cst_19 = arith.constant 1.250000e-01 : f32
    %27 = vector.broadcast %cst_19 : f32 to vector<1x1024xf32>
    %28 = arith.mulf %26, %27 : vector<1x1024xf32>
    %29 = arith.mulf %23, %23 : vector<1x1024xf32>
    %30 = arith.subf %28, %29 : vector<1x1024xf32>
    %cst_20 = arith.constant 0.000000e+00 : f32
    %31 = vector.broadcast %cst_20 : f32 to vector<1x1024xf32>
    %32 = arith.maximumf %30, %31 : vector<1x1024xf32>
    %cst_21 = arith.constant 9.99999974E-6 : f32
    %33 = vector.broadcast %cst_21 : f32 to vector<1x1024xf32>
    %34 = arith.addf %32, %33 : vector<1x1024xf32>
    %35 = math.rsqrt %34 : vector<1x1024xf32>
    %36 = arith.mulf %18, %35 : vector<1x1024xf32>
    %37 = arith.mulf %23, %36 : vector<1x1024xf32>
    %38 = arith.subf %19, %37 : vector<1x1024xf32>
    %39 = vector.broadcast %36 : vector<1x1024xf32> to vector<8x1024xf32>
    %40 = arith.mulf %17, %39 : vector<8x1024xf32>
    %41 = vector.broadcast %38 : vector<1x1024xf32> to vector<8x1024xf32>
    %42 = arith.addf %40, %41 : vector<8x1024xf32>
    %cst_22 = arith.constant 0.000000e+00 : f32
    %43 = vector.broadcast %cst_22 : f32 to vector<8x1024xf32>
    %44 = arith.cmpf ogt, %42, %43 : vector<8x1024xf32>
    %cst_23 = arith.constant 2.000000e-01 : f32
    %45 = vector.broadcast %cst_23 : f32 to vector<8x1024xf32>
    %46 = arith.mulf %45, %42 : vector<8x1024xf32>
    %47 = arith.select %44, %42, %46 : vector<8x1024xi1>, vector<8x1024xf32>
    %48 = arith.truncf %47 : vector<8x1024xf32> to vector<8x1024xbf16>
    %c0_24 = arith.constant 0 : index
    %c0_25 = arith.constant 0 : index
    %49 = vector.load %arg7[%c0_24, %c0_25] : memref<1024x512xbf16, #tpu.memory_space<vmem>>, vector<1024x512xbf16>
    %cst_26 = arith.constant dense<0.000000e+00> : vector<8x512xf32>
    %50 = tpu.matmul %48, %49, %cst_26 {dimension_numbers = #tpu.dot_dimension_numbers<[1], [0], [0], [1], [0, 0, 1, 1], [], []>} : vector<8x1024xbf16>, vector<1024x512xbf16>, vector<8x512xf32> -> vector<8x512xf32>
    %c0_27 = arith.constant 0 : index
    %c0_28 = arith.constant 0 : index
    %51 = vector.load %arg8[%c0_27, %c0_28] : memref<1x512xf32, #tpu.memory_space<vmem>>, vector<1x512xf32>
    %52 = vector.broadcast %51 : vector<1x512xf32> to vector<8x512xf32>
    %53 = arith.addf %50, %52 : vector<8x512xf32>
    %c0_29 = arith.constant 0 : index
    %c0_30 = arith.constant 0 : index
    %54 = vector.load %arg9[%c0_29, %c0_30] : memref<1x512xf32, #tpu.memory_space<vmem>>, vector<1x512xf32>
    %c0_31 = arith.constant 0 : index
    %c0_32 = arith.constant 0 : index
    %55 = vector.load %arg10[%c0_31, %c0_32] : memref<1x512xf32, #tpu.memory_space<vmem>>, vector<1x512xf32>
    %cst_33 = arith.constant dense<0.000000e+00> : vector<512xf32>
    %56 = vector.multi_reduction <add>, %53, %cst_33 [0] : vector<8x512xf32> to vector<512xf32>
    %57 = vector.shape_cast %56 : vector<512xf32> to vector<1x512xf32>
    %cst_34 = arith.constant 1.250000e-01 : f32
    %58 = vector.broadcast %cst_34 : f32 to vector<1x512xf32>
    %59 = arith.mulf %57, %58 : vector<1x512xf32>
    %60 = arith.mulf %53, %53 : vector<8x512xf32>
    %cst_35 = arith.constant dense<0.000000e+00> : vector<512xf32>
    %61 = vector.multi_reduction <add>, %60, %cst_35 [0] : vector<8x512xf32> to vector<512xf32>
    %62 = vector.shape_cast %61 : vector<512xf32> to vector<1x512xf32>
    %cst_36 = arith.constant 1.250000e-01 : f32
    %63 = vector.broadcast %cst_36 : f32 to vector<1x512xf32>
    %64 = arith.mulf %62, %63 : vector<1x512xf32>
    %65 = arith.mulf %59, %59 : vector<1x512xf32>
    %66 = arith.subf %64, %65 : vector<1x512xf32>
    %cst_37 = arith.constant 0.000000e+00 : f32
    %67 = vector.broadcast %cst_37 : f32 to vector<1x512xf32>
    %68 = arith.maximumf %66, %67 : vector<1x512xf32>
    %cst_38 = arith.constant 9.99999974E-6 : f32
    %69 = vector.broadcast %cst_38 : f32 to vector<1x512xf32>
    %70 = arith.addf %68, %69 : vector<1x512xf32>
    %71 = math.rsqrt %70 : vector<1x512xf32>
    %72 = arith.mulf %54, %71 : vector<1x512xf32>
    %73 = arith.mulf %59, %72 : vector<1x512xf32>
    %74 = arith.subf %55, %73 : vector<1x512xf32>
    %75 = vector.broadcast %72 : vector<1x512xf32> to vector<8x512xf32>
    %76 = arith.mulf %53, %75 : vector<8x512xf32>
    %77 = vector.broadcast %74 : vector<1x512xf32> to vector<8x512xf32>
    %78 = arith.addf %76, %77 : vector<8x512xf32>
    %cst_39 = arith.constant 0.000000e+00 : f32
    %79 = vector.broadcast %cst_39 : f32 to vector<8x512xf32>
    %80 = arith.cmpf ogt, %78, %79 : vector<8x512xf32>
    %cst_40 = arith.constant 2.000000e-01 : f32
    %81 = vector.broadcast %cst_40 : f32 to vector<8x512xf32>
    %82 = arith.mulf %81, %78 : vector<8x512xf32>
    %83 = arith.select %80, %78, %82 : vector<8x512xi1>, vector<8x512xf32>
    %84 = arith.truncf %83 : vector<8x512xf32> to vector<8x512xbf16>
    %c0_41 = arith.constant 0 : index
    %c0_42 = arith.constant 0 : index
    %85 = vector.load %arg11[%c0_41, %c0_42] : memref<512x128xbf16, #tpu.memory_space<vmem>>, vector<512x128xbf16>
    %cst_43 = arith.constant dense<0.000000e+00> : vector<8x128xf32>
    %86 = tpu.matmul %84, %85, %cst_43 {dimension_numbers = #tpu.dot_dimension_numbers<[1], [0], [0], [1], [0, 0, 1, 1], [], []>} : vector<8x512xbf16>, vector<512x128xbf16>, vector<8x128xf32> -> vector<8x128xf32>
    %c0_44 = arith.constant 0 : index
    %c0_45 = arith.constant 0 : index
    %87 = vector.load %arg12[%c0_44, %c0_45] : memref<1x128xf32, #tpu.memory_space<vmem>>, vector<1x128xf32>
    %88 = vector.broadcast %87 : vector<1x128xf32> to vector<8x128xf32>
    %89 = arith.addf %86, %88 : vector<8x128xf32>
    %cst_46 = arith.constant 0.000000e+00 : f32
    %90 = vector.broadcast %cst_46 : f32 to vector<8x128xf32>
    %91 = arith.subf %90, %89 : vector<8x128xf32>
    %92 = math.exp %91 : vector<8x128xf32>
    %cst_47 = arith.constant 1.000000e+00 : f32
    %93 = vector.broadcast %cst_47 : f32 to vector<8x128xf32>
    %94 = arith.addf %93, %92 : vector<8x128xf32>
    %95 = tpu.reciprocal %94 {approx = true} : vector<8x128xf32> -> vector<8x128xf32>
    %c0_48 = arith.constant 0 : index
    %c0_49 = arith.constant 0 : index
    %96 = vector.load %arg13[%c0_48, %c0_49] : memref<8x128xf32, #tpu.memory_space<vmem>>, vector<8x128xf32>
    tpu.vector_store %arg13[%c0_48, %c0_49], %95 {strides = array<i32>} : memref<8x128xf32, #tpu.memory_space<vmem>>, vector<8x128xf32>,
    return
  }
}

</mosaic_0001>

<bundles_post_ra>
// kernel: tpu_custom_call.1
= control target key start
LH: loop header
LB: loop body
LE: loop exit
PB: predicated region body
PF: predicated region fallthrough
CT: control target
= control target key end

     0   :  { %18 = vsyncpa [#allocation3], 0  ;;  %s9812_s0 = inlined_call_operand.hbm [shape: f32[8,56], index: 0, kind: input, shape index: {}]   ;;  %s9813_s1 = inlined_call_operand.hbm [shape: bf16[56,1024], index: 1, kind: input, shape index: {}]   ;;  %s9814_s2 = inlined_call_operand.hbm [shape: f32[1,1024], index: 2, kind: input, shape index: {}]   ;;  %s9815_s3 = inlined_call_operand.hbm [shape: bf16[1024,1024], index: 3, kind: input, shape index: {}]   ;;  %s9816_s4 = inlined_call_operand.hbm [shape: f32[1,1024], index: 4, kind: input, shape index: {}]   ;;  %s9817_s5 = inlined_call_operand.hbm [shape: f32[1,1024], index: 5, kind: input, shape index: {}]   ;;  %s9818_s6 = inlined_call_operand.hbm [shape: f32[1,1024], index: 6, kind: input, shape index: {}]   ;;  %s9819_s7 = inlined_call_operand.hbm [shape: bf16[1024,512], index: 7, kind: input, shape index: {}]   ;;  %s9820_s8 = inlined_call_operand.hbm [shape: f32[1,512], index: 8, kind: input, shape index: {}]   ;;  %s9821_s9 = inlined_call_operand.hbm [shape: f32[1,512], index: 9, kind: input, shape index: {}]   ;;  %s9822_s10 = inlined_call_operand.hbm [shape: f32[1,512], index: 10, kind: input, shape index: {}]   ;;  %s9823_s11 = inlined_call_operand.hbm [shape: bf16[512,128], index: 11, kind: input, shape index: {}]   ;;  %s9824_s12 = inlined_call_operand.hbm [shape: f32[1,128], index: 12, kind: input, shape index: {}]   ;;  %s9825_s13 = inlined_call_operand.hbm [shape: f32[8,128], index: 13, kind: output, shape index: {}]  }
   0x1   :  { %19 = vsyncpa [#allocation6], 0 }
   0x2   :  { %20 = vsyncpa [#allocation9], 0 }
   0x3   :  { %21 = vsyncpa [#allocation12], 0 }
   0x4   :  { %22 = vsyncpa [#allocation15], 0 }
   0x5   :  { %23 = vsyncpa [#allocation18], 0 }
   0x6   :  { %24 = vsyncpa [#allocation21], 0 }
   0x7   :  { %25 = vsyncpa [#allocation4], 0  ;;  %s9065_s25 = smov [#allocation5]   ;;  %s8741_s29 = scalar_lea.hbm %s9813_s1, 3584 }
   0x8   :  { %s41_s26 = sshll.u32 %s9065_s25, 4  ;;  %p8742_p0 = scmp.ne.s32.totalorder %s9813_s1, %s8741_s29  ;;  %s42_s26 = int_to_ptr.vmem [resolvable:$true] %s41_s26 }
   0x9   :  { %p8745_p1 = scmp.lt.u32.totalorder %s8741_s29, %s9813_s1 }
   0xb   :  { %p8747_p2 = pnand %p8745_p1, %p8742_p0 }
   0xd   :  { %8750 = shalt.err (!%p8747_p2)
}
   0xe   :  { %s8751_s17 = scalar_lea.vmem %s42_s26, 3584  ;;  %p8756_p4 = scmp.lt.s32.totalorder %s42_s26, %s42_s26 }
   0xf   :  { %p8752_p3 = scmp.ne.s32.totalorder %s42_s26, %s8751_s17  ;;  %p8757_p5 = scmp.lt.s32.totalorder %s8751_s17, %s8751_s17 }
  0x11   :  { %p8758_p6 = por %p8757_p5, %p8756_p4 }
  0x13   :  { %p8759_p7 = pnand %p8758_p6, %p8752_p3 }
  0x15   :  { %8762 = shalt.err (!%p8759_p7)
}
  0x16   :  { %s9066_s18 = smov 512   ;;  %s9067_s19 = smov 32  }
  0x17   :  { %47 = dma.hbm_to_vmem [thread:$0]  %s9813_s1, 3584, %s42_s26, [#allocation6], %s9066_s18, %s9066_s18, %s9067_s19  }
  0x18   :  { %s9068_s22 = smov [#allocation8]   ;;  %s9069_s24 = smov [#allocation11]  }
  0x19   :  { %s63_s23 = sshll.u32 %s9068_s22, 4  ;;  %s86_s25 = sshll.u32 %s9069_s24, 4  ;;  %s64_s23 = int_to_ptr.vmem [resolvable:$true] %s63_s23  ;;  %s87_s25 = int_to_ptr.vmem [resolvable:$true] %s86_s25 }
  0x1a   :  { %s8763_s29 = scalar_lea.hbm %s9815_s3, 65536 }
  0x1b   :  { %p8764_p8 = scmp.ne.s32.totalorder %s9815_s3, %s8763_s29  ;;  %p8767_p9 = scmp.lt.u32.totalorder %s8763_s29, %s9815_s3 }
  0x1d   :  { %p8769_p10 = pnand %p8767_p9, %p8764_p8 }
  0x1f   :  { %8772 = shalt.err (!%p8769_p10)
}
  0x20   :  { %s8773_s1 = scalar_lea.vmem %s64_s23, 65536  ;;  %p8778_p12 = scmp.lt.s32.totalorder %s64_s23, %s64_s23 }
  0x21   :  { %p8774_p11 = scmp.ne.s32.totalorder %s64_s23, %s8773_s1  ;;  %p8779_p13 = scmp.lt.s32.totalorder %s8773_s1, %s8773_s1 }
  0x23   :  { %p8780_p0 = por %p8779_p13, %p8778_p12 }
  0x25   :  { %p8781_p1 = pnand %p8780_p0, %p8774_p11 }
  0x27   :  { %8784 = shalt.err (!%p8781_p1)
}
  0x28   :  { %69 = dma.hbm_to_vmem [thread:$0]  %s9815_s3, 65536, %s64_s23, [#allocation9], %s9066_s18, %s9066_s18, %s9067_s19  }
  0x29   :  { %s8785_s22 = scalar_lea.hbm %s9817_s5, 128 }
  0x2a   :  { %p8786_p2 = scmp.ne.s32.totalorder %s9817_s5, %s8785_s22  ;;  %p8789_p3 = scmp.lt.u32.totalorder %s8785_s22, %s9817_s5 }
  0x2c   :  { %p8791_p4 = pnand %p8789_p3, %p8786_p2 }
  0x2e   :  { %8794 = shalt.err (!%p8791_p4)
}
  0x2f   :  { %s8795_s30 = scalar_lea.vmem %s87_s25, 128  ;;  %p8800_p6 = scmp.lt.s32.totalorder %s87_s25, %s87_s25 }
  0x30   :  { %p8796_p5 = scmp.ne.s32.totalorder %s87_s25, %s8795_s30  ;;  %p8801_p7 = scmp.lt.s32.totalorder %s8795_s30, %s8795_s30 }
  0x32   :  { %p8802_p8 = por %p8801_p7, %p8800_p6 }
  0x34   :  { %p8803_p9 = pnand %p8802_p8, %p8796_p5 }
  0x36   :  { %8806 = shalt.err (!%p8803_p9)
}
  0x37   :  { %89 = dma.hbm_to_vmem [thread:$0]  %s9817_s5, 128, %s87_s25, [#allocation12]  }
  0x38   :  { %s9070_s19 = smov [#allocation14]   ;;  %s8807_s16 = scalar_lea.hbm %s9819_s7, 32768 }
  0x39   :  { %s105_s23 = sshll.u32 %s9070_s19, 4  ;;  %p8808_p10 = scmp.ne.s32.totalorder %s9819_s7, %s8807_s16  ;;  %s106_s23 = int_to_ptr.vmem [resolvable:$true] %s105_s23 }
  0x3a   :  { %p8811_p11 = scmp.lt.u32.totalorder %s8807_s16, %s9819_s7 }
  0x3c   :  { %p8813_p12 = pnand %p8811_p11, %p8808_p10 }
  0x3e   :  { %8816 = shalt.err (!%p8813_p12)
}
  0x3f   :  { %s8817_s21 = scalar_lea.vmem %s106_s23, 32768  ;;  %p8822_p0 = scmp.lt.s32.totalorder %s106_s23, %s106_s23 }
  0x40   :  { %p8818_p13 = scmp.ne.s32.totalorder %s106_s23, %s8817_s21  ;;  %p8823_p1 = scmp.lt.s32.totalorder %s8817_s21, %s8817_s21 }
  0x42   :  { %p8824_p2 = por %p8823_p1, %p8822_p0 }
  0x44   :  { %p8825_p3 = pnand %p8824_p2, %p8818_p13 }
  0x46   :  { %8828 = shalt.err (!%p8825_p3)
}
  0x47   :  { %s9071_s5 = smov 256   ;;  %s9072_s25 = smov 16  }
  0x48   :  { %111 = dma.hbm_to_vmem [thread:$0]  %s9819_s7, 32768, %s106_s23, [#allocation15], %s9071_s5, %s9071_s5, %s9072_s25  }
  0x49   :  { %s9073_s27 = smov [#allocation17]   ;;  %s9074_s29 = smov [#allocation20]  }
  0x4a   :  { %s128_s28 = sshll.u32 %s9073_s27, 4  ;;  %s147_s30 = sshll.u32 %s9074_s29, 4  ;;  %s129_s28 = int_to_ptr.vmem [resolvable:$true] %s128_s28  ;;  %s9205_s30 = int_to_ptr.vmem [resolvable:$true] %s147_s30 }
  0x4b   :  { %s8829_s19 = scalar_lea.hbm %s9821_s9, 64 }
  0x4c   :  { %p8830_p4 = scmp.ne.s32.totalorder %s9821_s9, %s8829_s19  ;;  %p8833_p5 = scmp.lt.u32.totalorder %s8829_s19, %s9821_s9 }
  0x4e   :  { %p8835_p6 = pnand %p8833_p5, %p8830_p4 }
  0x50   :  { %8838 = shalt.err (!%p8835_p6)
}
  0x51   :  { %s8839_s7 = scalar_lea.vmem %s129_s28, 64  ;;  %p8844_p8 = scmp.lt.s32.totalorder %s129_s28, %s129_s28 }
  0x52   :  { %p8840_p7 = scmp.ne.s32.totalorder %s129_s28, %s8839_s7  ;;  %p8845_p9 = scmp.lt.s32.totalorder %s8839_s7, %s8839_s7 }
  0x54   :  { %p8846_p10 = por %p8845_p9, %p8844_p8 }
  0x56   :  { %p8847_p11 = pnand %p8846_p10, %p8840_p7 }
  0x58   :  { %8850 = shalt.err (!%p8847_p11)
}
  0x59   :  { %131 = dma.hbm_to_vmem [thread:$0]  %s9821_s9, 64, %s129_s28, [#allocation18]  }
  0x5a   :  { %s8851_s21 = scalar_lea.hbm %s9823_s11, 4096 }
  0x5b   :  { %p8852_p12 = scmp.ne.s32.totalorder %s9823_s11, %s8851_s21  ;;  %p8855_p13 = scmp.lt.u32.totalorder %s8851_s21, %s9823_s11 }
  0x5d   :  { %p8857_p0 = pnand %p8855_p13, %p8852_p12 }
  0x5f   :  { %8860 = shalt.err (!%p8857_p0)
}
  0x60   :  { %s8861_s27 = scalar_lea.vmem %s9205_s30, 4096  ;;  %p8866_p2 = scmp.lt.s32.totalorder %s9205_s30, %s9205_s30 }
  0x61   :  { %p8862_p1 = scmp.ne.s32.totalorder %s9205_s30, %s8861_s27  ;;  %p8867_p3 = scmp.lt.s32.totalorder %s8861_s27, %s8861_s27 }
  0x63   :  { %p8868_p4 = por %p8867_p3, %p8866_p2 }
  0x65   :  { %p8869_p5 = pnand %p8868_p4, %p8862_p1 }
  0x67   :  { %8872 = shalt.err (!%p8869_p5)
}
  0x68   :  { %s9075_s9 = smov 64   ;;  %s9076_s28 = smov 4  }
  0x69   :  { %153 = dma.hbm_to_vmem [thread:$0]  %s9823_s11, 4096, %s9205_s30, [#allocation21], %s9075_s9, %s9075_s9, %s9076_s28  }
  0x6a   :  { %s9077_s18 = smov [#allocation2]   ;;  %s9078_s14 = smov [#allocation7]  }
  0x6b   :  { %s32_s19 = sshll.u32 %s9077_s18, 4  ;;  %s54_s15 = sshll.u32 %s9078_s14, 4  ;;  %s33_s19 = int_to_ptr.vmem [resolvable:$true] %s32_s19  ;;  %s55_s15 = int_to_ptr.vmem [resolvable:$true] %s54_s15 }
  0x6c   :  { %s8873_s7 = scalar_lea.hbm %s9812_s0, 128 }
  0x6d   :  { %p8874_p6 = scmp.ne.s32.totalorder %s9812_s0, %s8873_s7  ;;  %p8877_p7 = scmp.lt.u32.totalorder %s8873_s7, %s9812_s0 }
  0x6f   :  { %p8879_p8 = pnand %p8877_p7, %p8874_p6 }
  0x71   :  { %8882 = shalt.err (!%p8879_p8)
}
  0x72   :  { %s8883_s11 = scalar_lea.vmem %s33_s19, 128  ;;  %p8888_p10 = scmp.lt.s32.totalorder %s33_s19, %s33_s19 }
  0x73   :  { %p8884_p9 = scmp.ne.s32.totalorder %s33_s19, %s8883_s11  ;;  %p8889_p11 = scmp.lt.s32.totalorder %s8883_s11, %s8883_s11 }
  0x75   :  { %p8890_p12 = por %p8889_p11, %p8888_p10 }
  0x77   :  { %p8891_p13 = pnand %p8890_p12, %p8884_p9 }
  0x79   :  { %8894 = shalt.err (!%p8891_p13)
}
  0x7a   :  { %35 = dma.hbm_to_vmem [thread:$0]  %s9812_s0, 128, %s33_s19, [#allocation3]  }
  0x7b   :  { %s8895_s22 = scalar_lea.hbm %s9814_s2, 128 }
  0x7c   :  { %p8896_p0 = scmp.ne.s32.totalorder %s9814_s2, %s8895_s22  ;;  %p8899_p1 = scmp.lt.u32.totalorder %s8895_s22, %s9814_s2 }
  0x7e   :  { %p8901_p2 = pnand %p8899_p1, %p8896_p0 }
  0x80   :  { %8904 = shalt.err (!%p8901_p2)
}
  0x81   :  { %s8905_s29 = scalar_lea.vmem %s55_s15, 128  ;;  %p8910_p4 = scmp.lt.s32.totalorder %s55_s15, %s55_s15 }
  0x82   :  { %p8906_p3 = scmp.ne.s32.totalorder %s55_s15, %s8905_s29  ;;  %p8911_p5 = scmp.lt.s32.totalorder %s8905_s29, %s8905_s29 }
  0x84   :  { %p8912_p6 = por %p8911_p5, %p8910_p4 }
  0x86   :  { %p8913_p7 = pnand %p8912_p6, %p8906_p3 }
  0x88   :  { %8916 = shalt.err (!%p8913_p7)
}
  0x89   :  { %57 = dma.hbm_to_vmem [thread:$0]  %s9814_s2, 128, %s55_s15, [#allocation6]  }
  0x8a   :  { %s9079_s18 = smov [#allocation10]   ;;  %s9080_s14 = smov [#allocation13]  }
  0x8b   :  { %s76_s19 = sshll.u32 %s9079_s18, 4  ;;  %s96_s16 = sshll.u32 %s9080_s14, 4  ;;  %s77_s19 = int_to_ptr.vmem [resolvable:$true] %s76_s19  ;;  %s97_s16 = int_to_ptr.vmem [resolvable:$true] %s96_s16 }
  0x8c   :  { %s8917_s23 = scalar_lea.hbm %s9816_s4, 128 }
  0x8d   :  { %p8918_p8 = scmp.ne.s32.totalorder %s9816_s4, %s8917_s23  ;;  %p8921_p9 = scmp.lt.u32.totalorder %s8917_s23, %s9816_s4 }
  0x8f   :  { %p8923_p10 = pnand %p8921_p9, %p8918_p8 }
  0x91   :  { %8926 = shalt.err (!%p8923_p10)
}
  0x92   :  { %s8927_s2 = scalar_lea.vmem %s77_s19, 128  ;;  %p8932_p12 = scmp.lt.s32.totalorder %s77_s19, %s77_s19 }
  0x93   :  { %p8928_p11 = scmp.ne.s32.totalorder %s77_s19, %s8927_s2  ;;  %p8933_p13 = scmp.lt.s32.totalorder %s8927_s2, %s8927_s2 }
  0x95   :  { %p8934_p0 = por %p8933_p13, %p8932_p12 }
  0x97   :  { %p8935_p1 = pnand %p8934_p0, %p8928_p11 }
  0x99   :  { %8938 = shalt.err (!%p8935_p1)
}
  0x9a   :  { %79 = dma.hbm_to_vmem [thread:$0]  %s9816_s4, 128, %s77_s19, [#allocation9]  }
  0x9b   :  { %s8939_s25 = scalar_lea.hbm %s9818_s6, 128 }
  0x9c   :  { %p8940_p2 = scmp.ne.s32.totalorder %s9818_s6, %s8939_s25  ;;  %p8943_p3 = scmp.lt.u32.totalorder %s8939_s25, %s9818_s6 }
  0x9e   :  { %p8945_p4 = pnand %p8943_p3, %p8940_p2 }
  0xa0   :  { %8948 = shalt.err (!%p8945_p4)
}
  0xa1   :  { %s8949_s28 = scalar_lea.vmem %s97_s16, 128  ;;  %p8954_p6 = scmp.lt.s32.totalorder %s97_s16, %s97_s16 }
  0xa2   :  { %p8950_p5 = scmp.ne.s32.totalorder %s97_s16, %s8949_s28  ;;  %p8955_p7 = scmp.lt.s32.totalorder %s8949_s28, %s8949_s28 }
  0xa4   :  { %p8956_p8 = por %p8955_p7, %p8954_p6 }
  0xa6   :  { %p8957_p9 = pnand %p8956_p8, %p8950_p5 }
  0xa8   :  { %8960 = shalt.err (!%p8957_p9)
}
  0xa9   :  { %99 = dma.hbm_to_vmem [thread:$0]  %s9818_s6, 128, %s97_s16, [#allocation12]  }
  0xaa   :  { %s9081_s0 = smov [#allocation16]   ;;  %s9082_s18 = smov [#allocation19]  }
  0xab   :  { %s118_s3 = sshll.u32 %s9081_s0, 4  ;;  %s138_s19 = sshll.u32 %s9082_s18, 4  ;;  %s119_s3 = int_to_ptr.vmem [resolvable:$true] %s118_s3  ;;  %s139_s19 = int_to_ptr.vmem [resolvable:$true] %s138_s19 }
  0xac   :  { %s8961_s7 = scalar_lea.hbm %s9820_s8, 64 }
  0xad   :  { %p8962_p10 = scmp.ne.s32.totalorder %s9820_s8, %s8961_s7  ;;  %p8965_p11 = scmp.lt.u32.totalorder %s8961_s7, %s9820_s8 }
  0xaf   :  { %p8967_p12 = pnand %p8965_p11, %p8962_p10 }
  0xb1   :  { %8970 = shalt.err (!%p8967_p12)
}
  0xb2   :  { %s8971_s6 = scalar_lea.vmem %s119_s3, 64  ;;  %p8976_p0 = scmp.lt.s32.totalorder %s119_s3, %s119_s3 }
  0xb3   :  { %p8972_p13 = scmp.ne.s32.totalorder %s119_s3, %s8971_s6  ;;  %p8977_p1 = scmp.lt.s32.totalorder %s8971_s6, %s8971_s6 }
  0xb5   :  { %p8978_p2 = por %p8977_p1, %p8976_p0 }
  0xb7   :  { %p8979_p3 = pnand %p8978_p2, %p8972_p13 }
  0xb9   :  { %8982 = shalt.err (!%p8979_p3)
}
  0xba   :  { %121 = dma.hbm_to_vmem [thread:$0]  %s9820_s8, 64, %s119_s3, [#allocation15]  }
  0xbb   :  { %s8983_s30 = scalar_lea.hbm %s9822_s10, 64 }
  0xbc   :  { %p8984_p4 = scmp.ne.s32.totalorder %s9822_s10, %s8983_s30  ;;  %p8987_p5 = scmp.lt.u32.totalorder %s8983_s30, %s9822_s10 }
  0xbe   :  { %p8989_p6 = pnand %p8987_p5, %p8984_p4 }
  0xc0   :  { %8992 = shalt.err (!%p8989_p6)
}
  0xc1   :  { %s8993_s24 = scalar_lea.vmem %s139_s19, 64  ;;  %p8998_p8 = scmp.lt.s32.totalorder %s139_s19, %s139_s19 }
  0xc2   :  { %p8994_p7 = scmp.ne.s32.totalorder %s139_s19, %s8993_s24  ;;  %p8999_p9 = scmp.lt.s32.totalorder %s8993_s24, %s8993_s24 }
  0xc4   :  { %p9000_p10 = por %p8999_p9, %p8998_p8 }
  0xc6   :  { %p9001_p11 = pnand %p9000_p10, %p8994_p7 }
  0xc8   :  { %9004 = shalt.err (!%p9001_p11)
}
  0xc9   :  { %141 = dma.hbm_to_vmem [thread:$0]  %s9822_s10, 64, %s139_s19, [#allocation18]  }
  0xca   :  { %s9083_s9 = smov [#allocation22]   ;;  %s9005_s0 = scalar_lea.hbm %s9824_s12, 16 }
  0xcb   :  { %s160_s28 = sshll.u32 %s9083_s9, 4  ;;  %p9006_p12 = scmp.ne.s32.totalorder %s9824_s12, %s9005_s0  ;;  %s161_s28 = int_to_ptr.vmem [resolvable:$true] %s160_s28 }
  0xcc   :  { %p9009_p13 = scmp.lt.u32.totalorder %s9005_s0, %s9824_s12 }
  0xce   :  { %p9011_p0 = pnand %p9009_p13, %p9006_p12 }
  0xd0   :  { %9014 = shalt.err (!%p9011_p0)
}
  0xd1   :  { %s9015_s7 = scalar_lea.vmem %s161_s28, 16  ;;  %s9019_s10 = scalar_lea.vmem %s161_s28, 32 }
  0xd2   :  { %p9016_p1 = scmp.ne.s32.totalorder %s161_s28, %s9015_s7  ;;  %p9020_p2 = scmp.lt.s32.totalorder %s161_s28, %s161_s28 }
  0xd3   :  { %p9021_p3 = scmp.lt.s32.totalorder %s9019_s10, %s9015_s7 }
  0xd5   :  { %p9022_p4 = por %p9021_p3, %p9020_p2 }
  0xd7   :  { %p9023_p5 = pnand %p9022_p4, %p9016_p1 }
  0xd9   :  { %9026 = shalt.err (!%p9023_p5)
}
  0xda   :  { %163 = dma.hbm_to_vmem [thread:$0]  %s9824_s12, 16, %s161_s28, [#allocation21]  }
  0xdb   :  { %9049 = dma.done.wait [#allocation3], 128  }
  0xdc   :  { %9050 = vsyncadd [#allocation3], 4294967168 }
  0xdd   :  { %9051 = dma.done.wait [#allocation6], 3712  }
  0xde   :  { %9052 = vsyncadd [#allocation6], 4294963584 }
  0xdf   :  { %9053 = dma.done.wait [#allocation9], 65664  }
  0xe0   :  { %9054 = vsyncadd [#allocation9], 4294901632 }
  0xe1   :  { %9055 = dma.done.wait [#allocation12], 256  }
  0xe2   :  { %9056 = vsyncadd [#allocation12], 4294967040 }
  0xe3   :  { %9057 = dma.done.wait [#allocation15], 32832  }
  0xe4   :  { %9058 = vsyncadd [#allocation15], 4294934464 }
  0xe5   :  { %9059 = dma.done.wait [#allocation18], 128  }
  0xe6   :  { %9060 = vsyncadd [#allocation18], 4294967168 }
  0xe7   :  { %9061 = dma.done.wait [#allocation21], 4112  }
  0xe8   :  { %9062 = vsyncadd [#allocation21], 4294963184  ;;  %v9084_v0 = vmov 0   ;;  %v206_v1 = vld [vmem:[#allocation5] sm:$0xff]  ;;  %v207_v10 = vld [vmem:[#allocation5 + $0x8] sm:$0xff]  ;;  %vm420_vm0 = vcmask 1043456  }
  0xe9   :  { %477 = vmatprep.mubr.bf16.mxu0 %v9084_v0  ;;  %518 = vmatprep.mubr.bf16.mxu1 %v9084_v0  ;;  %v210_v2 = vld [vmem:[#allocation5 + $0x20] sm:$0xff]  ;;  %v211_v11 = vld [vmem:[#allocation5 + $0x28] sm:$0xff]  ;;  %v208_v28 = vld [vmem:[#allocation5 + $0x10] sm:$0xff]  ;;  %vm416_vm1 = vcmask 457728   ;;  %s9086_s12 = smov [#allocation23]  }
  0xea   :  { %v214_v3 = vld [vmem:[#allocation5 + $0x40] sm:$0xff]  ;;  %v7298_v4 = vcombine.high %v206_v1, %v210_v2  ;;  %v7297_v5 = vcombine.low %v206_v1, %v210_v2  ;;  %v215_v12 = vld [vmem:[#allocation5 + $0x48] sm:$0xff]  ;;  %v7300_v15 = vcombine.high %v207_v10, %v211_v11  ;;  %v7299_v16 = vcombine.low %v207_v10, %v211_v11  ;;  %v212_v29 = vld [vmem:[#allocation5 + $0x30] sm:$0xff]  ;;  %s7282_s26 = sshll.u32 %s9086_s12, 4  ;;  %s7283_s26 = int_to_ptr.vmem [resolvable:$true] %s7282_s26 }
  0xeb   :  { %v218_v6 = vld [vmem:[#allocation5 + $0x60] sm:$0xff]  ;;  %v219_v13 = vld [vmem:[#allocation5 + $0x68] sm:$0xff]  ;;  %v204_v31 = vld [vmem:[#allocation2] sm:$0xff]  ;;  %v7302_v35 = vcombine.high %v208_v28, %v212_v29  ;;  %v7301_v42 = vcombine.low %v208_v28, %v212_v29  ;;  %s9027_s17 = scalar_lea.vmem %s7283_s26, 128  ;;  %p9032_p7 = scmp.lt.s32.totalorder %s7283_s26, %s7283_s26 }
  0xec   :  { %v7306_v7 = vcombine.high %v214_v3, %v218_v6  ;;  %v222_v8 = vld [vmem:[#allocation5 + $0x80] sm:$0xff]  ;;  %445 = vmatprep.subr.bf16.mxu0 %v7298_v4  ;;  %v7305_v14 = vcombine.low %v214_v3, %v218_v6  ;;  %v7308_v17 = vcombine.high %v215_v12, %v219_v13  ;;  %v223_v19 = vld [vmem:[#allocation5 + $0x88] sm:$0xff]  ;;  %486 = vmatprep.subr.bf16.mxu1 %v7300_v15  ;;  %v216_v36 = vld [vmem:[#allocation5 + $0x50] sm:$0xff]  ;;  %p9028_p6 = scmp.ne.s32.totalorder %s7283_s26, %s9027_s17  ;;  %p9033_p8 = scmp.lt.s32.totalorder %s9027_s17, %s9027_s17 }
  0xed   :  { %v226_v9 = vld [vmem:[#allocation5 + $0xa0] sm:$0xff]  ;;  %446 = vmatpush1.bf16.msra.mxu0 %v7297_v5  ;;  %v227_v20 = vld [vmem:[#allocation5 + $0xa8] sm:$0xff]  ;;  %487 = vmatpush1.bf16.msra.mxu1 %v7299_v16  ;;  %v7307_v22 = vcombine.low %v215_v12, %v219_v13  ;;  %v220_v37 = vld [vmem:[#allocation5 + $0x70] sm:$0xff]  ;;  %v9324_v40 = vpack.c.bf16 %v204_v31, %v204_v31 }
  0xee   :  { %447 = vmatprep.subr.bf16.mxu0 %v7306_v7  ;;  %v7314_v18 = vcombine.high %v222_v8, %v226_v9  ;;  %v230_v21 = vld [vmem:[#allocation5 + $0xc0] sm:$0xff]  ;;  %v7313_v23 = vcombine.low %v222_v8, %v226_v9  ;;  %488 = vmatprep.subr.bf16.mxu1 %v7308_v17  ;;  %v7316_v24 = vcombine.high %v223_v19, %v227_v20  ;;  %v231_v27 = vld [vmem:[#allocation5 + $0xc8] sm:$0xff]  ;;  %v209_v38 = vld [vmem:[#allocation5 + $0x18] sm:$0xff]  ;;  %p9034_p9 = por %p9033_p8, %p9032_p7 }
  0xef   :  { %v7322_v25 = vcombine.high %v230_v21, %v230_v21  ;;  %v7321_v26 = vcombine.low %v230_v21, %v230_v21  ;;  %v7315_v30 = vcombine.low %v223_v19, %v227_v20  ;;  %v7324_v32 = vcombine.high %v231_v27, %v231_v27  ;;  %v213_v39 = vld [vmem:[#allocation5 + $0x38] sm:$0xff]  ;;  %v224_v47 = vld [vmem:[#allocation5 + $0x90] sm:$0xff]  ;;  %v641_v62 = vld [vmem:[#allocation8] sm:$0xff] }
  0xf0   :  { %v7323_v33 = vcombine.low %v231_v27, %v231_v27  ;;  %v7310_v43 = vcombine.high %v216_v36, %v220_v37  ;;  %v7304_v44 = vcombine.high %v209_v38, %v213_v39  ;;  %v217_v45 = vld [vmem:[#allocation5 + $0x58] sm:$0xff]  ;;  %v228_v48 = vld [vmem:[#allocation5 + $0xb0] sm:$0xff]  ;;  %v7303_v49 = vcombine.low %v209_v38, %v213_v39  ;;  %v645_v63 = vld [vmem:[#allocation8 + $0x20] sm:$0xff]  ;;  %p9035_p10 = pnand %p9034_p9, %p9028_p6 }
  0xf1   :  { %448 = vmatpush1.bf16.msra.mxu0 %v7305_v14  ;;  %489 = vmatpush1.bf16.msra.mxu1 %v7307_v22  ;;  %v422_v34 = vsel %vm420_vm0, %v7321_v26, 0  ;;  %v221_v46 = vld [vmem:[#allocation5 + $0x78] sm:$0xff]  ;;  %v7309_v50 = vcombine.low %v216_v36, %v220_v37  ;;  %v7318_v52 = vcombine.high %v224_v47, %v228_v48  ;;  %v232_v55 = vld [vmem:[#allocation5 + $0xd0] sm:$0xff]  ;;  %v7317_v57 = vcombine.low %v224_v47, %v228_v48  ;;  %v649_v6 = vld [vmem:[#allocation8 + $0x40] sm:$0xff] }
  0xf2   :  { %449 = vmatprep.subr.bf16.mxu0 %v7314_v18  ;;  %490 = vmatprep.subr.bf16.mxu1 %v7316_v24  ;;  %v428_v41 = vsel %vm420_vm0, %v7323_v33, 0  ;;  %v7312_v51 = vcombine.high %v217_v45, %v221_v46  ;;  %v225_v53 = vld [vmem:[#allocation5 + $0x98] sm:$0xff]  ;;  %v7311_v56 = vcombine.low %v217_v45, %v221_v46  ;;  %v7326_v59 = vcombine.high %v232_v55, %v232_v55  ;;  %v642_v2 = vld [vmem:[#allocation8 + $0x8] sm:$0xff]  ;;  %v657_v14 = vld [vmem:[#allocation8 + $0x80] sm:$0xff] }
  0xf3   :  { %v229_v54 = vld [vmem:[#allocation5 + $0xb8] sm:$0xff]  ;;  %v7325_v60 = vcombine.low %v232_v55, %v232_v55  ;;  %v646_v3 = vld [vmem:[#allocation8 + $0x28] sm:$0xff]  ;;  %v7338_v8 = vcombine.high %v641_v62, %v645_v63  ;;  %v7337_v12 = vcombine.low %v641_v62, %v645_v63  ;;  %v661_v15 = vld [vmem:[#allocation8 + $0xa0] sm:$0xff] }
  0xf4   :  { %v7320_v58 = vcombine.high %v225_v53, %v229_v54  ;;  %v233_v61 = vld [vmem:[#allocation5 + $0xd8] sm:$0xff]  ;;  %v7319_v1 = vcombine.low %v225_v53, %v229_v54  ;;  %v650_v9 = vld [vmem:[#allocation8 + $0x48] sm:$0xff]  ;;  %v7340_v13 = vcombine.high %v642_v2, %v646_v3  ;;  %v7339_v17 = vcombine.low %v642_v2, %v646_v3  ;;  %v665_v22 = vld [vmem:[#allocation8 + $0xc0] sm:$0xff] }
  0xf5   :  { %450 = vmatpush1.bf16.msra.mxu0 %v7313_v23  ;;  %491 = vmatpush1.bf16.msra.mxu1 %v7315_v30  ;;  %v7328_v4 = vcombine.high %v233_v61, %v233_v61  ;;  %v7327_v5 = vcombine.low %v233_v61, %v233_v61  ;;  %v434_v7 = vsel %vm420_vm0, %v7325_v60, 0  ;;  %v654_v10 = vld [vmem:[#allocation8 + $0x68] sm:$0xff]  ;;  %v669_v23 = vld [vmem:[#allocation8 + $0xe0] sm:$0xff]  ;;  %v7354_v24 = vcombine.high %v657_v14, %v661_v15 }
  0xf6   :  { %7329 = vmatprep.subr.msk.bf16.mxu0 %vm420_vm0, %v7322_v25  ;;  %7331 = vmatprep.subr.msk.bf16.mxu1 %vm420_vm0, %v7324_v32  ;;  %v658_v18 = vld [vmem:[#allocation8 + $0x88] sm:$0xff]  ;;  %v7348_v21 = vcombine.high %v650_v9, %v654_v10  ;;  %v7347_v25 = vcombine.low %v650_v9, %v654_v10  ;;  %v7353_v28 = vcombine.low %v657_v14, %v661_v15  ;;  %v673_v30 = vld [vmem:[#allocation8 + $0x100] sm:$0xff] }
  0xf7   :  { %v440_v11 = vsel %vm420_vm0, %v7327_v5, 0  ;;  %v662_v19 = vld [vmem:[#allocation8 + $0xa8] sm:$0xff]  ;;  %v677_v31 = vld [vmem:[#allocation8 + $0x120] sm:$0xff]  ;;  %v7362_v32 = vcombine.high %v665_v22, %v669_v23  ;;  %v7361_v36 = vcombine.low %v665_v22, %v669_v23 }
  0xf8   :  { %v666_v26 = vld [vmem:[#allocation8 + $0xc8] sm:$0xff]  ;;  %v7356_v29 = vcombine.high %v658_v18, %v662_v19  ;;  %v7355_v33 = vcombine.low %v658_v18, %v662_v19  ;;  %v681_v38 = vld [vmem:[#allocation8 + $0x140] sm:$0xff] }
  0xf9   :  { %452 = vmatpush1.bf16.msra.mxu0 %v422_v34  ;;  %493 = vmatpush1.bf16.msra.mxu1 %v428_v41  ;;  %v670_v27 = vld [vmem:[#allocation8 + $0xe8] sm:$0xff]  ;;  %v685_v39 = vld [vmem:[#allocation8 + $0x160] sm:$0xff] }
  0xfa   :  { %527 = vmatprep.subr.bf16.mxu0 %v7302_v35  ;;  %568 = vmatprep.subr.bf16.mxu1 %v7304_v44  ;;  %v674_v34 = vld [vmem:[#allocation8 + $0x108] sm:$0xff]  ;;  %v7364_v37 = vcombine.high %v666_v26, %v670_v27  ;;  %v7363_v41 = vcombine.low %v666_v26, %v670_v27  ;;  %v7369_v44 = vcombine.low %v673_v30, %v677_v31  ;;  %v689_v46 = vld [vmem:[#allocation8 + $0x180] sm:$0xff] }
  0xfb   :  { %v678_v35 = vld [vmem:[#allocation8 + $0x128] sm:$0xff]  ;;  %v693_v47 = vld [vmem:[#allocation8 + $0x1a0] sm:$0xff]  ;;  %v7378_v48 = vcombine.high %v681_v38, %v685_v39 }
  0xfc   :  { %7330 = vmatmul.mubr.msk.bf16.vlgmr.msra.gmra.mrb[0].mxu0 %vm416_vm1, %v9324_v40  ;;  %7332 = vmatmul.mubr.msk.bf16.vlgmr.msra.gmra.mrb[0].mxu1 %vm416_vm1, %v9324_v40  ;;  %v7372_v45 = vcombine.high %v674_v34, %v678_v35  ;;  %v697_v54 = vld [vmem:[#allocation8 + $0x1c0] sm:$0xff]  ;;  %v7385_v60 = vcombine.low %v689_v46, %v693_v47  ;;  %v706_v3 = vld [vmem:[#allocation8 + $0x208] sm:$0xff] }
  0xfd   :  { %528 = vmatpush1.bf16.msra.mxu0 %v7301_v42  ;;  %559 = vmatprep.mubr.bf16.mxu0 %v9084_v0  ;;  %v682_v42 = vld [vmem:[#allocation8 + $0x148] sm:$0xff]  ;;  %v701_v55 = vld [vmem:[#allocation8 + $0x1e0] sm:$0xff] }
  0xfe   :  { %529 = vmatprep.subr.bf16.mxu0 %v7310_v43  ;;  %569 = vmatpush1.bf16.msra.mxu1 %v7303_v49  ;;  %v686_v43 = vld [vmem:[#allocation8 + $0x168] sm:$0xff]  ;;  %v7371_v49 = vcombine.low %v674_v34, %v678_v35  ;;  %v705_v62 = vld [vmem:[#allocation8 + $0x200] sm:$0xff]  ;;  %v7393_v5 = vcombine.low %v697_v54, %v701_v55 }
  0xff   :  { %600 = vmatprep.mubr.bf16.mxu1 %v9084_v0  ;;  %570 = vmatprep.subr.bf16.mxu1 %v7312_v51  ;;  %v653_v0 = vld [vmem:[#allocation8 + $0x60] sm:$0xff]  ;;  %v694_v51 = vld [vmem:[#allocation8 + $0x1a8] sm:$0xff]  ;;  %v7380_v53 = vcombine.high %v682_v42, %v686_v43 }
 0x100   :  { %v7346_v16 = vcombine.high %v649_v6, %v653_v0  ;;  %v7345_v20 = vcombine.low %v649_v6, %v653_v0  ;;  %v709_v63 = vld [vmem:[#allocation8 + $0x220] sm:$0xff]  ;;  %v714_v10 = vld [vmem:[#allocation8 + $0x248] sm:$0xff] }
 0x101   :  { %530 = vmatpush1.bf16.msra.mxu0 %v7309_v50  ;;  %v690_v50 = vld [vmem:[#allocation8 + $0x188] sm:$0xff]  ;;  %v713_v0 = vld [vmem:[#allocation8 + $0x240] sm:$0xff] }
 0x102   :  { %531 = vmatprep.subr.bf16.mxu0 %v7318_v52  ;;  %571 = vmatpush1.bf16.msra.mxu1 %v7311_v56  ;;  %v7377_v52 = vcombine.low %v681_v38, %v685_v39  ;;  %v7386_v56 = vcombine.high %v689_v46, %v693_v47  ;;  %v7388_v61 = vcombine.high %v690_v50, %v694_v51  ;;  %v721_v14 = vld [vmem:[#allocation8 + $0x280] sm:$0xff]  ;;  %v722_v18 = vld [vmem:[#allocation8 + $0x288] sm:$0xff] }
 0x103   :  { %572 = vmatprep.subr.bf16.mxu1 %v7320_v58  ;;  %v698_v58 = vld [vmem:[#allocation8 + $0x1c8] sm:$0xff]  ;;  %v7387_v2 = vcombine.low %v690_v50, %v694_v51  ;;  %v725_v15 = vld [vmem:[#allocation8 + $0x2a0] sm:$0xff] }
 0x104   :  { %v726_v19 = vld [vmem:[#allocation8 + $0x2a8] sm:$0xff]  ;;  %v729_v22 = vld [vmem:[#allocation8 + $0x2c0] sm:$0xff] }
 0x105   :  { %532 = vmatpush1.bf16.msra.mxu0 %v7317_v57  ;;  %v7379_v57 = vcombine.low %v682_v42, %v686_v43  ;;  %v733_v23 = vld [vmem:[#allocation8 + $0x2e0] sm:$0xff]  ;;  %v730_v26 = vld [vmem:[#allocation8 + $0x2c8] sm:$0xff] }
 0x106   :  { %7333 = vmatprep.subr.msk.bf16.mxu0 %vm420_vm0, %v7326_v59  ;;  %573 = vmatpush1.bf16.msra.mxu1 %v7319_v1  ;;  %v702_v59 = vld [vmem:[#allocation8 + $0x1e8] sm:$0xff]  ;;  %v7394_v1 = vcombine.high %v697_v54, %v701_v55  ;;  %v745_v38 = vld [vmem:[#allocation8 + $0x340] sm:$0xff] }
 0x107   :  { %7335 = vmatprep.subr.msk.bf16.mxu1 %vm420_vm0, %v7328_v4  ;;  %v710_v4 = vld [vmem:[#allocation8 + $0x228] sm:$0xff]  ;;  %v7396_v6 = vcombine.high %v698_v58, %v702_v59  ;;  %v7395_v9 = vcombine.low %v698_v58, %v702_v59  ;;  %v749_v39 = vld [vmem:[#allocation8 + $0x360] sm:$0xff] }
 0x108   :  { %v734_v27 = vld [vmem:[#allocation8 + $0x2e8] sm:$0xff]  ;;  %v7442_v46 = vcombine.high %v745_v38, %v749_v39  ;;  %v753_v51 = vld [vmem:[#allocation8 + $0x380] sm:$0xff] }
 0x109   :  { %534 = vmatpush1.bf16.msra.mxu0 %v434_v7  ;;  %v717_v7 = vld [vmem:[#allocation8 + $0x260] sm:$0xff]  ;;  %v738_v34 = vld [vmem:[#allocation8 + $0x308] sm:$0xff] }
 0x10a   :  { %3755 = vmatprep.subr.bf16.mxu0 %v7338_v8  ;;  %575 = vmatpush1.bf16.msra.mxu1 %v440_v11  ;;  %v7402_v8 = vcombine.high %v705_v62, %v709_v63  ;;  %v718_v11 = vld [vmem:[#allocation8 + $0x268] sm:$0xff]  ;;  %v761_v59 = vld [vmem:[#allocation8 + $0x3c0] sm:$0xff] }
 0x10b   :  { %3919 = vmatprep.subr.bf16.mxu1 %v7340_v13  ;;  %v7404_v13 = vcombine.high %v706_v3, %v710_v4  ;;  %v742_v35 = vld [vmem:[#allocation8 + $0x328] sm:$0xff] }
 0x10c   :  { %7334 = vmatmul.mubr.msk.bf16.vlgmr.msra.gmra.mrb[4].mxu0 %vm416_vm1, %v9324_v40  ;;  %v746_v42 = vld [vmem:[#allocation8 + $0x348] sm:$0xff]  ;;  %v7435_v47 = vcombine.low %v738_v34, %v742_v35 }
 0x10d   :  { %3756 = vmatpush1.bf16.msra.mxu0 %v7337_v12  ;;  %7336 = vmatmul.mubr.msk.bf16.vlgmr.msra.gmra.mrb[4].mxu1 %vm416_vm1, %v9324_v40  ;;  %v7370_v40 = vcombine.high %v673_v30, %v677_v31  ;;  %v7401_v12 = vcombine.low %v705_v62, %v709_v63  ;;  %v737_v30 = vld [vmem:[#allocation8 + $0x300] sm:$0xff]  ;;  %v750_v43 = vld [vmem:[#allocation8 + $0x368] sm:$0xff] }
 0x10e   :  { %3757 = vmatprep.subr.bf16.mxu0 %v7346_v16  ;;  %3920 = vmatpush1.bf16.msra.mxu1 %v7339_v17  ;;  %v7410_v16 = vcombine.high %v713_v0, %v717_v7  ;;  %v7403_v17 = vcombine.low %v706_v3, %v710_v4  ;;  %v741_v31 = vld [vmem:[#allocation8 + $0x320] sm:$0xff]  ;;  %v7443_v50 = vcombine.low %v746_v42, %v750_v43  ;;  %v758_v55 = vld [vmem:[#allocation8 + $0x3a8] sm:$0xff] }
 0x10f   :  { %3921 = vmatprep.subr.bf16.mxu1 %v7348_v21  ;;  %v7412_v21 = vcombine.high %v714_v10, %v718_v11  ;;  %v766_v63 = vld [vmem:[#allocation8 + $0x3e8] sm:$0xff]  ;;  %v769_v4 = vld [vmem:[#allocation8 + $0x400] sm:$0xff] }
 0x111   :  { %3758 = vmatpush1.bf16.msra.mxu0 %v7345_v20  ;;  %v7409_v20 = vcombine.low %v713_v0, %v717_v7  ;;  %v774_v7 = vld [vmem:[#allocation8 + $0x428] sm:$0xff] }
 0x112   :  { %3759 = vmatprep.subr.bf16.mxu0 %v7354_v24  ;;  %3922 = vmatpush1.bf16.msra.mxu1 %v7347_v25  ;;  %v7418_v24 = vcombine.high %v721_v14, %v725_v15  ;;  %v7411_v25 = vcombine.low %v714_v10, %v718_v11  ;;  %v236_v11 = vlaneseq }
 0x113   :  { %3923 = vmatprep.subr.bf16.mxu1 %v7356_v29  ;;  %v7420_v29 = vcombine.high %v722_v18, %v726_v19 }
 0x115   :  { %3760 = vmatpush1.bf16.msra.mxu0 %v7353_v28  ;;  %v7417_v28 = vcombine.low %v721_v14, %v725_v15  ;;  %v9347_v14 = vld [vmem:[#allocation7] sm:$0xff] }
 0x116   :  { %3761 = vmatprep.subr.bf16.mxu0 %v7362_v32  ;;  %3924 = vmatpush1.bf16.msra.mxu1 %v7355_v33  ;;  %v7426_v32 = vcombine.high %v729_v22, %v733_v23  ;;  %v7419_v33 = vcombine.low %v722_v18, %v726_v19 }
 0x117   :  { %3925 = vmatprep.subr.bf16.mxu1 %v7364_v37  ;;  %v7428_v37 = vcombine.high %v730_v26, %v734_v27 }
 0x119   :  { %3762 = vmatpush1.bf16.msra.mxu0 %v7361_v36  ;;  %v7425_v36 = vcombine.low %v729_v22, %v733_v23 }
 0x11a   :  { %3763 = vmatprep.subr.bf16.mxu0 %v7370_v40  ;;  %3926 = vmatpush1.bf16.msra.mxu1 %v7363_v41  ;;  %v7434_v40 = vcombine.high %v737_v30, %v741_v31  ;;  %v7427_v41 = vcombine.low %v730_v26, %v734_v27 }
 0x11b   :  { %3927 = vmatprep.subr.bf16.mxu1 %v7372_v45  ;;  %v7436_v45 = vcombine.high %v738_v34, %v742_v35  ;;  %v782_v34 = vld [vmem:[#allocation8 + $0x468] sm:$0xff] }
 0x11d   :  { %3764 = vmatpush1.bf16.msra.mxu0 %v7369_v44  ;;  %v7433_v44 = vcombine.low %v737_v30, %v741_v31 }
 0x11e   :  { %3765 = vmatprep.subr.bf16.mxu0 %v7378_v48  ;;  %3928 = vmatpush1.bf16.msra.mxu1 %v7371_v49  ;;  %v7441_v48 = vcombine.low %v745_v38, %v749_v39  ;;  %v7444_v49 = vcombine.high %v746_v42, %v750_v43 }
 0x11f   :  { %3929 = vmatprep.subr.bf16.mxu1 %v7380_v53  ;;  %v754_v53 = vld [vmem:[#allocation8 + $0x388] sm:$0xff] }
 0x120   :  { %v7452_v58 = vcombine.high %v754_v53, %v758_v55 }
 0x121   :  { %3766 = vmatpush1.bf16.msra.mxu0 %v7377_v52  ;;  %v757_v52 = vld [vmem:[#allocation8 + $0x3a0] sm:$0xff] }
 0x122   :  { %3767 = vmatprep.subr.bf16.mxu0 %v7386_v56  ;;  %3930 = vmatpush1.bf16.msra.mxu1 %v7379_v57  ;;  %v7450_v54 = vcombine.high %v753_v51, %v757_v52  ;;  %v7449_v56 = vcombine.low %v753_v51, %v757_v52  ;;  %v7451_v57 = vcombine.low %v754_v53, %v758_v55  ;;  %v797_v55 = vld [vmem:[#allocation8 + $0x4e0] sm:$0xff] }
 0x123   :  { %3931 = vmatprep.subr.bf16.mxu1 %v7388_v61  ;;  %v762_v61 = vld [vmem:[#allocation8 + $0x3c8] sm:$0xff] }
 0x124   :  { %v7460_v3 = vcombine.high %v762_v61, %v766_v63 }
 0x125   :  { %3768 = vmatpush1.bf16.msra.mxu0 %v7385_v60  ;;  %v765_v60 = vld [vmem:[#allocation8 + $0x3e0] sm:$0xff] }
 0x126   :  { %3769 = vmatprep.subr.bf16.mxu0 %v7394_v1  ;;  %3932 = vmatpush1.bf16.msra.mxu1 %v7387_v2  ;;  %v7458_v62 = vcombine.high %v761_v59, %v765_v60  ;;  %v7457_v1 = vcombine.low %v761_v59, %v765_v60  ;;  %v7459_v2 = vcombine.low %v762_v61, %v766_v63 }
 0x127   :  { %3933 = vmatprep.subr.bf16.mxu1 %v7396_v6  ;;  %v770_v6 = vld [vmem:[#allocation8 + $0x408] sm:$0xff] }
 0x128   :  { %v7468_v10 = vcombine.high %v770_v6, %v774_v7 }
 0x129   :  { %3770 = vmatpush1.bf16.msra.mxu0 %v7393_v5  ;;  %v773_v5 = vld [vmem:[#allocation8 + $0x420] sm:$0xff] }
 0x12a   :  { %3771 = vmatprep.subr.bf16.mxu0 %v7402_v8  ;;  %3934 = vmatpush1.bf16.msra.mxu1 %v7395_v9  ;;  %v7466_v0 = vcombine.high %v769_v4, %v773_v5  ;;  %v7465_v8 = vcombine.low %v769_v4, %v773_v5  ;;  %v7467_v9 = vcombine.low %v770_v6, %v774_v7 }
 0x12b   :  { %3935 = vmatprep.subr.bf16.mxu1 %v7404_v13 }
 0x12d   :  { %3772 = vmatpush1.bf16.msra.mxu0 %v7401_v12  ;;  %v9342_v12 = vshrl.u32 %v236_v11, 7  ;;  %v813_v11 = vld [vmem:[#allocation8 + $0x560] sm:$0xff] }
 0x12e   :  { %3773 = vmatprep.subr.bf16.mxu0 %v7410_v16  ;;  %3936 = vmatpush1.bf16.msra.mxu1 %v7403_v17 }
 0x12f   :  { %3937 = vmatprep.subr.bf16.mxu1 %v7412_v21  ;;  %v9345_v13 = vsub.s32 0, %v9342_v12  ;;  %v9350_v15 = vsub.s32 1, %v9342_v12  ;;  %v9355_v17 = vsub.s32 3, %v9342_v12 }
 0x131   :  { %3774 = vmatpush1.bf16.msra.mxu0 %v7409_v20  ;;  %v239_v16 = vrot.slane %v9347_v14, %v9345_v13  ;;  %v243_v18 = vrot.slane %v9347_v14, %v9350_v15  ;;  %v251_v22 = vrot.slane %v9347_v14, %v9355_v17 }
 0x132   :  { %3775 = vmatprep.subr.bf16.mxu0 %v7418_v24  ;;  %3938 = vmatpush1.bf16.msra.mxu1 %v7411_v25 }
 0x133   :  { %3939 = vmatprep.subr.bf16.mxu1 %v7420_v29  ;;  %v777_v29 = vld [vmem:[#allocation8 + $0x440] sm:$0xff] }
 0x135   :  { %3776 = vmatpush1.bf16.msra.mxu0 %v7417_v28 }
 0x136   :  { %3777 = vmatprep.subr.bf16.mxu0 %v7426_v32  ;;  %3940 = vmatpush1.bf16.msra.mxu1 %v7419_v33  ;;  %v781_v32 = vld [vmem:[#allocation8 + $0x460] sm:$0xff]  ;;  %v778_v33 = vld [vmem:[#allocation8 + $0x448] sm:$0xff] }
 0x137   :  { %3941 = vmatprep.subr.bf16.mxu1 %v7428_v37  ;;  %v7474_v42 = vcombine.high %v777_v29, %v781_v32  ;;  %v7476_v43 = vcombine.high %v778_v33, %v782_v34  ;;  %v7475_v51 = vcombine.low %v778_v33, %v782_v34  ;;  %v825_v34 = vld [vmem:[#allocation8 + $0x5c0] sm:$0xff] }
 0x139   :  { %3778 = vmatpush1.bf16.msra.mxu0 %v7425_v36 }
 0x13a   :  { %3779 = vmatprep.subr.bf16.mxu0 %v7434_v40  ;;  %3942 = vmatpush1.bf16.msra.mxu1 %v7427_v41 }
 0x13b   :  { %3943 = vmatprep.subr.bf16.mxu1 %v7436_v45  ;;  %v789_v45 = vld [vmem:[#allocation8 + $0x4a0] sm:$0xff] }
 0x13d   :  { %3780 = vmatpush1.bf16.msra.mxu0 %v7433_v44  ;;  %v785_v44 = vld [vmem:[#allocation8 + $0x480] sm:$0xff] }
 0x13e   :  { %3781 = vmatprep.subr.bf16.mxu0 %v7442_v46  ;;  %3944 = vmatpush1.bf16.msra.mxu1 %v7435_v47  ;;  %v786_v46 = vld [vmem:[#allocation8 + $0x488] sm:$0xff]  ;;  %v7482_v52 = vcombine.high %v785_v44, %v789_v45 }
 0x13f   :  { %3945 = vmatprep.subr.bf16.mxu1 %v7444_v49  ;;  %v790_v47 = vld [vmem:[#allocation8 + $0x4a8] sm:$0xff] }
 0x140   :  { %v7484_v53 = vcombine.high %v786_v46, %v790_v47  ;;  %v7483_v59 = vcombine.low %v786_v46, %v790_v47  ;;  %v833_v46 = vld [vmem:[#allocation8 + $0x600] sm:$0xff] }
 0x141   :  { %3782 = vmatpush1.bf16.msra.mxu0 %v7441_v48  ;;  %v837_v47 = vld [vmem:[#allocation8 + $0x620] sm:$0xff] }
 0x142   :  { %3946 = vmatpush1.bf16.msra.mxu1 %v7443_v50  ;;  %3783 = vmatprep.subr.bf16.mxu0 %v7450_v54  ;;  %v7473_v50 = vcombine.low %v777_v29, %v781_v32  ;;  %v793_v54 = vld [vmem:[#allocation8 + $0x4c0] sm:$0xff] }
 0x143   :  { %3947 = vmatprep.subr.bf16.mxu1 %v7452_v58  ;;  %v7481_v58 = vcombine.low %v785_v44, %v789_v45  ;;  %v7490_v60 = vcombine.high %v793_v54, %v797_v55  ;;  %v7489_v6 = vcombine.low %v793_v54, %v797_v55  ;;  %v841_v55 = vld [vmem:[#allocation8 + $0x640] sm:$0xff] }
 0x145   :  { %3784 = vmatpush1.bf16.msra.mxu0 %v7449_v56  ;;  %v794_v56 = vld [vmem:[#allocation8 + $0x4c8] sm:$0xff] }
 0x146   :  { %3948 = vmatpush1.bf16.msra.mxu1 %v7451_v57  ;;  %3785 = vmatprep.subr.bf16.mxu0 %v7458_v62  ;;  %v798_v57 = vld [vmem:[#allocation8 + $0x4e8] sm:$0xff]  ;;  %v801_v62 = vld [vmem:[#allocation8 + $0x500] sm:$0xff] }
 0x147   :  { %3949 = vmatprep.subr.bf16.mxu1 %v7460_v3  ;;  %v7492_v61 = vcombine.high %v794_v56, %v798_v57  ;;  %v806_v3 = vld [vmem:[#allocation8 + $0x528] sm:$0xff] }
 0x149   :  { %3786 = vmatpush1.bf16.msra.mxu0 %v7457_v1  ;;  %v805_v1 = vld [vmem:[#allocation8 + $0x520] sm:$0xff] }
 0x14a   :  { %3950 = vmatpush1.bf16.msra.mxu1 %v7459_v2  ;;  %3796 = vmatprep.subr.bf16.mxu0 %v7466_v0  ;;  %v802_v2 = vld [vmem:[#allocation8 + $0x508] sm:$0xff]  ;;  %v7491_v0 = vcombine.low %v794_v56, %v798_v57  ;;  %v845_v56 = vld [vmem:[#allocation8 + $0x660] sm:$0xff] }
 0x14b   :  { %3960 = vmatprep.subr.bf16.mxu1 %v7468_v10  ;;  %v809_v10 = vld [vmem:[#allocation8 + $0x540] sm:$0xff]  ;;  %v842_v57 = vld [vmem:[#allocation8 + $0x648] sm:$0xff] }
 0x14c   :  { %v7505_v29 = vcombine.low %v809_v10, %v813_v11 }
 0x1cf   :  { %v479_v19 = vpop.f32.mrb[0].mxu0  ;;  %v9361_v27 = vpop.f32.mrb[0].mxu1 }
 0x1d0   :  { %v480_v20 = vadd.f32 %v479_v19, %v239_v16  ;;  %v481_v21 = vpop.f32.mrb[1].mxu0  ;;  %v522_v30 = vpop.f32.mrb[1].mxu1  ;;  %v810_v16 = vld [vmem:[#allocation8 + $0x548] sm:$0xff]  ;;  %v7497_v19 = vcombine.low %v801_v62, %v805_v1 }
 0x1d1   :  { %v482_v23 = vadd.f32 %v481_v21, %v243_v18  ;;  %v483_v24 = vpop.f32.mrb[2].mxu0  ;;  %v523_v35 = vadd.f32 %v522_v30, %v251_v22  ;;  %v524_v36 = vpop.f32.mrb[2].mxu1  ;;  %v814_v18 = vld [vmem:[#allocation8 + $0x568] sm:$0xff]  ;;  %v7506_v21 = vcombine.high %v809_v10, %v813_v11  ;;  %v861_v10 = vld [vmem:[#allocation8 + $0x6e0] sm:$0xff] }
 0x1d2   :  { %vm609_vm2 = vcmp.gt.f32.partialorder %v480_v20, 0.0  ;;  %v617_v25 = vmul.f32 0.2, %v480_v20  ;;  %v484_v26 = vpop.f32.mrb[3].mxu0  ;;  %v525_v38 = vpop.f32.mrb[3].mxu1  ;;  %v7508_v22 = vcombine.high %v810_v16, %v814_v18  ;;  %v7507_v30 = vcombine.low %v810_v16, %v814_v18  ;;  %v829_v36 = vld [vmem:[#allocation8 + $0x5e0] sm:$0xff] }
 0x1d3   :  { %vm610_vm3 = vcmp.gt.f32.partialorder %v482_v23, 0.0  ;;  %v618_v28 = vmul.f32 0.2, %v482_v23  ;;  %vm612_vm4 = vcmp.gt.f32.partialorder %v523_v35, 0.0  ;;  %v620_v40 = vmul.f32 0.2, %v523_v35 }
 0x1d4   :  { %v625_v31 = vsel %vm609_vm2, %v480_v20, %v617_v25  ;;  %v7499_v20 = vcombine.low %v802_v2, %v806_v3  ;;  %v821_v25 = vld [vmem:[#allocation8 + $0x5a0] sm:$0xff]  ;;  %v818_v26 = vld [vmem:[#allocation8 + $0x588] sm:$0xff]  ;;  %v7522_v44 = vcombine.high %v825_v34, %v829_v36 }
 0x1d5   :  { %v626_v37 = vsel %vm610_vm3, %v482_v23, %v618_v28  ;;  %v9365_v41 = vpack.c.bf16 %v625_v31, %v625_v31  ;;  %v628_v48 = vsel %vm612_vm4, %v523_v35, %v620_v40  ;;  %v817_v23 = vld [vmem:[#allocation8 + $0x580] sm:$0xff]  ;;  %v822_v28 = vld [vmem:[#allocation8 + $0x5a8] sm:$0xff] }
 0x1d6   :  { %v9363_v39 = vpack.c.bf16 %v626_v37, %v626_v37  ;;  %v9371_v49 = vpack.c.bf16 %v628_v48, %v628_v48  ;;  %v7514_v32 = vcombine.high %v817_v23, %v821_v25  ;;  %v7516_v33 = vcombine.high %v818_v26, %v822_v28  ;;  %v826_v37 = vld [vmem:[#allocation8 + $0x5c8] sm:$0xff] }
 0x1d7   :  { %v830_v38 = vld [vmem:[#allocation8 + $0x5e8] sm:$0xff] }
 0x1d8   :  { %3787 = vmatprep.mubr.bf16.mxu0 %v9363_v39  ;;  %3951 = vmatprep.mubr.bf16.mxu1 %v9363_v39  ;;  %v7524_v45 = vcombine.high %v826_v37, %v830_v38  ;;  %v834_v48 = vld [vmem:[#allocation8 + $0x608] sm:$0xff] }
 0x1d9   :  { %3788 = vmatmul.mubr.bf16.vlgmr.msra.gmra.mrb[8].mxu0 %v9365_v41  ;;  %3952 = vmatmul.mubr.bf16.vlgmr.msra.gmra.mrb[8].mxu1 %v9365_v41  ;;  %v858_v11 = vld [vmem:[#allocation8 + $0x6c8] sm:$0xff] }
 0x1da   :  { %3797 = vmatpush1.bf16.msra.mxu0 %v7465_v8  ;;  %3961 = vmatpush1.bf16.msra.mxu1 %v7467_v9  ;;  %v7498_v8 = vcombine.high %v801_v62, %v805_v1  ;;  %v7500_v9 = vcombine.high %v802_v2, %v806_v3  ;;  %v849_v1 = vld [vmem:[#allocation8 + $0x680] sm:$0xff]  ;;  %v850_v3 = vld [vmem:[#allocation8 + $0x688] sm:$0xff] }
 0x1db   :  { %3798 = vmatprep.subr.bf16.mxu0 %v7474_v42  ;;  %3962 = vmatprep.subr.bf16.mxu1 %v7476_v43  ;;  %v7513_v42 = vcombine.low %v817_v23, %v821_v25  ;;  %v7515_v43 = vcombine.low %v818_v26, %v822_v28  ;;  %v853_v2 = vld [vmem:[#allocation8 + $0x6a0] sm:$0xff]  ;;  %v862_v16 = vld [vmem:[#allocation8 + $0x6e8] sm:$0xff] }
 0x1dc   :  { %3828 = vmatprep.mubr.bf16.mxu0 %v9371_v49  ;;  %3992 = vmatprep.mubr.bf16.mxu1 %v9371_v49  ;;  %v7545_v18 = vcombine.low %v849_v1, %v853_v2  ;;  %v869_v23 = vld [vmem:[#allocation8 + $0x720] sm:$0xff]  ;;  %v866_v25 = vld [vmem:[#allocation8 + $0x708] sm:$0xff] }
 0x1dd   :  { %v870_v26 = vld [vmem:[#allocation8 + $0x728] sm:$0xff] }
 0x1de   :  { %3799 = vmatpush1.bf16.msra.mxu0 %v7473_v50  ;;  %3963 = vmatpush1.bf16.msra.mxu1 %v7475_v51  ;;  %v838_v50 = vld [vmem:[#allocation8 + $0x628] sm:$0xff]  ;;  %v7521_v51 = vcombine.low %v825_v34, %v829_v36  ;;  %v9384_v34 = vsub.s32 2, %v9342_v12 }
 0x1df   :  { %3800 = vmatprep.subr.bf16.mxu0 %v7482_v52  ;;  %3964 = vmatprep.subr.bf16.mxu1 %v7484_v53  ;;  %v9375_v63 = vpop.f32.mrb[4].mxu0  ;;  %v7523_v52 = vcombine.low %v826_v37, %v830_v38  ;;  %v7530_v53 = vcombine.high %v833_v46, %v837_v47  ;;  %v7532_v54 = vcombine.high %v834_v48, %v838_v50  ;;  %v874_v36 = vld [vmem:[#allocation8 + $0x748] sm:$0xff]  ;;  %v9387_v38 = vsub.s32 5, %v9342_v12 }
 0x1e0   :  { %v9377_v4 = vpop.f32.mrb[5].mxu0  ;;  %v9379_v24 = vpop.f32.mrb[4].mxu1  ;;  %v878_v37 = vld [vmem:[#allocation8 + $0x768] sm:$0xff] }
 0x1e1   :  { %v565_v5 = vpop.f32.mrb[6].mxu0  ;;  %v9381_v31 = vpop.f32.mrb[5].mxu1 }
 0x1e2   :  { %3801 = vmatpush1.bf16.msra.mxu0 %v7481_v58  ;;  %3965 = vmatpush1.bf16.msra.mxu1 %v7483_v59  ;;  %v566_v7 = vpop.f32.mrb[7].mxu0  ;;  %v606_v35 = vpop.f32.mrb[6].mxu1  ;;  %v846_v58 = vld [vmem:[#allocation8 + $0x668] sm:$0xff]  ;;  %v7529_v59 = vcombine.low %v833_v46, %v837_v47  ;;  %v247_v46 = vrot.slane %v9347_v14, %v9384_v34  ;;  %v885_v47 = vld [vmem:[#allocation8 + $0x7a0] sm:$0xff] }
 0x1e3   :  { %3802 = vmatprep.subr.bf16.mxu0 %v7490_v60  ;;  %3966 = vmatprep.subr.bf16.mxu1 %v7492_v61  ;;  %v607_v40 = vpop.f32.mrb[7].mxu1  ;;  %v7531_v60 = vcombine.low %v834_v48, %v838_v50  ;;  %v7538_v61 = vcombine.high %v841_v55, %v845_v56  ;;  %v7540_v62 = vcombine.high %v842_v57, %v846_v58  ;;  %v854_v5 = vld [vmem:[#allocation8 + $0x6a8] sm:$0xff]  ;;  %v877_v35 = vld [vmem:[#allocation8 + $0x760] sm:$0xff] }
 0x1e4   :  { %v7546_v7 = vcombine.high %v849_v1, %v853_v2  ;;  %v882_v48 = vld [vmem:[#allocation8 + $0x788] sm:$0xff] }
 0x1e5   :  { %v886_v50 = vld [vmem:[#allocation8 + $0x7a8] sm:$0xff] }
 0x1e6   :  { %3803 = vmatpush1.bf16.msra.mxu0 %v7489_v6  ;;  %3967 = vmatpush1.bf16.msra.mxu1 %v7491_v0  ;;  %v7537_v6 = vcombine.low %v841_v55, %v845_v56  ;;  %v7539_v0 = vcombine.low %v842_v57, %v846_v58  ;;  %v7580_v55 = vcombine.high %v882_v48, %v886_v50  ;;  %v889_v56 = vld [vmem:[#allocation8 + $0x7c0] sm:$0xff] }
 0x1e7   :  { %3804 = vmatprep.subr.bf16.mxu0 %v7498_v8  ;;  %3968 = vmatprep.subr.bf16.mxu1 %v7500_v9  ;;  %v7548_v8 = vcombine.high %v850_v3, %v854_v5  ;;  %v857_v9 = vld [vmem:[#allocation8 + $0x6c0] sm:$0xff]  ;;  %v521_v57 = vadd.f32 %v9361_v27, %v247_v46  ;;  %v7579_v1 = vcombine.low %v882_v48, %v886_v50  ;;  %v922_v46 = vld [vmem:[#allocation8 + $0x8c8] sm:$0xff] }
 0x1e8   :  { %v7553_v28 = vcombine.low %v857_v9, %v861_v10  ;;  %v893_v58 = vld [vmem:[#allocation8 + $0x7e0] sm:$0xff] }
 0x1e9   :  { %v7586_v2 = vcombine.high %v889_v56, %v893_v58  ;;  %vm611_vm5 = vcmp.gt.f32.partialorder %v521_v57, 0.0 }
 0x1ea   :  { %3805 = vmatpush1.bf16.msra.mxu0 %v7497_v19  ;;  %3969 = vmatpush1.bf16.msra.mxu1 %v7499_v20  ;;  %v7547_v19 = vcombine.low %v850_v3, %v854_v5  ;;  %v7554_v20 = vcombine.high %v857_v9, %v861_v10  ;;  %v897_v5 = vld [vmem:[#allocation8 + $0x800] sm:$0xff]  ;;  %v7585_v9 = vcombine.low %v889_v56, %v893_v58  ;;  %v934_v56 = vld [vmem:[#allocation8 + $0x928] sm:$0xff] }
 0x1eb   :  { %3806 = vmatprep.subr.bf16.mxu0 %v7506_v21  ;;  %3970 = vmatprep.subr.bf16.mxu1 %v7508_v22  ;;  %v7556_v21 = vcombine.high %v858_v11, %v862_v16  ;;  %v865_v22 = vld [vmem:[#allocation8 + $0x700] sm:$0xff] }
 0x1ec   :  { %v7561_v40 = vcombine.low %v865_v22, %v869_v23 }
 0x1ee   :  { %3807 = vmatpush1.bf16.msra.mxu0 %v7505_v29  ;;  %3971 = vmatpush1.bf16.msra.mxu1 %v7507_v30  ;;  %v7555_v29 = vcombine.low %v858_v11, %v862_v16  ;;  %v7562_v30 = vcombine.high %v865_v22, %v869_v23  ;;  %v905_v16 = vld [vmem:[#allocation8 + $0x840] sm:$0xff] }
 0x1ef   :  { %3808 = vmatprep.subr.bf16.mxu0 %v7514_v32  ;;  %3972 = vmatprep.subr.bf16.mxu1 %v7516_v33  ;;  %v7564_v32 = vcombine.high %v866_v25, %v870_v26  ;;  %v873_v33 = vld [vmem:[#allocation8 + $0x740] sm:$0xff] }
 0x1f2   :  { %3809 = vmatpush1.bf16.msra.mxu0 %v7513_v42  ;;  %3973 = vmatpush1.bf16.msra.mxu1 %v7515_v43  ;;  %v7563_v42 = vcombine.low %v866_v25, %v870_v26  ;;  %v7570_v43 = vcombine.high %v873_v33, %v877_v35 }
 0x1f3   :  { %3810 = vmatprep.subr.bf16.mxu0 %v7522_v44  ;;  %3974 = vmatprep.subr.bf16.mxu1 %v7524_v45  ;;  %v7572_v44 = vcombine.high %v874_v36, %v878_v37  ;;  %v881_v45 = vld [vmem:[#allocation8 + $0x780] sm:$0xff] }
 0x1f6   :  { %3811 = vmatpush1.bf16.msra.mxu0 %v7521_v51  ;;  %3975 = vmatpush1.bf16.msra.mxu1 %v7523_v52  ;;  %v259_v51 = vrot.slane %v9347_v14, %v9387_v38  ;;  %v7569_v52 = vcombine.low %v873_v33, %v877_v35  ;;  %v914_v33 = vld [vmem:[#allocation8 + $0x888] sm:$0xff] }
 0x1f7   :  { %3812 = vmatprep.subr.bf16.mxu0 %v7530_v53  ;;  %3976 = vmatprep.subr.bf16.mxu1 %v7532_v54  ;;  %v7571_v53 = vcombine.low %v874_v36, %v878_v37  ;;  %v7578_v54 = vcombine.high %v881_v45, %v885_v47  ;;  %v918_v35 = vld [vmem:[#allocation8 + $0x8a8] sm:$0xff] }
 0x1f8   :  { %v7611_v50 = vcombine.low %v914_v33, %v918_v35 }
 0x1fa   :  { %3813 = vmatpush1.bf16.msra.mxu0 %v7529_v59  ;;  %3977 = vmatpush1.bf16.msra.mxu1 %v7531_v60  ;;  %v890_v59 = vld [vmem:[#allocation8 + $0x7c8] sm:$0xff] }
 0x1fb   :  { %3814 = vmatprep.subr.bf16.mxu0 %v7538_v61  ;;  %3978 = vmatprep.subr.bf16.mxu1 %v7540_v62  ;;  %v894_v60 = vld [vmem:[#allocation8 + $0x7e8] sm:$0xff]  ;;  %v564_v61 = vadd.f32 %v9377_v4, %v259_v51  ;;  %v7577_v62 = vcombine.low %v881_v45, %v885_v47  ;;  %v925_v45 = vld [vmem:[#allocation8 + $0x8e0] sm:$0xff] }
 0x1fc   :  { %v7588_v3 = vcombine.high %v890_v59, %v894_v60  ;;  %v7587_v10 = vcombine.low %v890_v59, %v894_v60  ;;  %v926_v47 = vld [vmem:[#allocation8 + $0x8e8] sm:$0xff] }
 0x1fd   :  { %v622_v27 = vmul.f32 0.2, %v564_v61  ;;  %vm614_vm6 = vcmp.gt.f32.partialorder %v564_v61, 0.0  ;;  %v7619_v58 = vcombine.low %v922_v46, %v926_v47 }
 0x1fe   :  { %3815 = vmatpush1.bf16.msra.mxu0 %v7537_v6  ;;  %3979 = vmatpush1.bf16.msra.mxu1 %v7539_v0  ;;  %v619_v6 = vmul.f32 0.2, %v521_v57  ;;  %v901_v0 = vld [vmem:[#allocation8 + $0x820] sm:$0xff] }
 0x1ff   :  { %3816 = vmatprep.subr.bf16.mxu0 %v7546_v7  ;;  %3980 = vmatprep.subr.bf16.mxu1 %v7548_v8  ;;  %v898_v7 = vld [vmem:[#allocation8 + $0x808] sm:$0xff]  ;;  %v7594_v4 = vcombine.high %v897_v5, %v901_v0  ;;  %v630_v22 = vsel %vm614_vm6, %v564_v61, %v622_v27  ;;  %v7593_v23 = vcombine.low %v897_v5, %v901_v0  ;;  %v937_v61 = vld [vmem:[#allocation8 + $0x940] sm:$0xff] }
 0x200   :  { %v902_v8 = vld [vmem:[#allocation8 + $0x828] sm:$0xff]  ;;  %v9397_v36 = vpack.c.bf16 %v630_v22, %v630_v22 }
 0x201   :  { %v7596_v11 = vcombine.high %v898_v7, %v902_v8  ;;  %v7595_v25 = vcombine.low %v898_v7, %v902_v8  ;;  %v945_v7 = vld [vmem:[#allocation8 + $0x980] sm:$0xff]  ;;  %v946_v27 = vld [vmem:[#allocation8 + $0x988] sm:$0xff] }
 0x202   :  { %3817 = vmatpush1.bf16.msra.mxu0 %v7545_v18  ;;  %3981 = vmatpush1.bf16.msra.mxu1 %v7547_v19  ;;  %v627_v18 = vsel %vm611_vm5, %v521_v57, %v619_v6  ;;  %v909_v19 = vld [vmem:[#allocation8 + $0x860] sm:$0xff] }
 0x203   :  { %3818 = vmatprep.subr.bf16.mxu0 %v7554_v20  ;;  %3982 = vmatprep.subr.bf16.mxu1 %v7556_v21  ;;  %v906_v20 = vld [vmem:[#allocation8 + $0x848] sm:$0xff]  ;;  %v9395_v26 = vpack.c.bf16 %v627_v18, %v627_v18  ;;  %v7601_v37 = vcombine.low %v905_v16, %v909_v19  ;;  %v949_v8 = vld [vmem:[#allocation8 + $0x9a0] sm:$0xff] }
 0x204   :  { %v910_v21 = vld [vmem:[#allocation8 + $0x868] sm:$0xff]  ;;  %v953_v18 = vld [vmem:[#allocation8 + $0x9c0] sm:$0xff]  ;;  %v7641_v22 = vcombine.low %v945_v7, %v949_v8 }
 0x206   :  { %3819 = vmatpush1.bf16.msra.mxu0 %v7553_v28  ;;  %3983 = vmatpush1.bf16.msra.mxu1 %v7555_v29  ;;  %v7602_v28 = vcombine.high %v905_v16, %v909_v19  ;;  %v7604_v29 = vcombine.high %v906_v20, %v910_v21  ;;  %v957_v19 = vld [vmem:[#allocation8 + $0x9e0] sm:$0xff] }
 0x207   :  { %3820 = vmatprep.subr.bf16.mxu0 %v7562_v30  ;;  %3984 = vmatprep.subr.bf16.mxu1 %v7564_v32  ;;  %v913_v30 = vld [vmem:[#allocation8 + $0x880] sm:$0xff] }
 0x208   :  { %v917_v32 = vld [vmem:[#allocation8 + $0x8a0] sm:$0xff] }
 0x209   :  { %v7609_v48 = vcombine.low %v913_v30, %v917_v32 }
 0x20a   :  { %3821 = vmatpush1.bf16.msra.mxu0 %v7561_v40  ;;  %3985 = vmatpush1.bf16.msra.mxu1 %v7563_v42  ;;  %v7603_v40 = vcombine.low %v906_v20, %v910_v21  ;;  %v7610_v42 = vcombine.high %v913_v30, %v917_v32  ;;  %v954_v20 = vld [vmem:[#allocation8 + $0x9c8] sm:$0xff]  ;;  %v965_v30 = vld [vmem:[#allocation8 + $0xa20] sm:$0xff] }
 0x20b   :  { %3822 = vmatprep.subr.bf16.mxu0 %v7570_v43  ;;  %3986 = vmatprep.subr.bf16.mxu1 %v7572_v44  ;;  %v7612_v43 = vcombine.high %v914_v33, %v918_v35  ;;  %v921_v44 = vld [vmem:[#allocation8 + $0x8c0] sm:$0xff]  ;;  %v958_v21 = vld [vmem:[#allocation8 + $0x9e8] sm:$0xff]  ;;  %v7649_v35 = vcombine.low %v953_v18, %v957_v19 }
 0x20c   :  { %v7618_v51 = vcombine.high %v921_v44, %v925_v45  ;;  %v7617_v57 = vcombine.low %v921_v44, %v925_v45  ;;  %v962_v32 = vld [vmem:[#allocation8 + $0xa08] sm:$0xff]  ;;  %v973_v44 = vld [vmem:[#allocation8 + $0xa60] sm:$0xff] }
 0x20d   :  { %v966_v33 = vld [vmem:[#allocation8 + $0xa28] sm:$0xff] }
 0x20e   :  { %3823 = vmatpush1.bf16.msra.mxu0 %v7569_v52  ;;  %3987 = vmatpush1.bf16.msra.mxu1 %v7571_v53  ;;  %v7620_v52 = vcombine.high %v922_v46, %v926_v47  ;;  %v929_v53 = vld [vmem:[#allocation8 + $0x900] sm:$0xff]  ;;  %v970_v45 = vld [vmem:[#allocation8 + $0xa48] sm:$0xff] }
 0x20f   :  { %3824 = vmatprep.subr.bf16.mxu0 %v7578_v54  ;;  %3988 = vmatprep.subr.bf16.mxu1 %v7580_v55  ;;  %v933_v54 = vld [vmem:[#allocation8 + $0x920] sm:$0xff]  ;;  %v930_v55 = vld [vmem:[#allocation8 + $0x908] sm:$0xff] }
 0x210   :  { %v7626_v59 = vcombine.high %v929_v53, %v933_v54  ;;  %v7628_v60 = vcombine.high %v930_v55, %v934_v56  ;;  %v7627_v5 = vcombine.low %v930_v55, %v934_v56  ;;  %v974_v46 = vld [vmem:[#allocation8 + $0xa68] sm:$0xff] }
 0x211   :  { %v982_v55 = vld [vmem:[#allocation8 + $0xaa8] sm:$0xff] }
 0x212   :  { %3825 = vmatpush1.bf16.msra.mxu0 %v7577_v62  ;;  %3989 = vmatpush1.bf16.msra.mxu1 %v7579_v1  ;;  %v941_v62 = vld [vmem:[#allocation8 + $0x960] sm:$0xff]  ;;  %v938_v1 = vld [vmem:[#allocation8 + $0x948] sm:$0xff] }
 0x213   :  { %3826 = vmatprep.subr.bf16.mxu0 %v7586_v2  ;;  %3990 = vmatprep.subr.bf16.mxu1 %v7588_v3  ;;  %v942_v2 = vld [vmem:[#allocation8 + $0x968] sm:$0xff]  ;;  %v7625_v3 = vcombine.low %v929_v53, %v933_v54  ;;  %v7634_v6 = vcombine.high %v937_v61, %v941_v62  ;;  %v981_v53 = vld [vmem:[#allocation8 + $0xaa0] sm:$0xff] }
 0x214   :  { %v7636_v0 = vcombine.high %v938_v1, %v942_v2  ;;  %v978_v54 = vld [vmem:[#allocation8 + $0xa88] sm:$0xff] }
 0x216   :  { %3827 = vmatpush1.bf16.msra.mxu0 %v7585_v9  ;;  %3991 = vmatpush1.bf16.msra.mxu1 %v7587_v10  ;;  %v950_v9 = vld [vmem:[#allocation8 + $0x9a8] sm:$0xff]  ;;  %v7633_v10 = vcombine.low %v937_v61, %v941_v62  ;;  %v989_v61 = vld [vmem:[#allocation8 + $0xae0] sm:$0xff] }
 0x217   :  { %3837 = vmatprep.subr.bf16.mxu0 %v7594_v4  ;;  %4001 = vmatprep.subr.bf16.mxu1 %v7596_v11  ;;  %v7635_v4 = vcombine.low %v938_v1, %v942_v2  ;;  %v7642_v11 = vcombine.high %v945_v7, %v949_v8  ;;  %v7644_v16 = vcombine.high %v946_v27, %v950_v9  ;;  %v986_v62 = vld [vmem:[#allocation8 + $0xac8] sm:$0xff]  ;;  %v997_v7 = vld [vmem:[#allocation8 + $0xb20] sm:$0xff] }
 0x218   :  { %v990_v1 = vld [vmem:[#allocation8 + $0xae8] sm:$0xff] }
 0x219   :  { %3829 = vmatmul.mubr.bf16.vlgmr.msra.gmra.mrb[8].mxu0 %v9395_v26  ;;  %3993 = vmatmul.mubr.bf16.vlgmr.msra.gmra.mrb[8].mxu1 %v9395_v26  ;;  %v994_v8 = vld [vmem:[#allocation8 + $0xb08] sm:$0xff] }
 0x21a   :  { %3838 = vmatpush1.bf16.msra.mxu0 %v7593_v23  ;;  %4002 = vmatpush1.bf16.msra.mxu1 %v7595_v25  ;;  %v7643_v23 = vcombine.low %v946_v27, %v950_v9  ;;  %v7650_v25 = vcombine.high %v953_v18, %v957_v19  ;;  %v998_v27 = vld [vmem:[#allocation8 + $0xb28] sm:$0xff]  ;;  %v9404_v18 = vsub.s32 4, %v9342_v12  ;;  %v1005_v19 = vld [vmem:[#allocation8 + $0xb60] sm:$0xff] }
 0x21b   :  { %3839 = vmatprep.subr.bf16.mxu0 %v7602_v28  ;;  %4003 = vmatprep.subr.bf16.mxu1 %v7604_v29  ;;  %v7652_v28 = vcombine.high %v954_v20, %v958_v21  ;;  %v961_v29 = vld [vmem:[#allocation8 + $0xa00] sm:$0xff] }
 0x21c   :  { %3869 = vmatprep.mubr.bf16.mxu0 %v9397_v36  ;;  %4033 = vmatprep.mubr.bf16.mxu1 %v9397_v36  ;;  %v7657_v47 = vcombine.low %v961_v29, %v965_v30 }
 0x21e   :  { %3840 = vmatpush1.bf16.msra.mxu0 %v7601_v37  ;;  %4004 = vmatpush1.bf16.msra.mxu1 %v7603_v40  ;;  %v7651_v37 = vcombine.low %v954_v20, %v958_v21  ;;  %v7658_v40 = vcombine.high %v961_v29, %v965_v30  ;;  %v1002_v20 = vld [vmem:[#allocation8 + $0xb48] sm:$0xff]  ;;  %v1009_v30 = vld [vmem:[#allocation8 + $0xb80] sm:$0xff] }
 0x21f   :  { %3841 = vmatprep.subr.bf16.mxu0 %v7610_v42  ;;  %4005 = vmatprep.subr.bf16.mxu1 %v7612_v43  ;;  %v7660_v42 = vcombine.high %v962_v32, %v966_v33  ;;  %v969_v43 = vld [vmem:[#allocation8 + $0xa40] sm:$0xff]  ;;  %v1006_v21 = vld [vmem:[#allocation8 + $0xb68] sm:$0xff] }
 0x220   :  { %v7665_v56 = vcombine.low %v969_v43, %v973_v44  ;;  %v7700_v29 = vcombine.high %v1002_v20, %v1006_v21 }
 0x222   :  { %3842 = vmatpush1.bf16.msra.mxu0 %v7609_v48  ;;  %4006 = vmatpush1.bf16.msra.mxu1 %v7611_v50  ;;  %v7659_v48 = vcombine.low %v962_v32, %v966_v33  ;;  %v7666_v50 = vcombine.high %v969_v43, %v973_v44  ;;  %v255_v32 = vrot.slane %v9347_v14, %v9404_v18  ;;  %v1013_v33 = vld [vmem:[#allocation8 + $0xba0] sm:$0xff] }
 0x223   :  { %3843 = vmatprep.subr.bf16.mxu0 %v7618_v51  ;;  %4007 = vmatprep.subr.bf16.mxu1 %v7620_v52  ;;  %v7668_v51 = vcombine.high %v970_v45, %v974_v46  ;;  %v977_v52 = vld [vmem:[#allocation8 + $0xa80] sm:$0xff]  ;;  %v7699_v43 = vcombine.low %v1002_v20, %v1006_v21  ;;  %v7706_v44 = vcombine.high %v1009_v30, %v1013_v33  ;;  %v1046_v20 = vld [vmem:[#allocation8 + $0xca8] sm:$0xff] }
 0x224   :  { %v7673_v2 = vcombine.low %v977_v52, %v981_v53 }
 0x226   :  { %3844 = vmatpush1.bf16.msra.mxu0 %v7617_v57  ;;  %4008 = vmatpush1.bf16.msra.mxu1 %v7619_v58  ;;  %v7667_v57 = vcombine.low %v970_v45, %v974_v46  ;;  %v7674_v58 = vcombine.high %v977_v52, %v981_v53  ;;  %v1017_v46 = vld [vmem:[#allocation8 + $0xbc0] sm:$0xff]  ;;  %v7705_v53 = vcombine.low %v1009_v30, %v1013_v33  ;;  %v1050_v33 = vld [vmem:[#allocation8 + $0xcc8] sm:$0xff] }
 0x227   :  { %3845 = vmatprep.subr.bf16.mxu0 %v7626_v59  ;;  %4009 = vmatprep.subr.bf16.mxu1 %v7628_v60  ;;  %v7676_v59 = vcombine.high %v978_v54, %v982_v55  ;;  %v985_v60 = vld [vmem:[#allocation8 + $0xac0] sm:$0xff] }
 0x228   :  { %v7681_v9 = vcombine.low %v985_v60, %v989_v61  ;;  %v1049_v30 = vld [vmem:[#allocation8 + $0xcc0] sm:$0xff] }
 0x22a   :  { %3846 = vmatpush1.bf16.msra.mxu0 %v7625_v3  ;;  %4010 = vmatpush1.bf16.msra.mxu1 %v7627_v5  ;;  %v7675_v3 = vcombine.low %v978_v54, %v982_v55  ;;  %v7682_v5 = vcombine.high %v985_v60, %v989_v61  ;;  %v1030_v60 = vld [vmem:[#allocation8 + $0xc28] sm:$0xff] }
 0x22b   :  { %3847 = vmatprep.subr.bf16.mxu0 %v7634_v6  ;;  %4011 = vmatprep.subr.bf16.mxu1 %v7636_v0  ;;  %v7684_v6 = vcombine.high %v986_v62, %v990_v1  ;;  %v993_v0 = vld [vmem:[#allocation8 + $0xb00] sm:$0xff] }
 0x22e   :  { %3848 = vmatpush1.bf16.msra.mxu0 %v7633_v10  ;;  %4012 = vmatpush1.bf16.msra.mxu1 %v7635_v4  ;;  %v7683_v10 = vcombine.low %v986_v62, %v990_v1  ;;  %v7690_v4 = vcombine.high %v993_v0, %v997_v7 }
 0x22f   :  { %3849 = vmatprep.subr.bf16.mxu0 %v7642_v11  ;;  %4013 = vmatprep.subr.bf16.mxu1 %v7644_v16  ;;  %v7692_v11 = vcombine.high %v994_v8, %v998_v27  ;;  %v1001_v16 = vld [vmem:[#allocation8 + $0xb40] sm:$0xff] }
 0x232   :  { %3850 = vmatpush1.bf16.msra.mxu0 %v7641_v22  ;;  %4014 = vmatpush1.bf16.msra.mxu1 %v7643_v23  ;;  %v9407_v22 = vsub.s32 7, %v9342_v12  ;;  %v7689_v23 = vcombine.low %v993_v0, %v997_v7  ;;  %v1038_v0 = vld [vmem:[#allocation8 + $0xc68] sm:$0xff] }
 0x233   :  { %3851 = vmatprep.subr.bf16.mxu0 %v7650_v25  ;;  %4015 = vmatprep.subr.bf16.mxu1 %v7652_v28  ;;  %v7691_v25 = vcombine.low %v994_v8, %v998_v27  ;;  %v7698_v28 = vcombine.high %v1001_v16, %v1005_v19 }
 0x236   :  { %3852 = vmatpush1.bf16.msra.mxu0 %v7649_v35  ;;  %4016 = vmatpush1.bf16.msra.mxu1 %v7651_v37  ;;  %v1010_v35 = vld [vmem:[#allocation8 + $0xb88] sm:$0xff] }
 0x237   :  { %3853 = vmatprep.subr.bf16.mxu0 %v7658_v40  ;;  %4017 = vmatprep.subr.bf16.mxu1 %v7660_v42  ;;  %v1014_v37 = vld [vmem:[#allocation8 + $0xba8] sm:$0xff]  ;;  %v267_v40 = vrot.slane %v9347_v14, %v9407_v22  ;;  %v7697_v42 = vcombine.low %v1001_v16, %v1005_v19  ;;  %v1045_v16 = vld [vmem:[#allocation8 + $0xca0] sm:$0xff] }
 0x238   :  { %v7708_v45 = vcombine.high %v1010_v35, %v1014_v37  ;;  %v7707_v14 = vcombine.low %v1010_v35, %v1014_v37  ;;  %v1042_v19 = vld [vmem:[#allocation8 + $0xc88] sm:$0xff] }
 0x239   :  { %v605_v52 = vadd.f32 %v9381_v31, %v267_v40  ;;  %v1054_v35 = vld [vmem:[#allocation8 + $0xce8] sm:$0xff]  ;;  %v7739_v40 = vcombine.low %v1042_v19, %v1046_v20 }
 0x23a   :  { %3854 = vmatpush1.bf16.msra.mxu0 %v7657_v47  ;;  %4018 = vmatpush1.bf16.msra.mxu1 %v7659_v48  ;;  %v562_v47 = vadd.f32 %v9375_v63, %v255_v32  ;;  %v1021_v48 = vld [vmem:[#allocation8 + $0xbe0] sm:$0xff] }
 0x23b   :  { %3855 = vmatprep.subr.bf16.mxu0 %v7666_v50  ;;  %4019 = vmatprep.subr.bf16.mxu1 %v7668_v51  ;;  %v1018_v50 = vld [vmem:[#allocation8 + $0xbc8] sm:$0xff]  ;;  %v7714_v54 = vcombine.high %v1017_v46, %v1021_v48  ;;  %v624_v63 = vmul.f32 0.2, %v605_v52  ;;  %v7713_v61 = vcombine.low %v1017_v46, %v1021_v48  ;;  %vm616_vm8 = vcmp.gt.f32.partialorder %v605_v52, 0.0  ;;  %v1053_v32 = vld [vmem:[#allocation8 + $0xce0] sm:$0xff] }
 0x23c   :  { %v1022_v51 = vld [vmem:[#allocation8 + $0xbe8] sm:$0xff]  ;;  %vm613_vm7 = vcmp.gt.f32.partialorder %v562_v47, 0.0  ;;  %v7745_v48 = vcombine.low %v1049_v30, %v1053_v32 }
 0x23d   :  { %v7716_v55 = vcombine.high %v1018_v50, %v1022_v51  ;;  %v7715_v62 = vcombine.low %v1018_v50, %v1022_v51  ;;  %v632_v7 = vsel %vm616_vm8, %v605_v52, %v624_v63  ;;  %v1058_v46 = vld [vmem:[#allocation8 + $0xd08] sm:$0xff]  ;;  %v7747_v50 = vcombine.low %v1050_v33, %v1054_v35  ;;  %v1077_v63 = vld [vmem:[#allocation8 + $0xda0] sm:$0xff] }
 0x23e   :  { %3856 = vmatpush1.bf16.msra.mxu0 %v7665_v56  ;;  %4020 = vmatpush1.bf16.msra.mxu1 %v7667_v57  ;;  %v1025_v56 = vld [vmem:[#allocation8 + $0xc00] sm:$0xff]  ;;  %v621_v57 = vmul.f32 0.2, %v562_v47  ;;  %v9417_v21 = vpack.c.bf16 %v632_v7, %v632_v7  ;;  %v1086_v7 = vld [vmem:[#allocation8 + $0xde8] sm:$0xff] }
 0x23f   :  { %3857 = vmatprep.subr.bf16.mxu0 %v7674_v58  ;;  %4021 = vmatprep.subr.bf16.mxu1 %v7676_v59  ;;  %v1029_v58 = vld [vmem:[#allocation8 + $0xc20] sm:$0xff]  ;;  %v1026_v59 = vld [vmem:[#allocation8 + $0xc08] sm:$0xff] }
 0x240   :  { %v7722_v31 = vcombine.high %v1025_v56, %v1029_v58  ;;  %v7724_v1 = vcombine.high %v1026_v59, %v1030_v60  ;;  %v7721_v8 = vcombine.low %v1025_v56, %v1029_v58  ;;  %v7723_v27 = vcombine.low %v1026_v59, %v1030_v60  ;;  %v1073_v60 = vld [vmem:[#allocation8 + $0xd80] sm:$0xff] }
 0x242   :  { %3858 = vmatpush1.bf16.msra.mxu0 %v7673_v2  ;;  %4022 = vmatpush1.bf16.msra.mxu1 %v7675_v3  ;;  %v1033_v2 = vld [vmem:[#allocation8 + $0xc40] sm:$0xff]  ;;  %v629_v3 = vsel %vm613_vm7, %v562_v47, %v621_v57  ;;  %v1062_v47 = vld [vmem:[#allocation8 + $0xd28] sm:$0xff] }
 0x243   :  { %3859 = vmatprep.subr.bf16.mxu0 %v7682_v5  ;;  %4023 = vmatprep.subr.bf16.mxu1 %v7684_v6  ;;  %v1037_v5 = vld [vmem:[#allocation8 + $0xc60] sm:$0xff]  ;;  %v1034_v6 = vld [vmem:[#allocation8 + $0xc48] sm:$0xff]  ;;  %v7756_v52 = vcombine.high %v1058_v46, %v1062_v47  ;;  %v7755_v57 = vcombine.low %v1058_v46, %v1062_v47 }
 0x244   :  { %v1106_v46 = vld [vmem:[#allocation8 + $0xe88] sm:$0xff] }
 0x245   :  { %v1110_v47 = vld [vmem:[#allocation8 + $0xea8] sm:$0xff] }
 0x246   :  { %3860 = vmatpush1.bf16.msra.mxu0 %v7681_v9  ;;  %4024 = vmatpush1.bf16.msra.mxu1 %v7683_v10  ;;  %v9415_v9 = vpack.c.bf16 %v629_v3, %v629_v3  ;;  %v7730_v10 = vcombine.high %v1033_v2, %v1037_v5 }
 0x247   :  { %3861 = vmatprep.subr.bf16.mxu0 %v7690_v4  ;;  %4025 = vmatprep.subr.bf16.mxu1 %v7692_v11  ;;  %v7732_v4 = vcombine.high %v1034_v6, %v1038_v0  ;;  %v1041_v11 = vld [vmem:[#allocation8 + $0xc80] sm:$0xff] }
 0x248   :  { %v7737_v37 = vcombine.low %v1041_v11, %v1045_v16 }
 0x24a   :  { %3862 = vmatpush1.bf16.msra.mxu0 %v7689_v23  ;;  %4026 = vmatpush1.bf16.msra.mxu1 %v7691_v25  ;;  %v7729_v23 = vcombine.low %v1033_v2, %v1037_v5  ;;  %v7731_v25 = vcombine.low %v1034_v6, %v1038_v0  ;;  %v7770_v2 = vcombine.high %v1073_v60, %v1077_v63  ;;  %v1081_v5 = vld [vmem:[#allocation8 + $0xdc0] sm:$0xff]  ;;  %v1082_v0 = vld [vmem:[#allocation8 + $0xdc8] sm:$0xff] }
 0x24b   :  { %3863 = vmatprep.subr.bf16.mxu0 %v7698_v28  ;;  %4027 = vmatprep.subr.bf16.mxu1 %v7700_v29  ;;  %v7738_v28 = vcombine.high %v1041_v11, %v1045_v16  ;;  %v7740_v29 = vcombine.high %v1042_v19, %v1046_v20  ;;  %v1085_v6 = vld [vmem:[#allocation8 + $0xde0] sm:$0xff]  ;;  %v1090_v19 = vld [vmem:[#allocation8 + $0xe08] sm:$0xff] }
 0x24c   :  { %v1089_v11 = vld [vmem:[#allocation8 + $0xe00] sm:$0xff]  ;;  %v1094_v20 = vld [vmem:[#allocation8 + $0xe28] sm:$0xff] }
 0x24d   :  { %v1093_v16 = vld [vmem:[#allocation8 + $0xe20] sm:$0xff] }
 0x24e   :  { %3864 = vmatpush1.bf16.msra.mxu0 %v7697_v42  ;;  %4028 = vmatpush1.bf16.msra.mxu1 %v7699_v43  ;;  %v7746_v42 = vcombine.high %v1049_v30, %v1053_v32  ;;  %v7748_v43 = vcombine.high %v1050_v33, %v1054_v35  ;;  %v1097_v30 = vld [vmem:[#allocation8 + $0xe40] sm:$0xff]  ;;  %v1098_v33 = vld [vmem:[#allocation8 + $0xe48] sm:$0xff] }
 0x24f   :  { %3865 = vmatprep.subr.bf16.mxu0 %v7706_v44  ;;  %4029 = vmatprep.subr.bf16.mxu1 %v7708_v45  ;;  %v1057_v44 = vld [vmem:[#allocation8 + $0xd00] sm:$0xff]  ;;  %v1102_v35 = vld [vmem:[#allocation8 + $0xe68] sm:$0xff] }
 0x250   :  { %v1061_v45 = vld [vmem:[#allocation8 + $0xd20] sm:$0xff] }
 0x251   :  { %v7754_v51 = vcombine.high %v1057_v44, %v1061_v45  ;;  %v7753_v56 = vcombine.low %v1057_v44, %v1061_v45  ;;  %v1101_v32 = vld [vmem:[#allocation8 + $0xe60] sm:$0xff] }
 0x252   :  { %3866 = vmatpush1.bf16.msra.mxu0 %v7705_v53  ;;  %4030 = vmatpush1.bf16.msra.mxu1 %v7707_v14  ;;  %v1065_v53 = vld [vmem:[#allocation8 + $0xd40] sm:$0xff] }
 0x253   :  { %3867 = vmatprep.subr.bf16.mxu0 %v7714_v54  ;;  %4031 = vmatprep.subr.bf16.mxu1 %v7716_v55  ;;  %v1069_v14 = vld [vmem:[#allocation8 + $0xd60] sm:$0xff]  ;;  %v1066_v54 = vld [vmem:[#allocation8 + $0xd48] sm:$0xff] }
 0x254   :  { %v1070_v55 = vld [vmem:[#allocation8 + $0xd68] sm:$0xff]  ;;  %v7762_v58 = vcombine.high %v1065_v53, %v1069_v14  ;;  %v1105_v44 = vld [vmem:[#allocation8 + $0xe80] sm:$0xff] }
 0x255   :  { %v7764_v59 = vcombine.high %v1066_v54, %v1070_v55  ;;  %v1109_v45 = vld [vmem:[#allocation8 + $0xea0] sm:$0xff] }
 0x256   :  { %3868 = vmatpush1.bf16.msra.mxu0 %v7713_v61  ;;  %4032 = vmatpush1.bf16.msra.mxu1 %v7715_v62  ;;  %v1074_v61 = vld [vmem:[#allocation8 + $0xd88] sm:$0xff] }
 0x257   :  { %3878 = vmatprep.subr.bf16.mxu0 %v7722_v31  ;;  %4042 = vmatprep.subr.bf16.mxu1 %v7724_v1  ;;  %v1078_v62 = vld [vmem:[#allocation8 + $0xda8] sm:$0xff]  ;;  %v7761_v31 = vcombine.low %v1065_v53, %v1069_v14  ;;  %v7763_v1 = vcombine.low %v1066_v54, %v1070_v55  ;;  %v1113_v53 = vld [vmem:[#allocation8 + $0xec0] sm:$0xff] }
 0x258   :  { %v7772_v3 = vcombine.high %v1074_v61, %v1078_v62  ;;  %v1117_v14 = vld [vmem:[#allocation8 + $0xee0] sm:$0xff]  ;;  %v1114_v54 = vld [vmem:[#allocation8 + $0xec8] sm:$0xff] }
 0x259   :  { %3870 = vmatmul.mubr.bf16.vlgmr.msra.gmra.mrb[8].mxu0 %v9415_v9  ;;  %4034 = vmatmul.mubr.bf16.vlgmr.msra.gmra.mrb[8].mxu1 %v9415_v9  ;;  %v1118_v55 = vld [vmem:[#allocation8 + $0xee8] sm:$0xff] }
 0x25a   :  { %3879 = vmatpush1.bf16.msra.mxu0 %v7721_v8  ;;  %4043 = vmatpush1.bf16.msra.mxu1 %v7723_v27  ;;  %v7769_v8 = vcombine.low %v1073_v60, %v1077_v63  ;;  %v7771_v27 = vcombine.low %v1074_v61, %v1078_v62  ;;  %v1121_v60 = vld [vmem:[#allocation8 + $0xf00] sm:$0xff]  ;;  %v1122_v61 = vld [vmem:[#allocation8 + $0xf08] sm:$0xff] }
 0x25b   :  { %3880 = vmatprep.subr.bf16.mxu0 %v7730_v10  ;;  %4044 = vmatprep.subr.bf16.mxu1 %v7732_v4  ;;  %v7778_v10 = vcombine.high %v1081_v5, %v1085_v6  ;;  %v7780_v4 = vcombine.high %v1082_v0, %v1086_v7  ;;  %v1125_v63 = vld [vmem:[#allocation8 + $0xf20] sm:$0xff]  ;;  %v1126_v62 = vld [vmem:[#allocation8 + $0xf28] sm:$0xff] }
 0x25c   :  { %3910 = vmatprep.mubr.bf16.mxu0 %v9417_v21  ;;  %4074 = vmatprep.mubr.bf16.mxu1 %v9417_v21 }
 0x25e   :  { %3881 = vmatpush1.bf16.msra.mxu0 %v7729_v23  ;;  %4045 = vmatpush1.bf16.msra.mxu1 %v7731_v25  ;;  %v7777_v23 = vcombine.low %v1081_v5, %v1085_v6  ;;  %v7779_v25 = vcombine.low %v1082_v0, %v1086_v7  ;;  %v1129_v5 = vld [vmem:[#allocation8 + $0xf40] sm:$0xff]  ;;  %v9424_v6 = vsub.s32 6, %v9342_v12  ;;  %v1130_v7 = vld [vmem:[#allocation8 + $0xf48] sm:$0xff] }
 0x25f   :  { %3882 = vmatprep.subr.bf16.mxu0 %v7738_v28  ;;  %4046 = vmatprep.subr.bf16.mxu1 %v7740_v29  ;;  %v7786_v28 = vcombine.high %v1089_v11, %v1093_v16  ;;  %v7788_v29 = vcombine.high %v1090_v19, %v1094_v20  ;;  %v1133_v0 = vld [vmem:[#allocation8 + $0xf60] sm:$0xff] }
 0x262   :  { %3883 = vmatpush1.bf16.msra.mxu0 %v7737_v37  ;;  %4047 = vmatpush1.bf16.msra.mxu1 %v7739_v40  ;;  %v7785_v37 = vcombine.low %v1089_v11, %v1093_v16  ;;  %v7787_v40 = vcombine.low %v1090_v19, %v1094_v20  ;;  %v1137_v16 = vld [vmem:[#allocation8 + $0xf80] sm:$0xff]  ;;  %v8740_v19 = vld [vmem:[#allocation7] sm:$0xff] }
 0x263   :  { %3884 = vmatprep.subr.bf16.mxu0 %v7746_v42  ;;  %4048 = vmatprep.subr.bf16.mxu1 %v7748_v43  ;;  %v7794_v42 = vcombine.high %v1097_v30, %v1101_v32  ;;  %v7796_v43 = vcombine.high %v1098_v33, %v1102_v35  ;;  %v263_v20 = vrot.slane %v8740_v19, %v9424_v6  ;;  %v672_v19 = vld [vmem:[#allocation8 + $0xf8] sm:$0xff] }
 0x266   :  { %3885 = vmatpush1.bf16.msra.mxu0 %v7745_v48  ;;  %4049 = vmatpush1.bf16.msra.mxu1 %v7747_v50  ;;  %v7793_v48 = vcombine.low %v1097_v30, %v1101_v32  ;;  %v7795_v50 = vcombine.low %v1098_v33, %v1102_v35  ;;  %v1145_v35 = vld [vmem:[#allocation8 + $0xfc0] sm:$0xff] }
 0x267   :  { %3886 = vmatprep.subr.bf16.mxu0 %v7754_v51  ;;  %4050 = vmatprep.subr.bf16.mxu1 %v7756_v52  ;;  %v7802_v51 = vcombine.high %v1105_v44, %v1109_v45  ;;  %v7804_v52 = vcombine.high %v1106_v46, %v1110_v47 }
 0x26a   :  { %3887 = vmatpush1.bf16.msra.mxu0 %v7753_v56  ;;  %4051 = vmatpush1.bf16.msra.mxu1 %v7755_v57  ;;  %v7801_v56 = vcombine.low %v1105_v44, %v1109_v45  ;;  %v7803_v57 = vcombine.low %v1106_v46, %v1110_v47 }
 0x26b   :  { %3888 = vmatprep.subr.bf16.mxu0 %v7762_v58  ;;  %4052 = vmatprep.subr.bf16.mxu1 %v7764_v59  ;;  %v7810_v58 = vcombine.high %v1113_v53, %v1117_v14  ;;  %v7812_v59 = vcombine.high %v1114_v54, %v1118_v55 }
 0x26e   :  { %3889 = vmatpush1.bf16.msra.mxu0 %v7761_v31  ;;  %4053 = vmatpush1.bf16.msra.mxu1 %v7763_v1  ;;  %v7809_v31 = vcombine.low %v1113_v53, %v1117_v14  ;;  %v7811_v1 = vcombine.low %v1114_v54, %v1118_v55  ;;  %v648_v53 = vld [vmem:[#allocation8 + $0x38] sm:$0xff] }
 0x26f   :  { %3890 = vmatprep.subr.bf16.mxu0 %v7770_v2  ;;  %4054 = vmatprep.subr.bf16.mxu1 %v7772_v3  ;;  %v7818_v2 = vcombine.high %v1121_v60, %v1125_v63  ;;  %v7820_v3 = vcombine.high %v1122_v61, %v1126_v62 }
 0x272   :  { %3891 = vmatpush1.bf16.msra.mxu0 %v7769_v8  ;;  %4055 = vmatpush1.bf16.msra.mxu1 %v7771_v27  ;;  %v1134_v8 = vld [vmem:[#allocation8 + $0xf68] sm:$0xff]  ;;  %v7817_v27 = vcombine.low %v1121_v60, %v1125_v63  ;;  %v656_v60 = vld [vmem:[#allocation8 + $0x78] sm:$0xff] }
 0x273   :  { %3892 = vmatprep.subr.bf16.mxu0 %v7778_v10  ;;  %4056 = vmatprep.subr.bf16.mxu1 %v7780_v4  ;;  %v7819_v10 = vcombine.low %v1122_v61, %v1126_v62  ;;  %v7826_v4 = vcombine.high %v1129_v5, %v1133_v0  ;;  %v7828_v11 = vcombine.high %v1130_v7, %v1134_v8 }
 0x274   :  { %v7827_v30 = vcombine.low %v1130_v7, %v1134_v8 }
 0x276   :  { %3893 = vmatpush1.bf16.msra.mxu0 %v7777_v23  ;;  %4057 = vmatpush1.bf16.msra.mxu1 %v7779_v25  ;;  %v1141_v23 = vld [vmem:[#allocation8 + $0xfa0] sm:$0xff]  ;;  %v1138_v25 = vld [vmem:[#allocation8 + $0xf88] sm:$0xff] }
 0x277   :  { %3894 = vmatprep.subr.bf16.mxu0 %v7786_v28  ;;  %4058 = vmatprep.subr.bf16.mxu1 %v7788_v29  ;;  %v1142_v28 = vld [vmem:[#allocation8 + $0xfa8] sm:$0xff]  ;;  %v7825_v29 = vcombine.low %v1129_v5, %v1133_v0  ;;  %v7834_v32 = vcombine.high %v1137_v16, %v1141_v23  ;;  %v7833_v44 = vcombine.low %v1137_v16, %v1141_v23  ;;  %v660_v5 = vld [vmem:[#allocation8 + $0x98] sm:$0xff] }
 0x278   :  { %v7836_v33 = vcombine.high %v1138_v25, %v1142_v28  ;;  %v7835_v45 = vcombine.low %v1138_v25, %v1142_v28  ;;  %v664_v0 = vld [vmem:[#allocation8 + $0xb8] sm:$0xff] }
 0x279   :  { %v668_v16 = vld [vmem:[#allocation8 + $0xd8] sm:$0xff]  ;;  %v7359_v23 = vcombine.low %v660_v5, %v664_v0 }
 0x27a   :  { %3895 = vmatpush1.bf16.msra.mxu0 %v7785_v37  ;;  %4059 = vmatpush1.bf16.msra.mxu1 %v7787_v40  ;;  %v603_v37 = vadd.f32 %v9379_v24, %v263_v20  ;;  %v1149_v40 = vld [vmem:[#allocation8 + $0xfe0] sm:$0xff]  ;;  %v7368_v28 = vcombine.high %v668_v16, %v672_v19 }
 0x27b   :  { %3896 = vmatprep.subr.bf16.mxu0 %v7794_v42  ;;  %4060 = vmatprep.subr.bf16.mxu1 %v7796_v43  ;;  %v1146_v42 = vld [vmem:[#allocation8 + $0xfc8] sm:$0xff]  ;;  %v7842_v46 = vcombine.high %v1145_v35, %v1149_v40  ;;  %v7841_v24 = vcombine.low %v1145_v35, %v1149_v40  ;;  %v7367_v35 = vcombine.low %v668_v16, %v672_v19  ;;  %v716_v16 = vld [vmem:[#allocation8 + $0x258] sm:$0xff] }
 0x27c   :  { %v1150_v43 = vld [vmem:[#allocation8 + $0xfe8] sm:$0xff]  ;;  %vm615_vm9 = vcmp.gt.f32.partialorder %v603_v37, 0.0  ;;  %v720_v19 = vld [vmem:[#allocation8 + $0x278] sm:$0xff] }
 0x27d   :  { %v7844_v47 = vcombine.high %v1146_v42, %v1150_v43  ;;  %v7843_v14 = vcombine.low %v1146_v42, %v1150_v43  ;;  %v683_v42 = vld [vmem:[#allocation8 + $0x150] sm:$0xff] }
 0x27e   :  { %3897 = vmatpush1.bf16.msra.mxu0 %v7793_v48  ;;  %4061 = vmatpush1.bf16.msra.mxu1 %v7795_v50  ;;  %v643_v48 = vld [vmem:[#allocation8 + $0x10] sm:$0xff]  ;;  %v623_v50 = vmul.f32 0.2, %v603_v37 }
 0x27f   :  { %3898 = vmatprep.subr.bf16.mxu0 %v7802_v51  ;;  %4062 = vmatprep.subr.bf16.mxu1 %v7804_v52  ;;  %v647_v51 = vld [vmem:[#allocation8 + $0x30] sm:$0xff]  ;;  %v644_v52 = vld [vmem:[#allocation8 + $0x18] sm:$0xff] }
 0x280   :  { %v7342_v54 = vcombine.high %v643_v48, %v647_v51  ;;  %v7344_v55 = vcombine.high %v644_v52, %v648_v53  ;;  %v7341_v63 = vcombine.low %v643_v48, %v647_v51  ;;  %v7343_v62 = vcombine.low %v644_v52, %v648_v53  ;;  %v687_v43 = vld [vmem:[#allocation8 + $0x170] sm:$0xff]  ;;  %v692_v53 = vld [vmem:[#allocation8 + $0x198] sm:$0xff] }
 0x281   :  { %v7382_v48 = vcombine.high %v683_v42, %v687_v43  ;;  %v691_v51 = vld [vmem:[#allocation8 + $0x190] sm:$0xff] }
 0x282   :  { %3899 = vmatpush1.bf16.msra.mxu0 %v7801_v56  ;;  %4063 = vmatpush1.bf16.msra.mxu1 %v7803_v57  ;;  %v631_v56 = vsel %vm615_vm9, %v603_v37, %v623_v50  ;;  %v651_v57 = vld [vmem:[#allocation8 + $0x50] sm:$0xff] }
 0x283   :  { %3900 = vmatprep.subr.bf16.mxu0 %v7810_v58  ;;  %4064 = vmatprep.subr.bf16.mxu1 %v7812_v59  ;;  %v655_v58 = vld [vmem:[#allocation8 + $0x70] sm:$0xff]  ;;  %v652_v59 = vld [vmem:[#allocation8 + $0x58] sm:$0xff]  ;;  %v9428_v61 = vpack.c.bf16 %v631_v56, %v631_v56 }
 0x284   :  { %v7349_v7 = vcombine.low %v651_v57, %v655_v58  ;;  %v7351_v8 = vcombine.low %v652_v59, %v656_v60  ;;  %v695_v52 = vld [vmem:[#allocation8 + $0x1b0] sm:$0xff] }
 0x286   :  { %3901 = vmatpush1.bf16.msra.mxu0 %v7809_v31  ;;  %4065 = vmatpush1.bf16.msra.mxu1 %v7811_v1  ;;  %v7350_v31 = vcombine.high %v651_v57, %v655_v58  ;;  %v7352_v1 = vcombine.high %v652_v59, %v656_v60  ;;  %v699_v57 = vld [vmem:[#allocation8 + $0x1d0] sm:$0xff]  ;;  %v700_v59 = vld [vmem:[#allocation8 + $0x1d8] sm:$0xff] }
 0x287   :  { %3902 = vmatprep.subr.bf16.mxu0 %v7818_v2  ;;  %4066 = vmatprep.subr.bf16.mxu1 %v7820_v3  ;;  %v659_v2 = vld [vmem:[#allocation8 + $0x90] sm:$0xff]  ;;  %v704_v60 = vld [vmem:[#allocation8 + $0x1f8] sm:$0xff] }
 0x288   :  { %v663_v3 = vld [vmem:[#allocation8 + $0xb0] sm:$0xff] }
 0x289   :  { %v7357_v20 = vcombine.low %v659_v2, %v663_v3  ;;  %v703_v58 = vld [vmem:[#allocation8 + $0x1f0] sm:$0xff] }
 0x28a   :  { %3903 = vmatpush1.bf16.msra.mxu0 %v7817_v27  ;;  %4067 = vmatpush1.bf16.msra.mxu1 %v7819_v10  ;;  %v7358_v27 = vcombine.high %v659_v2, %v663_v3  ;;  %v7360_v10 = vcombine.high %v660_v5, %v664_v0  ;;  %v707_v2 = vld [vmem:[#allocation8 + $0x210] sm:$0xff]  ;;  %v708_v5 = vld [vmem:[#allocation8 + $0x218] sm:$0xff] }
 0x28b   :  { %3904 = vmatprep.subr.bf16.mxu0 %v7826_v4  ;;  %4068 = vmatprep.subr.bf16.mxu1 %v7828_v11  ;;  %v667_v4 = vld [vmem:[#allocation8 + $0xd0] sm:$0xff]  ;;  %v712_v0 = vld [vmem:[#allocation8 + $0x238] sm:$0xff] }
 0x28c   :  { %v671_v11 = vld [vmem:[#allocation8 + $0xf0] sm:$0xff] }
 0x28d   :  { %v7366_v25 = vcombine.high %v667_v4, %v671_v11  ;;  %v711_v3 = vld [vmem:[#allocation8 + $0x230] sm:$0xff] }
 0x28e   :  { %3905 = vmatpush1.bf16.msra.mxu0 %v7825_v29  ;;  %4069 = vmatpush1.bf16.msra.mxu1 %v7827_v30  ;;  %v675_v29 = vld [vmem:[#allocation8 + $0x110] sm:$0xff] }
 0x28f   :  { %3906 = vmatprep.subr.bf16.mxu0 %v7834_v32  ;;  %4070 = vmatprep.subr.bf16.mxu1 %v7836_v33  ;;  %v679_v30 = vld [vmem:[#allocation8 + $0x130] sm:$0xff]  ;;  %v680_v32 = vld [vmem:[#allocation8 + $0x138] sm:$0xff]  ;;  %v7365_v33 = vcombine.low %v667_v4, %v671_v11 }
 0x290   :  { %v7374_v37 = vcombine.high %v675_v29, %v679_v30  ;;  %v715_v4 = vld [vmem:[#allocation8 + $0x250] sm:$0xff] }
 0x291   :  { %v719_v11 = vld [vmem:[#allocation8 + $0x270] sm:$0xff] }
 0x292   :  { %3907 = vmatpush1.bf16.msra.mxu0 %v7833_v44  ;;  %4071 = vmatpush1.bf16.msra.mxu1 %v7835_v45  ;;  %v684_v44 = vld [vmem:[#allocation8 + $0x158] sm:$0xff] }
 0x293   :  { %3908 = vmatprep.subr.bf16.mxu0 %v7842_v46  ;;  %4072 = vmatprep.subr.bf16.mxu1 %v7844_v47  ;;  %v688_v45 = vld [vmem:[#allocation8 + $0x178] sm:$0xff]  ;;  %v7373_v46 = vcombine.low %v675_v29, %v679_v30  ;;  %v723_v29 = vld [vmem:[#allocation8 + $0x290] sm:$0xff] }
 0x294   :  { %v7384_v50 = vcombine.high %v684_v44, %v688_v45  ;;  %v727_v30 = vld [vmem:[#allocation8 + $0x2b0] sm:$0xff] }
 0x296   :  { %3909 = vmatpush1.bf16.msra.mxu0 %v7841_v24  ;;  %4073 = vmatpush1.bf16.msra.mxu1 %v7843_v14  ;;  %v696_v24 = vld [vmem:[#allocation8 + $0x1b8] sm:$0xff]  ;;  %v7381_v14 = vcombine.low %v683_v42, %v687_v43  ;;  %v731_v42 = vld [vmem:[#allocation8 + $0x2d0] sm:$0xff] }
 0x297   :  { %4083 = vmatprep.subr.bf16.mxu0 %v7342_v54  ;;  %4247 = vmatprep.subr.bf16.mxu1 %v7344_v55  ;;  %v7383_v54 = vcombine.low %v684_v44, %v688_v45  ;;  %v7390_v55 = vcombine.high %v691_v51, %v695_v52  ;;  %v7392_v56 = vcombine.high %v692_v53, %v696_v24  ;;  %v735_v43 = vld [vmem:[#allocation8 + $0x2f0] sm:$0xff]  ;;  %v732_v44 = vld [vmem:[#allocation8 + $0x2d8] sm:$0xff] }
 0x298   :  { %v736_v45 = vld [vmem:[#allocation8 + $0x2f8] sm:$0xff] }
 0x299   :  { %3911 = vmatmul.mubr.bf16.vlgmr.msra.gmra.mrb[8].mxu0 %v9428_v61  ;;  %4075 = vmatmul.mubr.bf16.vlgmr.msra.gmra.mrb[8].mxu1 %v9428_v61 }
 0x29a   :  { %4084 = vmatpush1.bf16.msra.mxu0 %v7341_v63  ;;  %4115 = vmatprep.mubr.bf16.mxu0 %v9363_v39  ;;  %v7389_v63 = vcombine.low %v691_v51, %v695_v52  ;;  %v739_v51 = vld [vmem:[#allocation8 + $0x310] sm:$0xff] }
 0x29b   :  { %4248 = vmatpush1.bf16.msra.mxu1 %v7343_v62  ;;  %4279 = vmatprep.mubr.bf16.mxu1 %v9363_v39  ;;  %v676_v39 = vld [vmem:[#allocation8 + $0x118] sm:$0xff]  ;;  %v7391_v62 = vcombine.low %v692_v53, %v696_v24  ;;  %v743_v52 = vld [vmem:[#allocation8 + $0x330] sm:$0xff] }
 0x29c   :  { %4085 = vmatprep.subr.bf16.mxu0 %v7350_v31  ;;  %4249 = vmatprep.subr.bf16.mxu1 %v7352_v1  ;;  %v7376_v40 = vcombine.high %v676_v39, %v680_v32  ;;  %v7375_v47 = vcombine.low %v676_v39, %v680_v32  ;;  %v7398_v31 = vcombine.high %v699_v57, %v703_v58  ;;  %v724_v39 = vld [vmem:[#allocation8 + $0x298] sm:$0xff] }
 0x29d   :  { %v7400_v1 = vcombine.high %v700_v59, %v704_v60  ;;  %v728_v32 = vld [vmem:[#allocation8 + $0x2b8] sm:$0xff] }
 0x29e   :  { %4086 = vmatpush1.bf16.msra.mxu0 %v7349_v7  ;;  %v7397_v7 = vcombine.low %v699_v57, %v703_v58  ;;  %v740_v53 = vld [vmem:[#allocation8 + $0x318] sm:$0xff]  ;;  %v747_v57 = vld [vmem:[#allocation8 + $0x350] sm:$0xff] }
 0x29f   :  { %4250 = vmatpush1.bf16.msra.mxu1 %v7351_v8  ;;  %4087 = vmatprep.subr.bf16.mxu0 %v7358_v27  ;;  %v7399_v8 = vcombine.low %v700_v59, %v704_v60  ;;  %v7406_v27 = vcombine.high %v707_v2, %v711_v3  ;;  %v744_v24 = vld [vmem:[#allocation8 + $0x338] sm:$0xff]  ;;  %v751_v58 = vld [vmem:[#allocation8 + $0x370] sm:$0xff] }
 0x2a0   :  { %4251 = vmatprep.subr.bf16.mxu1 %v7360_v10  ;;  %v7408_v10 = vcombine.high %v708_v5, %v712_v0  ;;  %v748_v59 = vld [vmem:[#allocation8 + $0x358] sm:$0xff] }
 0x2a1   :  { %v752_v60 = vld [vmem:[#allocation8 + $0x378] sm:$0xff] }
 0x2a2   :  { %4088 = vmatpush1.bf16.msra.mxu0 %v7357_v20  ;;  %v7405_v20 = vcombine.low %v707_v2, %v711_v3  ;;  %v755_v2 = vld [vmem:[#allocation8 + $0x390] sm:$0xff] }
 0x2a3   :  { %4252 = vmatpush1.bf16.msra.mxu1 %v7359_v23  ;;  %4089 = vmatprep.subr.bf16.mxu0 %v7366_v25  ;;  %v7407_v23 = vcombine.low %v708_v5, %v712_v0  ;;  %v7414_v25 = vcombine.high %v715_v4, %v719_v11  ;;  %v759_v3 = vld [vmem:[#allocation8 + $0x3b0] sm:$0xff]  ;;  %v756_v5 = vld [vmem:[#allocation8 + $0x398] sm:$0xff] }
 0x2a4   :  { %4253 = vmatprep.subr.bf16.mxu1 %v7368_v28  ;;  %v7416_v28 = vcombine.high %v716_v16, %v720_v19  ;;  %v760_v0 = vld [vmem:[#allocation8 + $0x3b8] sm:$0xff] }
 0x2a6   :  { %4090 = vmatpush1.bf16.msra.mxu0 %v7365_v33  ;;  %v7413_v33 = vcombine.low %v715_v4, %v719_v11  ;;  %v763_v4 = vld [vmem:[#allocation8 + $0x3d0] sm:$0xff] }
 0x2a7   :  { %4254 = vmatpush1.bf16.msra.mxu1 %v7367_v35  ;;  %4091 = vmatprep.subr.bf16.mxu0 %v7374_v37  ;;  %v7415_v35 = vcombine.low %v716_v16, %v720_v19  ;;  %v7422_v37 = vcombine.high %v723_v29, %v727_v30  ;;  %v767_v11 = vld [vmem:[#allocation8 + $0x3f0] sm:$0xff]  ;;  %v764_v16 = vld [vmem:[#allocation8 + $0x3d8] sm:$0xff] }
 0x2a8   :  { %4255 = vmatprep.subr.bf16.mxu1 %v7376_v40  ;;  %v7424_v40 = vcombine.high %v724_v39, %v728_v32  ;;  %v768_v19 = vld [vmem:[#allocation8 + $0x3f8] sm:$0xff] }
 0x2aa   :  { %4092 = vmatpush1.bf16.msra.mxu0 %v7373_v46  ;;  %v7421_v46 = vcombine.low %v723_v29, %v727_v30  ;;  %v771_v29 = vld [vmem:[#allocation8 + $0x410] sm:$0xff] }
 0x2ab   :  { %4256 = vmatpush1.bf16.msra.mxu1 %v7375_v47  ;;  %4093 = vmatprep.subr.bf16.mxu0 %v7382_v48  ;;  %v7423_v47 = vcombine.low %v724_v39, %v728_v32  ;;  %v7430_v48 = vcombine.high %v731_v42, %v735_v43  ;;  %v775_v30 = vld [vmem:[#allocation8 + $0x430] sm:$0xff]  ;;  %v772_v39 = vld [vmem:[#allocation8 + $0x418] sm:$0xff] }
 0x2ac   :  { %4257 = vmatprep.subr.bf16.mxu1 %v7384_v50  ;;  %v7432_v50 = vcombine.high %v732_v44, %v736_v45  ;;  %v776_v32 = vld [vmem:[#allocation8 + $0x438] sm:$0xff] }
 0x2ae   :  { %4094 = vmatpush1.bf16.msra.mxu0 %v7381_v14  ;;  %v7429_v14 = vcombine.low %v731_v42, %v735_v43  ;;  %v779_v42 = vld [vmem:[#allocation8 + $0x450] sm:$0xff] }
 0x2af   :  { %4258 = vmatpush1.bf16.msra.mxu1 %v7383_v54  ;;  %4095 = vmatprep.subr.bf16.mxu0 %v7390_v55  ;;  %v7431_v54 = vcombine.low %v732_v44, %v736_v45  ;;  %v7438_v55 = vcombine.high %v739_v51, %v743_v52  ;;  %v783_v43 = vld [vmem:[#allocation8 + $0x470] sm:$0xff]  ;;  %v7469_v44 = vcombine.low %v771_v29, %v775_v30  ;;  %v780_v45 = vld [vmem:[#allocation8 + $0x458] sm:$0xff] }
 0x2b0   :  { %4259 = vmatprep.subr.bf16.mxu1 %v7392_v56  ;;  %v7440_v56 = vcombine.high %v740_v53, %v744_v24 }
 0x2b2   :  { %4096 = vmatpush1.bf16.msra.mxu0 %v7389_v63  ;;  %v7437_v63 = vcombine.low %v739_v51, %v743_v52  ;;  %v791_v51 = vld [vmem:[#allocation8 + $0x4b0] sm:$0xff] }
 0x2b3   :  { %4260 = vmatpush1.bf16.msra.mxu1 %v7391_v62  ;;  %4097 = vmatprep.subr.bf16.mxu0 %v7398_v31  ;;  %v7439_v62 = vcombine.low %v740_v53, %v744_v24  ;;  %v7446_v31 = vcombine.high %v747_v57, %v751_v58  ;;  %v788_v53 = vld [vmem:[#allocation8 + $0x498] sm:$0xff] }
 0x2b4   :  { %4261 = vmatprep.subr.bf16.mxu1 %v7400_v1  ;;  %v7448_v1 = vcombine.high %v748_v59, %v752_v60  ;;  %v792_v24 = vld [vmem:[#allocation8 + $0x4b8] sm:$0xff] }
 0x2b6   :  { %4098 = vmatpush1.bf16.msra.mxu0 %v7397_v7  ;;  %v7445_v7 = vcombine.low %v747_v57, %v751_v58  ;;  %v795_v57 = vld [vmem:[#allocation8 + $0x4d0] sm:$0xff] }
 0x2b7   :  { %4262 = vmatpush1.bf16.msra.mxu1 %v7399_v8  ;;  %4099 = vmatprep.subr.bf16.mxu0 %v7406_v27  ;;  %v7447_v8 = vcombine.low %v748_v59, %v752_v60  ;;  %v7454_v27 = vcombine.high %v755_v2, %v759_v3  ;;  %v799_v58 = vld [vmem:[#allocation8 + $0x4f0] sm:$0xff]  ;;  %v796_v59 = vld [vmem:[#allocation8 + $0x4d8] sm:$0xff] }
 0x2b8   :  { %4263 = vmatprep.subr.bf16.mxu1 %v7408_v10  ;;  %v7456_v10 = vcombine.high %v756_v5, %v760_v0  ;;  %v800_v60 = vld [vmem:[#allocation8 + $0x4f8] sm:$0xff] }
 0x2ba   :  { %4100 = vmatpush1.bf16.msra.mxu0 %v7405_v20  ;;  %v7453_v20 = vcombine.low %v755_v2, %v759_v3  ;;  %v807_v2 = vld [vmem:[#allocation8 + $0x530] sm:$0xff]  ;;  %v804_v3 = vld [vmem:[#allocation8 + $0x518] sm:$0xff] }
 0x2bb   :  { %4264 = vmatpush1.bf16.msra.mxu1 %v7407_v23  ;;  %4101 = vmatprep.subr.bf16.mxu0 %v7414_v25  ;;  %v7455_v23 = vcombine.low %v756_v5, %v760_v0  ;;  %v7462_v25 = vcombine.high %v763_v4, %v767_v11  ;;  %v808_v5 = vld [vmem:[#allocation8 + $0x538] sm:$0xff]  ;;  %v7495_v0 = vcombine.low %v796_v59, %v800_v60 }
 0x2bc   :  { %4265 = vmatprep.subr.bf16.mxu1 %v7416_v28  ;;  %v7464_v28 = vcombine.high %v764_v16, %v768_v19 }
 0x2be   :  { %4102 = vmatpush1.bf16.msra.mxu0 %v7413_v33  ;;  %v7461_v33 = vcombine.low %v763_v4, %v767_v11  ;;  %v812_v4 = vld [vmem:[#allocation8 + $0x558] sm:$0xff] }
 0x2bf   :  { %4266 = vmatpush1.bf16.msra.mxu1 %v7415_v35  ;;  %4103 = vmatprep.subr.bf16.mxu0 %v7422_v37  ;;  %v7463_v35 = vcombine.low %v764_v16, %v768_v19  ;;  %v7470_v37 = vcombine.high %v771_v29, %v775_v30  ;;  %v816_v11 = vld [vmem:[#allocation8 + $0x578] sm:$0xff]  ;;  %v7503_v19 = vcombine.low %v804_v3, %v808_v5 }
 0x2c0   :  { %4267 = vmatprep.subr.bf16.mxu1 %v7424_v40  ;;  %v7472_v40 = vcombine.high %v772_v39, %v776_v32  ;;  %v820_v29 = vld [vmem:[#allocation8 + $0x598] sm:$0xff] }
 0x2c1   :  { %v824_v30 = vld [vmem:[#allocation8 + $0x5b8] sm:$0xff] }
 0x2c2   :  { %4104 = vmatpush1.bf16.msra.mxu0 %v7421_v46  ;;  %v784_v46 = vld [vmem:[#allocation8 + $0x478] sm:$0xff] }
 0x2c3   :  { %4268 = vmatpush1.bf16.msra.mxu1 %v7423_v47  ;;  %4105 = vmatprep.subr.bf16.mxu0 %v7430_v48  ;;  %v7471_v47 = vcombine.low %v772_v39, %v776_v32  ;;  %v7478_v48 = vcombine.high %v779_v42, %v783_v43  ;;  %v7480_v52 = vcombine.high %v780_v45, %v784_v46 }
 0x2c4   :  { %4269 = vmatprep.subr.bf16.mxu1 %v7432_v50  ;;  %v787_v50 = vld [vmem:[#allocation8 + $0x490] sm:$0xff]  ;;  %v7511_v32 = vcombine.low %v812_v4, %v816_v11 }
 0x2c6   :  { %4106 = vmatpush1.bf16.msra.mxu0 %v7429_v14  ;;  %v7477_v14 = vcombine.low %v779_v42, %v783_v43  ;;  %v828_v42 = vld [vmem:[#allocation8 + $0x5d8] sm:$0xff] }
 0x2c7   :  { %4270 = vmatpush1.bf16.msra.mxu1 %v7431_v54  ;;  %4107 = vmatprep.subr.bf16.mxu0 %v7438_v55  ;;  %v7479_v54 = vcombine.low %v780_v45, %v784_v46  ;;  %v7486_v55 = vcombine.high %v787_v50, %v791_v51  ;;  %v832_v43 = vld [vmem:[#allocation8 + $0x5f8] sm:$0xff]  ;;  %v7519_v45 = vcombine.low %v820_v29, %v824_v30 }
 0x2c8   :  { %4271 = vmatprep.subr.bf16.mxu1 %v7440_v56  ;;  %v7488_v56 = vcombine.high %v788_v53, %v792_v24 }
 0x2ca   :  { %4108 = vmatpush1.bf16.msra.mxu0 %v7437_v63  ;;  %v7485_v63 = vcombine.low %v787_v50, %v791_v51  ;;  %v839_v50 = vld [vmem:[#allocation8 + $0x630] sm:$0xff]  ;;  %v836_v51 = vld [vmem:[#allocation8 + $0x618] sm:$0xff] }
 0x2cb   :  { %4272 = vmatpush1.bf16.msra.mxu1 %v7439_v62  ;;  %4109 = vmatprep.subr.bf16.mxu0 %v7446_v31  ;;  %v7494_v62 = vcombine.high %v795_v57, %v799_v58  ;;  %v7496_v31 = vcombine.high %v796_v59, %v800_v60 }
 0x2cc   :  { %4273 = vmatprep.subr.bf16.mxu1 %v7448_v1  ;;  %v803_v1 = vld [vmem:[#allocation8 + $0x510] sm:$0xff] }
 0x2cd   :  { %v7501_v16 = vcombine.low %v803_v1, %v807_v2 }
 0x2ce   :  { %4110 = vmatpush1.bf16.msra.mxu0 %v7445_v7  ;;  %v7502_v7 = vcombine.high %v803_v1, %v807_v2  ;;  %v852_v1 = vld [vmem:[#allocation8 + $0x698] sm:$0xff] }
 0x2cf   :  { %4274 = vmatpush1.bf16.msra.mxu1 %v7447_v8  ;;  %4111 = vmatprep.subr.bf16.mxu0 %v7454_v27  ;;  %v7504_v8 = vcombine.high %v804_v3, %v808_v5  ;;  %v811_v27 = vld [vmem:[#allocation8 + $0x550] sm:$0xff]  ;;  %v856_v2 = vld [vmem:[#allocation8 + $0x6b8] sm:$0xff] }
 0x2d0   :  { %4275 = vmatprep.subr.bf16.mxu1 %v7456_v10  ;;  %v815_v10 = vld [vmem:[#allocation8 + $0x570] sm:$0xff] }
 0x2d1   :  { %v7509_v39 = vcombine.low %v811_v27, %v815_v10 }
 0x2d2   :  { %4112 = vmatpush1.bf16.msra.mxu0 %v7453_v20  ;;  %v7510_v20 = vcombine.high %v811_v27, %v815_v10  ;;  %v860_v27 = vld [vmem:[#allocation8 + $0x6d8] sm:$0xff] }
 0x2d3   :  { %4276 = vmatpush1.bf16.msra.mxu1 %v7455_v23  ;;  %4113 = vmatprep.subr.bf16.mxu0 %v7462_v25  ;;  %v7512_v23 = vcombine.high %v812_v4, %v816_v11  ;;  %v819_v25 = vld [vmem:[#allocation8 + $0x590] sm:$0xff]  ;;  %v864_v10 = vld [vmem:[#allocation8 + $0x6f8] sm:$0xff]  ;;  %v7551_v11 = vcombine.low %v852_v1, %v856_v2 }
 0x2d4   :  { %4277 = vmatprep.subr.bf16.mxu1 %v7464_v28  ;;  %v823_v28 = vld [vmem:[#allocation8 + $0x5b0] sm:$0xff] }
 0x2d6   :  { %4114 = vmatpush1.bf16.msra.mxu0 %v7461_v33  ;;  %v7518_v33 = vcombine.high %v819_v25, %v823_v28 }
 0x2d7   :  { %4278 = vmatpush1.bf16.msra.mxu1 %v7463_v35  ;;  %4124 = vmatprep.subr.bf16.mxu0 %v7470_v37  ;;  %v7520_v35 = vcombine.high %v820_v29, %v824_v30  ;;  %v827_v37 = vld [vmem:[#allocation8 + $0x5d0] sm:$0xff]  ;;  %v7559_v30 = vcombine.low %v860_v27, %v864_v10 }
 0x2d8   :  { %4288 = vmatprep.subr.bf16.mxu1 %v7472_v40  ;;  %v831_v40 = vld [vmem:[#allocation8 + $0x5f0] sm:$0xff] }
 0x2d9   :  { %4116 = vmatmul.mubr.bf16.vlgmr.msra.gmra.mrb[12].mxu0 %v9365_v41  ;;  %v7526_v46 = vcombine.high %v827_v37, %v831_v40 }
 0x2da   :  { %4280 = vmatmul.mubr.bf16.vlgmr.msra.gmra.mrb[12].mxu1 %v9365_v41  ;;  %4125 = vmatpush1.bf16.msra.mxu0 %v7469_v44  ;;  %v7487_v41 = vcombine.low %v788_v53, %v792_v24  ;;  %v7517_v44 = vcombine.low %v819_v25, %v823_v28  ;;  %v7525_v53 = vcombine.low %v827_v37, %v831_v40  ;;  %v868_v25 = vld [vmem:[#allocation8 + $0x718] sm:$0xff] }
 0x2db   :  { %4156 = vmatprep.mubr.bf16.mxu0 %v9371_v49  ;;  %4289 = vmatpush1.bf16.msra.mxu1 %v7471_v47  ;;  %v7528_v47 = vcombine.high %v828_v42, %v832_v43  ;;  %v7527_v24 = vcombine.low %v828_v42, %v832_v43  ;;  %v872_v28 = vld [vmem:[#allocation8 + $0x738] sm:$0xff] }
 0x2dc   :  { %4320 = vmatprep.mubr.bf16.mxu1 %v9371_v49  ;;  %4126 = vmatprep.subr.bf16.mxu0 %v7478_v48  ;;  %v7493_v49 = vcombine.low %v795_v57, %v799_v58  ;;  %v835_v48 = vld [vmem:[#allocation8 + $0x610] sm:$0xff]  ;;  %v844_v57 = vld [vmem:[#allocation8 + $0x658] sm:$0xff]  ;;  %v7567_v43 = vcombine.low %v868_v25, %v872_v28 }
 0x2dd   :  { %4290 = vmatprep.subr.bf16.mxu1 %v7480_v52  ;;  %v840_v52 = vld [vmem:[#allocation8 + $0x638] sm:$0xff]  ;;  %v7533_v59 = vcombine.low %v835_v48, %v839_v50 }
 0x2de   :  { %4127 = vmatpush1.bf16.msra.mxu0 %v7477_v14  ;;  %v7534_v14 = vcombine.high %v835_v48, %v839_v50  ;;  %v848_v58 = vld [vmem:[#allocation8 + $0x678] sm:$0xff]  ;;  %v7535_v60 = vcombine.low %v836_v51, %v840_v52 }
 0x2df   :  { %4291 = vmatpush1.bf16.msra.mxu1 %v7479_v54  ;;  %4128 = vmatprep.subr.bf16.mxu0 %v7486_v55  ;;  %v7536_v54 = vcombine.high %v836_v51, %v840_v52  ;;  %v843_v55 = vld [vmem:[#allocation8 + $0x650] sm:$0xff]  ;;  %v7543_v5 = vcombine.low %v844_v57, %v848_v58  ;;  %v876_v37 = vld [vmem:[#allocation8 + $0x758] sm:$0xff] }
 0x2e0   :  { %4292 = vmatprep.subr.bf16.mxu1 %v7488_v56  ;;  %v847_v56 = vld [vmem:[#allocation8 + $0x670] sm:$0xff]  ;;  %v880_v40 = vld [vmem:[#allocation8 + $0x778] sm:$0xff] }
 0x2e1   :  { %v7541_v3 = vcombine.low %v843_v55, %v847_v56  ;;  %v884_v48 = vld [vmem:[#allocation8 + $0x798] sm:$0xff]  ;;  %v7575_v52 = vcombine.low %v876_v37, %v880_v40 }
 0x2e2   :  { %4129 = vmatpush1.bf16.msra.mxu0 %v7485_v63  ;;  %v7542_v63 = vcombine.high %v843_v55, %v847_v56  ;;  %v888_v50 = vld [vmem:[#allocation8 + $0x7b8] sm:$0xff] }
 0x2e3   :  { %4293 = vmatpush1.bf16.msra.mxu1 %v7487_v41  ;;  %4130 = vmatprep.subr.bf16.mxu0 %v7494_v62  ;;  %v7544_v41 = vcombine.high %v844_v57, %v848_v58  ;;  %v851_v62 = vld [vmem:[#allocation8 + $0x690] sm:$0xff]  ;;  %v892_v55 = vld [vmem:[#allocation8 + $0x7d8] sm:$0xff]  ;;  %v7583_v58 = vcombine.low %v884_v48, %v888_v50 }
 0x2e4   :  { %4294 = vmatprep.subr.bf16.mxu1 %v7496_v31  ;;  %v855_v31 = vld [vmem:[#allocation8 + $0x6b0] sm:$0xff]  ;;  %v896_v56 = vld [vmem:[#allocation8 + $0x7f8] sm:$0xff] }
 0x2e5   :  { %v7549_v4 = vcombine.low %v851_v62, %v855_v31 }
 0x2e6   :  { %4131 = vmatpush1.bf16.msra.mxu0 %v7493_v49  ;;  %v7550_v49 = vcombine.high %v851_v62, %v855_v31  ;;  %v900_v62 = vld [vmem:[#allocation8 + $0x818] sm:$0xff] }
 0x2e7   :  { %4295 = vmatpush1.bf16.msra.mxu1 %v7495_v0  ;;  %4132 = vmatprep.subr.bf16.mxu0 %v7502_v7  ;;  %v7552_v0 = vcombine.high %v852_v1, %v856_v2  ;;  %v859_v7 = vld [vmem:[#allocation8 + $0x6d0] sm:$0xff]  ;;  %v904_v31 = vld [vmem:[#allocation8 + $0x838] sm:$0xff]  ;;  %v7591_v2 = vcombine.low %v892_v55, %v896_v56 }
 0x2e8   :  { %4296 = vmatprep.subr.bf16.mxu1 %v7504_v8  ;;  %v863_v8 = vld [vmem:[#allocation8 + $0x6f0] sm:$0xff] }
 0x2e9   :  { %v7557_v29 = vcombine.low %v859_v7, %v863_v8 }
 0x2ea   :  { %4133 = vmatpush1.bf16.msra.mxu0 %v7501_v16  ;;  %v7558_v16 = vcombine.high %v859_v7, %v863_v8  ;;  %v908_v8 = vld [vmem:[#allocation8 + $0x858] sm:$0xff] }
 0x2eb   :  { %4297 = vmatpush1.bf16.msra.mxu1 %v7503_v19  ;;  %4134 = vmatprep.subr.bf16.mxu0 %v7510_v20  ;;  %v7560_v19 = vcombine.high %v860_v27, %v864_v10  ;;  %v867_v20 = vld [vmem:[#allocation8 + $0x710] sm:$0xff]  ;;  %v912_v27 = vld [vmem:[#allocation8 + $0x878] sm:$0xff]  ;;  %v7599_v10 = vcombine.low %v900_v62, %v904_v31 }
 0x2ec   :  { %4298 = vmatprep.subr.bf16.mxu1 %v7512_v23  ;;  %v871_v23 = vld [vmem:[#allocation8 + $0x730] sm:$0xff] }
 0x2ed   :  { %v7565_v42 = vcombine.low %v867_v20, %v871_v23 }
 0x2ee   :  { %4135 = vmatpush1.bf16.msra.mxu0 %v7509_v39  ;;  %v7566_v39 = vcombine.high %v867_v20, %v871_v23  ;;  %v916_v20 = vld [vmem:[#allocation8 + $0x898] sm:$0xff] }
 0x2ef   :  { %4299 = vmatpush1.bf16.msra.mxu1 %v7511_v32  ;;  %4136 = vmatprep.subr.bf16.mxu0 %v7518_v33  ;;  %v7568_v32 = vcombine.high %v868_v25, %v872_v28  ;;  %v875_v33 = vld [vmem:[#allocation8 + $0x750] sm:$0xff]  ;;  %v920_v23 = vld [vmem:[#allocation8 + $0x8b8] sm:$0xff]  ;;  %v7607_v28 = vcombine.low %v908_v8, %v912_v27 }
 0x2f0   :  { %4300 = vmatprep.subr.bf16.mxu1 %v7520_v35  ;;  %v879_v35 = vld [vmem:[#allocation8 + $0x770] sm:$0xff] }
 0x2f1   :  { %v7573_v51 = vcombine.low %v875_v33, %v879_v35 }
 0x2f2   :  { %4137 = vmatpush1.bf16.msra.mxu0 %v7517_v44  ;;  %v7574_v44 = vcombine.high %v875_v33, %v879_v35  ;;  %v924_v33 = vld [vmem:[#allocation8 + $0x8d8] sm:$0xff] }
 0x2f3   :  { %4301 = vmatpush1.bf16.msra.mxu1 %v7519_v45  ;;  %4138 = vmatprep.subr.bf16.mxu0 %v7526_v46  ;;  %v7576_v45 = vcombine.high %v876_v37, %v880_v40  ;;  %v883_v46 = vld [vmem:[#allocation8 + $0x790] sm:$0xff]  ;;  %v928_v35 = vld [vmem:[#allocation8 + $0x8f8] sm:$0xff] }
 0x2f4   :  { %4302 = vmatprep.subr.bf16.mxu1 %v7528_v47  ;;  %v887_v47 = vld [vmem:[#allocation8 + $0x7b0] sm:$0xff] }
 0x2f5   :  { %v7581_v57 = vcombine.low %v883_v46, %v887_v47 }
 0x2f6   :  { %4139 = vmatpush1.bf16.msra.mxu0 %v7525_v53  ;;  %v7582_v53 = vcombine.high %v883_v46, %v887_v47  ;;  %v936_v46 = vld [vmem:[#allocation8 + $0x938] sm:$0xff]  ;;  %v7623_v47 = vcombine.low %v924_v33, %v928_v35 }
 0x2f7   :  { %4303 = vmatpush1.bf16.msra.mxu1 %v7527_v24  ;;  %4140 = vmatprep.subr.bf16.mxu0 %v7534_v14  ;;  %v7584_v24 = vcombine.high %v884_v48, %v888_v50  ;;  %v891_v14 = vld [vmem:[#allocation8 + $0x7d0] sm:$0xff] }
 0x2f8   :  { %4304 = vmatprep.subr.bf16.mxu1 %v7536_v54  ;;  %v895_v54 = vld [vmem:[#allocation8 + $0x7f0] sm:$0xff] }
 0x2f9   :  { %v7589_v1 = vcombine.low %v891_v14, %v895_v54 }
 0x2fa   :  { %4141 = vmatpush1.bf16.msra.mxu0 %v7533_v59  ;;  %v7590_v59 = vcombine.high %v891_v14, %v895_v54 }
 0x2fb   :  { %4305 = vmatpush1.bf16.msra.mxu1 %v7535_v60  ;;  %4142 = vmatprep.subr.bf16.mxu0 %v7542_v63  ;;  %v7592_v60 = vcombine.high %v892_v55, %v896_v56  ;;  %v899_v63 = vld [vmem:[#allocation8 + $0x810] sm:$0xff] }
 0x2fc   :  { %4306 = vmatprep.subr.bf16.mxu1 %v7544_v41  ;;  %v903_v41 = vld [vmem:[#allocation8 + $0x830] sm:$0xff] }
 0x2fd   :  { %v7597_v7 = vcombine.low %v899_v63, %v903_v41 }
 0x2fe   :  { %4143 = vmatpush1.bf16.msra.mxu0 %v7541_v3  ;;  %v7598_v3 = vcombine.high %v899_v63, %v903_v41 }
 0x2ff   :  { %4307 = vmatpush1.bf16.msra.mxu1 %v7543_v5  ;;  %4144 = vmatprep.subr.bf16.mxu0 %v7550_v49  ;;  %v7600_v5 = vcombine.high %v900_v62, %v904_v31  ;;  %v907_v49 = vld [vmem:[#allocation8 + $0x850] sm:$0xff] }
 0x300   :  { %4308 = vmatprep.subr.bf16.mxu1 %v7552_v0  ;;  %v911_v0 = vld [vmem:[#allocation8 + $0x870] sm:$0xff] }
 0x301   :  { %v7605_v25 = vcombine.low %v907_v49, %v911_v0 }
 0x302   :  { %4145 = vmatpush1.bf16.msra.mxu0 %v7549_v4  ;;  %v7606_v4 = vcombine.high %v907_v49, %v911_v0 }
 0x303   :  { %4309 = vmatpush1.bf16.msra.mxu1 %v7551_v11  ;;  %4146 = vmatprep.subr.bf16.mxu0 %v7558_v16  ;;  %v915_v11 = vld [vmem:[#allocation8 + $0x890] sm:$0xff] }
 0x304   :  { %4310 = vmatprep.subr.bf16.mxu1 %v7560_v19  ;;  %v919_v16 = vld [vmem:[#allocation8 + $0x8b0] sm:$0xff]  ;;  %v7608_v19 = vcombine.high %v908_v8, %v912_v27 }
 0x305   :  { %v7613_v37 = vcombine.low %v915_v11, %v919_v16  ;;  %v963_v27 = vld [vmem:[#allocation8 + $0xa10] sm:$0xff] }
 0x306   :  { %4147 = vmatpush1.bf16.msra.mxu0 %v7557_v29  ;;  %v7614_v29 = vcombine.high %v915_v11, %v919_v16  ;;  %v968_v11 = vld [vmem:[#allocation8 + $0xa38] sm:$0xff] }
 0x307   :  { %4311 = vmatpush1.bf16.msra.mxu1 %v7559_v30  ;;  %4148 = vmatprep.subr.bf16.mxu0 %v7566_v39  ;;  %v7616_v30 = vcombine.high %v916_v20, %v920_v23  ;;  %v923_v39 = vld [vmem:[#allocation8 + $0x8d0] sm:$0xff] }
 0x308   :  { %4312 = vmatprep.subr.bf16.mxu1 %v7568_v32  ;;  %v927_v32 = vld [vmem:[#allocation8 + $0x8f0] sm:$0xff] }
 0x309   :  { %v7622_v40 = vcombine.high %v923_v39, %v927_v32 }
 0x30a   :  { %4149 = vmatpush1.bf16.msra.mxu0 %v7565_v42  ;;  %v7624_v42 = vcombine.high %v924_v33, %v928_v35 }
 0x30b   :  { %4313 = vmatpush1.bf16.msra.mxu1 %v7567_v43  ;;  %4150 = vmatprep.subr.bf16.mxu0 %v7574_v44  ;;  %v931_v43 = vld [vmem:[#allocation8 + $0x910] sm:$0xff] }
 0x30c   :  { %4314 = vmatprep.subr.bf16.mxu1 %v7576_v45  ;;  %v935_v44 = vld [vmem:[#allocation8 + $0x930] sm:$0xff]  ;;  %v932_v45 = vld [vmem:[#allocation8 + $0x918] sm:$0xff] }
 0x30d   :  { %v7630_v48 = vcombine.high %v931_v43, %v935_v44  ;;  %v7632_v50 = vcombine.high %v932_v45, %v936_v46  ;;  %v7629_v14 = vcombine.low %v931_v43, %v935_v44  ;;  %v7631_v54 = vcombine.low %v932_v45, %v936_v46 }
 0x30e   :  { %4151 = vmatpush1.bf16.msra.mxu0 %v7573_v51  ;;  %v939_v51 = vld [vmem:[#allocation8 + $0x950] sm:$0xff] }
 0x30f   :  { %4315 = vmatpush1.bf16.msra.mxu1 %v7575_v52  ;;  %4152 = vmatprep.subr.bf16.mxu0 %v7582_v53  ;;  %v943_v52 = vld [vmem:[#allocation8 + $0x970] sm:$0xff]  ;;  %v940_v53 = vld [vmem:[#allocation8 + $0x958] sm:$0xff] }
 0x310   :  { %4316 = vmatprep.subr.bf16.mxu1 %v7584_v24  ;;  %v944_v24 = vld [vmem:[#allocation8 + $0x978] sm:$0xff]  ;;  %v7638_v55 = vcombine.high %v939_v51, %v943_v52  ;;  %v7637_v63 = vcombine.low %v939_v51, %v943_v52 }
 0x311   :  { %v7640_v56 = vcombine.high %v940_v53, %v944_v24  ;;  %v7639_v41 = vcombine.low %v940_v53, %v944_v24 }
 0x312   :  { %4153 = vmatpush1.bf16.msra.mxu0 %v7581_v57  ;;  %v947_v57 = vld [vmem:[#allocation8 + $0x990] sm:$0xff] }
 0x313   :  { %4317 = vmatpush1.bf16.msra.mxu1 %v7583_v58  ;;  %4154 = vmatprep.subr.bf16.mxu0 %v7590_v59  ;;  %v951_v58 = vld [vmem:[#allocation8 + $0x9b0] sm:$0xff]  ;;  %v948_v59 = vld [vmem:[#allocation8 + $0x998] sm:$0xff] }
 0x314   :  { %4318 = vmatprep.subr.bf16.mxu1 %v7592_v60  ;;  %v952_v60 = vld [vmem:[#allocation8 + $0x9b8] sm:$0xff]  ;;  %v7646_v62 = vcombine.high %v947_v57, %v951_v58  ;;  %v7645_v49 = vcombine.low %v947_v57, %v951_v58 }
 0x315   :  { %v7648_v31 = vcombine.high %v948_v59, %v952_v60  ;;  %v7647_v0 = vcombine.low %v948_v59, %v952_v60 }
 0x316   :  { %4155 = vmatpush1.bf16.msra.mxu0 %v7589_v1  ;;  %v955_v1 = vld [vmem:[#allocation8 + $0x9d0] sm:$0xff] }
 0x317   :  { %4319 = vmatpush1.bf16.msra.mxu1 %v7591_v2  ;;  %4165 = vmatprep.subr.bf16.mxu0 %v7598_v3  ;;  %v959_v2 = vld [vmem:[#allocation8 + $0x9f0] sm:$0xff]  ;;  %v956_v3 = vld [vmem:[#allocation8 + $0x9d8] sm:$0xff] }
 0x318   :  { %4329 = vmatprep.subr.bf16.mxu1 %v7600_v5  ;;  %v960_v5 = vld [vmem:[#allocation8 + $0x9f8] sm:$0xff]  ;;  %v7653_v16 = vcombine.low %v955_v1, %v959_v2 }
 0x319   :  { %4157 = vmatmul.mubr.bf16.vlgmr.msra.gmra.mrb[12].mxu0 %v9395_v26  ;;  %v7656_v8 = vcombine.high %v956_v3, %v960_v5 }
 0x31a   :  { %4321 = vmatmul.mubr.bf16.vlgmr.msra.gmra.mrb[12].mxu1 %v9395_v26  ;;  %4166 = vmatpush1.bf16.msra.mxu0 %v7597_v7  ;;  %v7615_v26 = vcombine.low %v916_v20, %v920_v23  ;;  %v7654_v7 = vcombine.high %v955_v1, %v959_v2 }
 0x31b   :  { %4197 = vmatprep.mubr.bf16.mxu0 %v9397_v36  ;;  %4330 = vmatpush1.bf16.msra.mxu1 %v7599_v10  ;;  %v967_v10 = vld [vmem:[#allocation8 + $0xa30] sm:$0xff] }
 0x31c   :  { %4361 = vmatprep.mubr.bf16.mxu1 %v9397_v36  ;;  %4167 = vmatprep.subr.bf16.mxu0 %v7606_v4  ;;  %v7621_v36 = vcombine.low %v923_v39, %v927_v32  ;;  %v964_v4 = vld [vmem:[#allocation8 + $0xa18] sm:$0xff]  ;;  %v7662_v20 = vcombine.high %v963_v27, %v967_v10  ;;  %v7661_v39 = vcombine.low %v963_v27, %v967_v10 }
 0x31d   :  { %4331 = vmatprep.subr.bf16.mxu1 %v7608_v19  ;;  %v7655_v19 = vcombine.low %v956_v3, %v960_v5  ;;  %v7664_v23 = vcombine.high %v964_v4, %v968_v11  ;;  %v7663_v32 = vcombine.low %v964_v4, %v968_v11 }
 0x31e   :  { %4168 = vmatpush1.bf16.msra.mxu0 %v7605_v25  ;;  %v971_v25 = vld [vmem:[#allocation8 + $0xa50] sm:$0xff] }
 0x31f   :  { %4332 = vmatpush1.bf16.msra.mxu1 %v7607_v28  ;;  %4169 = vmatprep.subr.bf16.mxu0 %v7614_v29  ;;  %v975_v28 = vld [vmem:[#allocation8 + $0xa70] sm:$0xff]  ;;  %v972_v29 = vld [vmem:[#allocation8 + $0xa58] sm:$0xff] }
 0x320   :  { %4333 = vmatprep.subr.bf16.mxu1 %v7616_v30  ;;  %v976_v30 = vld [vmem:[#allocation8 + $0xa78] sm:$0xff]  ;;  %v7670_v33 = vcombine.high %v971_v25, %v975_v28  ;;  %v7669_v43 = vcombine.low %v971_v25, %v975_v28 }
 0x321   :  { %v7672_v35 = vcombine.high %v972_v29, %v976_v30  ;;  %v7671_v44 = vcombine.low %v972_v29, %v976_v30 }
 0x322   :  { %4170 = vmatpush1.bf16.msra.mxu0 %v7613_v37  ;;  %v979_v37 = vld [vmem:[#allocation8 + $0xa90] sm:$0xff] }
 0x323   :  { %4334 = vmatpush1.bf16.msra.mxu1 %v7615_v26  ;;  %4171 = vmatprep.subr.bf16.mxu0 %v7622_v40  ;;  %v983_v26 = vld [vmem:[#allocation8 + $0xab0] sm:$0xff]  ;;  %v980_v40 = vld [vmem:[#allocation8 + $0xa98] sm:$0xff] }
 0x324   :  { %4335 = vmatprep.subr.bf16.mxu1 %v7624_v42  ;;  %v984_v42 = vld [vmem:[#allocation8 + $0xab8] sm:$0xff]  ;;  %v7678_v45 = vcombine.high %v979_v37, %v983_v26  ;;  %v7677_v51 = vcombine.low %v979_v37, %v983_v26 }
 0x325   :  { %v7680_v46 = vcombine.high %v980_v40, %v984_v42  ;;  %v7679_v52 = vcombine.low %v980_v40, %v984_v42 }
 0x326   :  { %4172 = vmatpush1.bf16.msra.mxu0 %v7621_v36  ;;  %v987_v36 = vld [vmem:[#allocation8 + $0xad0] sm:$0xff] }
 0x327   :  { %4336 = vmatpush1.bf16.msra.mxu1 %v7623_v47  ;;  %4173 = vmatprep.subr.bf16.mxu0 %v7630_v48  ;;  %v991_v47 = vld [vmem:[#allocation8 + $0xaf0] sm:$0xff]  ;;  %v988_v48 = vld [vmem:[#allocation8 + $0xad8] sm:$0xff] }
 0x328   :  { %4337 = vmatprep.subr.bf16.mxu1 %v7632_v50  ;;  %v992_v50 = vld [vmem:[#allocation8 + $0xaf8] sm:$0xff]  ;;  %v7686_v53 = vcombine.high %v987_v36, %v991_v47  ;;  %v7685_v57 = vcombine.low %v987_v36, %v991_v47 }
 0x329   :  { %v7688_v24 = vcombine.high %v988_v48, %v992_v50  ;;  %v7687_v58 = vcombine.low %v988_v48, %v992_v50  ;;  %v1040_v36 = vld [vmem:[#allocation8 + $0xc78] sm:$0xff]  ;;  %v1043_v50 = vld [vmem:[#allocation8 + $0xc90] sm:$0xff] }
 0x32a   :  { %4174 = vmatpush1.bf16.msra.mxu0 %v7629_v14  ;;  %v995_v14 = vld [vmem:[#allocation8 + $0xb10] sm:$0xff] }
 0x32b   :  { %4338 = vmatpush1.bf16.msra.mxu1 %v7631_v54  ;;  %4175 = vmatprep.subr.bf16.mxu0 %v7638_v55  ;;  %v999_v54 = vld [vmem:[#allocation8 + $0xb30] sm:$0xff]  ;;  %v996_v55 = vld [vmem:[#allocation8 + $0xb18] sm:$0xff] }
 0x32c   :  { %4339 = vmatprep.subr.bf16.mxu1 %v7640_v56  ;;  %v1000_v56 = vld [vmem:[#allocation8 + $0xb38] sm:$0xff]  ;;  %v7694_v59 = vcombine.high %v995_v14, %v999_v54  ;;  %v7693_v1 = vcombine.low %v995_v14, %v999_v54 }
 0x32d   :  { %v7696_v60 = vcombine.high %v996_v55, %v1000_v56  ;;  %v7695_v2 = vcombine.low %v996_v55, %v1000_v56 }
 0x32e   :  { %4176 = vmatpush1.bf16.msra.mxu0 %v7637_v63  ;;  %v1003_v63 = vld [vmem:[#allocation8 + $0xb50] sm:$0xff] }
 0x32f   :  { %4340 = vmatpush1.bf16.msra.mxu1 %v7639_v41  ;;  %4177 = vmatprep.subr.bf16.mxu0 %v7646_v62  ;;  %v1007_v41 = vld [vmem:[#allocation8 + $0xb70] sm:$0xff]  ;;  %v1004_v62 = vld [vmem:[#allocation8 + $0xb58] sm:$0xff] }
 0x330   :  { %4341 = vmatprep.subr.bf16.mxu1 %v7648_v31  ;;  %v1008_v31 = vld [vmem:[#allocation8 + $0xb78] sm:$0xff]  ;;  %v7702_v3 = vcombine.high %v1003_v63, %v1007_v41  ;;  %v7701_v27 = vcombine.low %v1003_v63, %v1007_v41 }
 0x331   :  { %v7704_v5 = vcombine.high %v1004_v62, %v1008_v31  ;;  %v7703_v10 = vcombine.low %v1004_v62, %v1008_v31  ;;  %v1059_v31 = vld [vmem:[#allocation8 + $0xd10] sm:$0xff] }
 0x332   :  { %4178 = vmatpush1.bf16.msra.mxu0 %v7645_v49  ;;  %v1011_v49 = vld [vmem:[#allocation8 + $0xb90] sm:$0xff] }
 0x333   :  { %4342 = vmatpush1.bf16.msra.mxu1 %v7647_v0  ;;  %4179 = vmatprep.subr.bf16.mxu0 %v7654_v7  ;;  %v1015_v0 = vld [vmem:[#allocation8 + $0xbb0] sm:$0xff]  ;;  %v1012_v7 = vld [vmem:[#allocation8 + $0xb98] sm:$0xff] }
 0x334   :  { %4343 = vmatprep.subr.bf16.mxu1 %v7656_v8  ;;  %v1016_v8 = vld [vmem:[#allocation8 + $0xbb8] sm:$0xff]  ;;  %v7710_v4 = vcombine.high %v1011_v49, %v1015_v0  ;;  %v7709_v25 = vcombine.low %v1011_v49, %v1015_v0  ;;  %v9446_v0 = vld [vmem:[#allocation10] sm:$0xff] }
 0x335   :  { %v7712_v11 = vcombine.high %v1012_v7, %v1016_v8  ;;  %v7711_v28 = vcombine.low %v1012_v7, %v1016_v8  ;;  %v9448_v7 = vld [vmem:[#allocation8 + $0xd50] sm:$0xff] }
 0x336   :  { %4180 = vmatpush1.bf16.msra.mxu0 %v7653_v16  ;;  %v1019_v16 = vld [vmem:[#allocation8 + $0xbd0] sm:$0xff] }
 0x337   :  { %4344 = vmatpush1.bf16.msra.mxu1 %v7655_v19  ;;  %4181 = vmatprep.subr.bf16.mxu0 %v7662_v20  ;;  %v1023_v19 = vld [vmem:[#allocation8 + $0xbf0] sm:$0xff]  ;;  %v1020_v20 = vld [vmem:[#allocation8 + $0xbd8] sm:$0xff] }
 0x338   :  { %4345 = vmatprep.subr.bf16.mxu1 %v7664_v23  ;;  %v1024_v23 = vld [vmem:[#allocation8 + $0xbf8] sm:$0xff]  ;;  %v7718_v29 = vcombine.high %v1019_v16, %v1023_v19  ;;  %v7717_v37 = vcombine.low %v1019_v16, %v1023_v19  ;;  %v9450_v8 = vld [vmem:[#allocation8 + $0xd70] sm:$0xff] }
 0x339   :  { %v7720_v30 = vcombine.high %v1020_v20, %v1024_v23  ;;  %v7719_v26 = vcombine.low %v1020_v20, %v1024_v23  ;;  %v9458_v16 = vld [vmem:[#allocation8 + $0xdb0] sm:$0xff]  ;;  %v9460_v19 = vld [vmem:[#allocation8 + $0xd98] sm:$0xff] }
 0x33a   :  { %4182 = vmatpush1.bf16.msra.mxu0 %v7661_v39  ;;  %v1027_v39 = vld [vmem:[#allocation8 + $0xc10] sm:$0xff]  ;;  %v9462_v20 = vld [vmem:[#allocation8 + $0xdb8] sm:$0xff] }
 0x33b   :  { %4346 = vmatpush1.bf16.msra.mxu1 %v7663_v32  ;;  %4183 = vmatprep.subr.bf16.mxu0 %v7670_v33  ;;  %v1031_v32 = vld [vmem:[#allocation8 + $0xc30] sm:$0xff]  ;;  %v1028_v33 = vld [vmem:[#allocation8 + $0xc18] sm:$0xff] }
 0x33c   :  { %4347 = vmatprep.subr.bf16.mxu1 %v7672_v35  ;;  %v1032_v35 = vld [vmem:[#allocation8 + $0xc38] sm:$0xff]  ;;  %v7726_v40 = vcombine.high %v1027_v39, %v1031_v32 }
 0x33d   :  { %v7728_v42 = vcombine.high %v1028_v33, %v1032_v35  ;;  %v7727_v47 = vcombine.low %v1028_v33, %v1032_v35  ;;  %v1162_v33 = vrot.slane %v9446_v0, %v9350_v15  ;;  %v1170_v35 = vrot.slane %v9446_v0, %v9355_v17 }
 0x33e   :  { %4184 = vmatpush1.bf16.msra.mxu0 %v7669_v43  ;;  %v1035_v43 = vld [vmem:[#allocation8 + $0xc50] sm:$0xff] }
 0x33f   :  { %4348 = vmatpush1.bf16.msra.mxu1 %v7671_v44  ;;  %4185 = vmatprep.subr.bf16.mxu0 %v7678_v45  ;;  %v1039_v44 = vld [vmem:[#allocation8 + $0xc70] sm:$0xff]  ;;  %v7725_v45 = vcombine.low %v1027_v39, %v1031_v32  ;;  %v9472_v32 = vld [vmem:[#allocation8 + $0xdd8] sm:$0xff] }
 0x340   :  { %4349 = vmatprep.subr.bf16.mxu1 %v7680_v46  ;;  %v1036_v46 = vld [vmem:[#allocation8 + $0xc58] sm:$0xff]  ;;  %v7734_v48 = vcombine.high %v1035_v43, %v1039_v44  ;;  %v7733_v14 = vcombine.low %v1035_v43, %v1039_v44  ;;  %v9470_v39 = vld [vmem:[#allocation8 + $0xdf0] sm:$0xff]  ;;  %v7765_v43 = vcombine.low %v9448_v7, %v9450_v8 }
 0x341   :  { %v7735_v54 = vcombine.low %v1036_v46, %v1040_v36 }
 0x342   :  { %4186 = vmatpush1.bf16.msra.mxu0 %v7677_v51  ;;  %v1047_v51 = vld [vmem:[#allocation8 + $0xcb0] sm:$0xff] }
 0x343   :  { %4350 = vmatpush1.bf16.msra.mxu1 %v7679_v52  ;;  %4187 = vmatprep.subr.bf16.mxu0 %v7686_v53  ;;  %v7736_v52 = vcombine.high %v1036_v46, %v1040_v36  ;;  %v1044_v53 = vld [vmem:[#allocation8 + $0xc98] sm:$0xff]  ;;  %v7742_v55 = vcombine.high %v1043_v50, %v1047_v51  ;;  %v7741_v63 = vcombine.low %v1043_v50, %v1047_v51 }
 0x344   :  { %4351 = vmatprep.subr.bf16.mxu1 %v7688_v24  ;;  %v1048_v24 = vld [vmem:[#allocation8 + $0xcb8] sm:$0xff]  ;;  %v7775_v51 = vcombine.low %v9460_v19, %v9462_v20 }
 0x345   :  { %v7744_v56 = vcombine.high %v1044_v53, %v1048_v24  ;;  %v9494_v36 = vld [vmem:[#allocation8 + $0xe18] sm:$0xff] }
 0x346   :  { %4188 = vmatpush1.bf16.msra.mxu0 %v7685_v57  ;;  %v1051_v57 = vld [vmem:[#allocation8 + $0xcd0] sm:$0xff] }
 0x347   :  { %4352 = vmatpush1.bf16.msra.mxu1 %v7687_v58  ;;  %4189 = vmatprep.subr.bf16.mxu0 %v7694_v59  ;;  %v1055_v58 = vld [vmem:[#allocation8 + $0xcf0] sm:$0xff]  ;;  %v1052_v59 = vld [vmem:[#allocation8 + $0xcd8] sm:$0xff] }
 0x348   :  { %4353 = vmatprep.subr.bf16.mxu1 %v7696_v60  ;;  %v1056_v60 = vld [vmem:[#allocation8 + $0xcf8] sm:$0xff]  ;;  %v7750_v41 = vcombine.high %v1051_v57, %v1055_v58 }
 0x349   :  { %v7752_v62 = vcombine.high %v1052_v59, %v1056_v60 }
 0x34a   :  { %4190 = vmatpush1.bf16.msra.mxu0 %v7693_v1  ;;  %v1063_v1 = vld [vmem:[#allocation8 + $0xd30] sm:$0xff] }
 0x34b   :  { %4354 = vmatpush1.bf16.msra.mxu1 %v7695_v2  ;;  %4191 = vmatprep.subr.bf16.mxu0 %v7702_v3  ;;  %v1060_v2 = vld [vmem:[#allocation8 + $0xd18] sm:$0xff]  ;;  %v7758_v49 = vcombine.high %v1059_v31, %v1063_v1  ;;  %v7757_v23 = vcombine.low %v1059_v31, %v1063_v1 }
 0x34c   :  { %4355 = vmatprep.subr.bf16.mxu1 %v7704_v5  ;;  %v1064_v3 = vld [vmem:[#allocation8 + $0xd38] sm:$0xff]  ;;  %v7751_v5 = vcombine.low %v1052_v59, %v1056_v60  ;;  %v9522_v59 = vld [vmem:[#allocation8 + $0xe90] sm:$0xff] }
 0x34d   :  { %v9524_v60 = vld [vmem:[#allocation8 + $0xeb0] sm:$0xff]  ;;  %v9534_v31 = vld [vmem:[#allocation8 + $0xeb8] sm:$0xff] }
 0x34e   :  { %4192 = vmatpush1.bf16.msra.mxu0 %v7701_v27  ;;  %v7760_v27 = vcombine.high %v1060_v2, %v1064_v3 }
 0x34f   :  { %4356 = vmatpush1.bf16.msra.mxu1 %v7703_v10  ;;  %4193 = vmatprep.subr.bf16.mxu0 %v7710_v4  ;;  %v9452_v10 = vld [vmem:[#allocation8 + $0xd58] sm:$0xff] }
 0x350   :  { %4357 = vmatprep.subr.bf16.mxu1 %v7712_v11  ;;  %v9454_v4 = vld [vmem:[#allocation8 + $0xd78] sm:$0xff]  ;;  %v9456_v11 = vld [vmem:[#allocation8 + $0xd90] sm:$0xff] }
 0x351   :  { %v7767_v44 = vcombine.low %v9452_v10, %v9454_v4  ;;  %v7774_v46 = vcombine.high %v9456_v11, %v9458_v16  ;;  %v7773_v50 = vcombine.low %v9456_v11, %v9458_v16 }
 0x352   :  { %4194 = vmatpush1.bf16.msra.mxu0 %v7709_v25  ;;  %v7759_v25 = vcombine.low %v1060_v2, %v1064_v3 }
 0x353   :  { %4358 = vmatpush1.bf16.msra.mxu1 %v7711_v28  ;;  %4195 = vmatprep.subr.bf16.mxu0 %v7718_v29  ;;  %v1158_v28 = vrot.slane %v9446_v0, %v9345_v13  ;;  %v1166_v29 = vrot.slane %v9446_v0, %v9384_v34 }
 0x354   :  { %4359 = vmatprep.subr.bf16.mxu1 %v7720_v30  ;;  %v9468_v30 = vld [vmem:[#allocation8 + $0xdd0] sm:$0xff] }
 0x356   :  { %4196 = vmatpush1.bf16.msra.mxu0 %v7717_v37  ;;  %v7766_v37 = vcombine.high %v9448_v7, %v9450_v8 }
 0x357   :  { %4360 = vmatpush1.bf16.msra.mxu1 %v7719_v26  ;;  %4206 = vmatprep.subr.bf16.mxu0 %v7726_v40  ;;  %v9480_v26 = vld [vmem:[#allocation8 + $0xdf8] sm:$0xff]  ;;  %v9482_v40 = vld [vmem:[#allocation8 + $0xe10] sm:$0xff] }
 0x358   :  { %4370 = vmatprep.subr.bf16.mxu1 %v7728_v42  ;;  %v9484_v42 = vld [vmem:[#allocation8 + $0xe30] sm:$0xff] }
 0x359   :  { %4198 = vmatmul.mubr.bf16.vlgmr.msra.gmra.mrb[12].mxu0 %v9415_v9 }
 0x35a   :  { %4362 = vmatmul.mubr.bf16.vlgmr.msra.gmra.mrb[12].mxu1 %v9415_v9  ;;  %4207 = vmatpush1.bf16.msra.mxu0 %v7725_v45  ;;  %v7743_v9 = vcombine.low %v1044_v53, %v1048_v24  ;;  %v7768_v45 = vcombine.high %v9452_v10, %v9454_v4  ;;  %v7782_v53 = vcombine.high %v9468_v30, %v9470_v39  ;;  %v9508_v24 = vld [vmem:[#allocation8 + $0xe70] sm:$0xff] }
 0x35b   :  { %4238 = vmatprep.mubr.bf16.mxu0 %v9417_v21  ;;  %4371 = vmatpush1.bf16.msra.mxu1 %v7727_v47  ;;  %v9496_v47 = vld [vmem:[#allocation8 + $0xe38] sm:$0xff] }
 0x35c   :  { %4402 = vmatprep.mubr.bf16.mxu1 %v9417_v21  ;;  %4208 = vmatprep.subr.bf16.mxu0 %v7734_v48  ;;  %v7749_v21 = vcombine.low %v1051_v57, %v1055_v58  ;;  %v9498_v48 = vld [vmem:[#allocation8 + $0xe50] sm:$0xff]  ;;  %v7784_v57 = vcombine.high %v9472_v32, %v9480_v26  ;;  %v7790_v58 = vcombine.high %v9482_v40, %v9484_v42 }
 0x35d   :  { %4372 = vmatprep.subr.bf16.mxu1 %v7736_v52  ;;  %v7776_v52 = vcombine.high %v9460_v19, %v9462_v20 }
 0x35e   :  { %4209 = vmatpush1.bf16.msra.mxu0 %v7733_v14  ;;  %v9510_v14 = vld [vmem:[#allocation8 + $0xe58] sm:$0xff] }
 0x35f   :  { %4373 = vmatpush1.bf16.msra.mxu1 %v7735_v54  ;;  %4210 = vmatprep.subr.bf16.mxu0 %v7742_v55  ;;  %v9512_v54 = vld [vmem:[#allocation8 + $0xe78] sm:$0xff]  ;;  %v7781_v55 = vcombine.low %v9468_v30, %v9470_v39 }
 0x360   :  { %4374 = vmatprep.subr.bf16.mxu1 %v7744_v56  ;;  %v7783_v56 = vcombine.low %v9472_v32, %v9480_v26 }
 0x362   :  { %4211 = vmatpush1.bf16.msra.mxu0 %v7741_v63  ;;  %v7789_v63 = vcombine.low %v9482_v40, %v9484_v42  ;;  %v9827_v42 = vcombine.high %v9510_v14, %v9512_v54 }
 0x363   :  { %4375 = vmatpush1.bf16.msra.mxu1 %v7743_v9  ;;  %4212 = vmatprep.subr.bf16.mxu0 %v7750_v41  ;;  %v7791_v9 = vcombine.low %v9494_v36, %v9496_v47  ;;  %v7792_v41 = vcombine.high %v9494_v36, %v9496_v47 }
 0x364   :  { %4376 = vmatprep.subr.bf16.mxu1 %v7752_v62  ;;  %v9532_v62 = vld [vmem:[#allocation8 + $0xe98] sm:$0xff] }
 0x366   :  { %4213 = vmatpush1.bf16.msra.mxu0 %v7749_v21 }
 0x367   :  { %4377 = vmatpush1.bf16.msra.mxu1 %v7751_v5  ;;  %4214 = vmatprep.subr.bf16.mxu0 %v7758_v49 }
 0x368   :  { %4378 = vmatprep.subr.bf16.mxu1 %v7760_v27 }
 0x36a   :  { %4215 = vmatpush1.bf16.msra.mxu0 %v7757_v23 }
 0x36b   :  { %4379 = vmatpush1.bf16.msra.mxu1 %v7759_v25  ;;  %4216 = vmatprep.subr.bf16.mxu0 %v7766_v37 }
 0x36c   :  { %v3912_v1 = vpop.f32.mrb[8].mxu0  ;;  %v4076_v2 = vpop.f32.mrb[8].mxu1  ;;  %4380 = vmatprep.subr.bf16.mxu1 %v7768_v45 }
 0x36d   :  { %v9544_v7 = vadd.f32 %v3912_v1, %v1158_v28  ;;  %v9546_v8 = vadd.f32 %v4076_v2, %v1166_v29  ;;  %v3914_v27 = vpop.f32.mrb[9].mxu0  ;;  %v4078_v10 = vpop.f32.mrb[9].mxu1 }
 0x36e   :  { %v9552_v16 = vadd.f32 %v3914_v27, %v1162_v33  ;;  %v9554_v23 = vadd.f32 %v4078_v10, %v1170_v35  ;;  %v3916_v25 = vpop.f32.mrb[10].mxu0  ;;  %v4080_v37 = vpop.f32.mrb[10].mxu1  ;;  %4217 = vmatpush1.bf16.msra.mxu0 %v7765_v43 }
 0x36f   :  { %v4413_v45 = vrot.slane %v9544_v7, 4  ;;  %v4469_v1 = vmul.f32 %v9544_v7, %v9544_v7  ;;  %v4425_v2 = vrot.slane %v9546_v8, 4  ;;  %v4471_v33 = vmul.f32 %v9546_v8, %v9546_v8  ;;  %4381 = vmatpush1.bf16.msra.mxu1 %v7767_v44  ;;  %v3917_v35 = vpop.f32.mrb[11].mxu0  ;;  %v4081_v27 = vpop.f32.mrb[11].mxu1  ;;  %4218 = vmatprep.subr.bf16.mxu0 %v7774_v46 }
 0x370   :  { %v4419_v43 = vrot.slane %v9552_v16, 4  ;;  %v4470_v10 = vmul.f32 %v9552_v16, %v9552_v16  ;;  %v4431_v25 = vrot.slane %v9554_v23, 4  ;;  %v4472_v37 = vmul.f32 %v9554_v23, %v9554_v23  ;;  %4382 = vmatprep.subr.bf16.mxu1 %v7776_v52 }
 0x371   :  { %v4414_v28 = vadd.f32 %v9544_v7, %v4413_v45  ;;  %v4477_v4 = vrot.slane %v4469_v1, 4  ;;  %v4426_v29 = vadd.f32 %v9546_v8, %v4425_v2  ;;  %v4489_v44 = vrot.slane %v4471_v33, 4 }
 0x372   :  { %v4420_v35 = vadd.f32 %v9552_v16, %v4419_v43  ;;  %v4483_v46 = vrot.slane %v4470_v10, 4  ;;  %v4432_v27 = vadd.f32 %v9554_v23, %v4431_v25  ;;  %v4495_v11 = vrot.slane %v4472_v37, 4  ;;  %4219 = vmatpush1.bf16.msra.mxu0 %v7773_v50 }
 0x373   :  { %v4415_v5 = vrot.slane %v4414_v28, 2  ;;  %v4478_v3 = vadd.f32 %v4477_v4, %v4469_v1  ;;  %v4427_v49 = vrot.slane %v4426_v29, 2  ;;  %v4490_v21 = vadd.f32 %v4489_v44, %v4471_v33  ;;  %4383 = vmatpush1.bf16.msra.mxu1 %v7775_v51  ;;  %4220 = vmatprep.subr.bf16.mxu0 %v7782_v53 }
 0x374   :  { %v4421_v52 = vrot.slane %v4420_v35, 2  ;;  %v4484_v45 = vadd.f32 %v4483_v46, %v4470_v10  ;;  %v4433_v2 = vrot.slane %v4432_v27, 2  ;;  %v4496_v43 = vadd.f32 %v4495_v11, %v4472_v37  ;;  %4384 = vmatprep.subr.bf16.mxu1 %v7784_v57 }
 0x375   :  { %v4416_v50 = vadd.f32 %v4415_v5, %v4414_v28  ;;  %v4479_v4 = vrot.slane %v4478_v3, 2  ;;  %v4428_v1 = vadd.f32 %v4427_v49, %v4426_v29  ;;  %v4491_v33 = vrot.slane %v4490_v21, 2 }
 0x376   :  { %v4422_v25 = vadd.f32 %v4421_v52, %v4420_v35  ;;  %v4485_v44 = vrot.slane %v4484_v45, 2  ;;  %v4434_v19 = vadd.f32 %v4433_v2, %v4432_v27  ;;  %v4497_v20 = vrot.slane %v4496_v43, 2  ;;  %4221 = vmatpush1.bf16.msra.mxu0 %v7781_v55 }
 0x377   :  { %v4417_v51 = vrot.slane %v4416_v50, 1  ;;  %v4480_v53 = vadd.f32 %v4479_v4, %v4478_v3  ;;  %v4429_v10 = vrot.slane %v4428_v1, 1  ;;  %v4492_v11 = vadd.f32 %v4491_v33, %v4490_v21  ;;  %4385 = vmatpush1.bf16.msra.mxu1 %v7783_v56  ;;  %4222 = vmatprep.subr.bf16.mxu0 %v7790_v58 }
 0x378   :  { %v4423_v57 = vrot.slane %v4422_v25, 1  ;;  %v4486_v5 = vadd.f32 %v4485_v44, %v4484_v45  ;;  %v4435_v49 = vrot.slane %v4434_v19, 1  ;;  %v4498_v28 = vadd.f32 %v4497_v20, %v4496_v43  ;;  %4386 = vmatprep.subr.bf16.mxu1 %v7792_v41  ;;  %v1119_v45 = vld [vmem:[#allocation8 + $0xef0] sm:$0xff]  ;;  %v1116_v43 = vld [vmem:[#allocation8 + $0xed8] sm:$0xff] }
 0x379   :  { %v4418_v30 = vadd.f32 %v4417_v51, %v4416_v50  ;;  %v4481_v39 = vrot.slane %v4480_v53, 1  ;;  %v4430_v55 = vadd.f32 %v4429_v10, %v4428_v1  ;;  %v4493_v3 = vrot.slane %v4492_v11, 1  ;;  %v1120_v50 = vld [vmem:[#allocation8 + $0xef8] sm:$0xff] }
 0x37a   :  { %v4424_v21 = vadd.f32 %v4423_v57, %v4422_v25  ;;  %v4487_v29 = vrot.slane %v4486_v5, 1  ;;  %v4436_v32 = vadd.f32 %v4435_v49, %v4434_v19  ;;  %v4499_v26 = vrot.slane %v4498_v28, 1  ;;  %4223 = vmatpush1.bf16.msra.mxu0 %v7789_v63  ;;  %v1115_v63 = vld [vmem:[#allocation8 + $0xed0] sm:$0xff] }
 0x37b   :  { %v9600_v56 = vmul.f32 0.125, %v4418_v30  ;;  %v4482_v58 = vadd.f32 %v4481_v39, %v4480_v53  ;;  %v9602_v37 = vmul.f32 0.125, %v4430_v55  ;;  %v4494_v35 = vadd.f32 %v4493_v3, %v4492_v11  ;;  %4387 = vmatpush1.bf16.msra.mxu1 %v7791_v9  ;;  %v1124_v39 = vld [vmem:[#allocation8 + $0xf18] sm:$0xff] }
 0x37c   :  { %v9826_v41 = vcombine.high %v9498_v48, %v9508_v24  ;;  %v9610_v46 = vmul.f32 0.125, %v4424_v21  ;;  %v4488_v27 = vadd.f32 %v4487_v29, %v4486_v5  ;;  %v9612_v52 = vmul.f32 0.125, %v4436_v32  ;;  %4388 = vmatprep.subr.bf16.mxu1 %v9827_v42  ;;  %v1128_v55 = vld [vmem:[#allocation8 + $0xf38] sm:$0xff]  ;;  %v1131_v42 = vld [vmem:[#allocation8 + $0xf50] sm:$0xff] }
 0x37d   :  { %v4500_v40 = vadd.f32 %v4499_v26, %v4498_v28  ;;  %v4525_v2 = vmul.f32 0.125, %v4482_v58  ;;  %v4533_v36 = vmul.f32 %v9600_v56, %v9600_v56  ;;  %v4527_v47 = vmul.f32 0.125, %v4494_v35 }
 0x37e   :  { %4224 = vmatprep.subr.bf16.mxu0 %v9826_v41  ;;  %v4535_v9 = vmul.f32 %v9602_v37, %v9602_v37  ;;  %v4526_v4 = vmul.f32 0.125, %v4488_v27  ;;  %v4534_v1 = vmul.f32 %v9610_v46, %v9610_v46  ;;  %v4536_v25 = vmul.f32 %v9612_v52, %v9612_v52 }
 0x37f   :  { %v4528_v33 = vmul.f32 0.125, %v4500_v40  ;;  %v9828_v44 = vcombine.low %v9498_v48, %v9508_v24  ;;  %v4541_v19 = vsub.f32 %v4525_v2, %v4533_v36  ;;  %v9829_v51 = vcombine.low %v9510_v14, %v9512_v54  ;;  %v1123_v48 = vld [vmem:[#allocation8 + $0xf10] sm:$0xff]  ;;  %v1132_v36 = vld [vmem:[#allocation8 + $0xf58] sm:$0xff] }
 0x380   :  { %v4543_v20 = vsub.f32 %v4527_v47, %v4535_v9  ;;  %v9830_v53 = vcombine.high %v9522_v59, %v9524_v60  ;;  %v7814_v10 = vcombine.high %v1115_v63, %v1119_v45  ;;  %v4542_v11 = vsub.f32 %v4526_v4, %v4534_v1  ;;  %v1127_v24 = vld [vmem:[#allocation8 + $0xf30] sm:$0xff]  ;;  %v1144_v4 = vld [vmem:[#allocation8 + $0xfb8] sm:$0xff] }
 0x381   :  { %4225 = vmatpush1.bf16.msra.mxu0 %v9828_v44  ;;  %4389 = vmatpush1.bf16.msra.mxu1 %v9829_v51  ;;  %v4544_v57 = vsub.f32 %v4528_v33, %v4536_v25  ;;  %v9831_v5 = vcombine.high %v9532_v62, %v9534_v31  ;;  %v7816_v49 = vcombine.high %v1116_v43, %v1120_v50  ;;  %v4549_v28 = vmax.f32 %v4541_v19, 0.0  ;;  %v1135_v2 = vld [vmem:[#allocation8 + $0xf70] sm:$0xff] }
 0x382   :  { %4226 = vmatprep.subr.bf16.mxu0 %v9830_v53  ;;  %v4551_v30 = vmax.f32 %v4543_v20, 0.0  ;;  %v4550_v14 = vmax.f32 %v4542_v11, 0.0  ;;  %v9832_v3 = vcombine.low %v9522_v59, %v9524_v60  ;;  %v7813_v21 = vcombine.low %v1115_v63, %v1119_v45  ;;  %v1136_v59 = vld [vmem:[#allocation8 + $0xf78] sm:$0xff]  ;;  %v1139_v9 = vld [vmem:[#allocation8 + $0xf90] sm:$0xff] }
 0x383   :  { %4390 = vmatprep.subr.bf16.mxu1 %v9831_v5  ;;  %v4552_v54 = vmax.f32 %v4544_v57, 0.0  ;;  %v4557_v29 = vadd.f32 1e-05, %v4549_v28  ;;  %v9833_v26 = vcombine.low %v9532_v62, %v9534_v31  ;;  %v7815_v58 = vcombine.low %v1116_v43, %v1120_v50  ;;  %v1143_v43 = vld [vmem:[#allocation8 + $0xfb0] sm:$0xff]  ;;  %v1140_v50 = vld [vmem:[#allocation8 + $0xf98] sm:$0xff] }
 0x384   :  { %v4559_v32 = vadd.f32 1e-05, %v4551_v30  ;;  %v7822_v35 = vcombine.high %v1123_v48, %v1127_v24  ;;  %v4558_v41 = vadd.f32 1e-05, %v4550_v14  ;;  %v7824_v40 = vcombine.high %v1124_v39, %v1128_v55  ;;  %v1147_v20 = vld [vmem:[#allocation8 + $0xfd0] sm:$0xff]  ;;  %v1148_v53 = vld [vmem:[#allocation8 + $0xfd8] sm:$0xff] }
 0x385   :  { %4227 = vmatpush1.bf16.msra.mxu0 %v9832_v3  ;;  %4391 = vmatpush1.bf16.msra.mxu1 %v9833_v26  ;;  %v4560_v27 = vadd.f32 1e-05, %v4552_v54  ;;  %8712 = vrsqrt.f32 %v4557_v29  ;;  %v7821_v60 = vcombine.low %v1123_v48, %v1127_v24  ;;  %v7823_v62 = vcombine.low %v1124_v39, %v1128_v55  ;;  %v1151_v51 = vld [vmem:[#allocation8 + $0xff0] sm:$0xff] }
 0x386   :  { %4228 = vmatprep.subr.bf16.mxu0 %v7814_v10  ;;  %4392 = vmatprep.subr.bf16.mxu1 %v7816_v49  ;;  %8714 = vrsqrt.f32 %v4559_v32  ;;  %v7830_v31 = vcombine.high %v1131_v42, %v1135_v2  ;;  %v9085_v63 = vmov 1966171168   ;;  %v7832_v47 = vcombine.high %v1132_v36, %v1136_v59  ;;  %v1152_v10 = vld [vmem:[#allocation8 + $0xff8] sm:$0xff]  ;;  %v8301_v26 = vld [vmem:[#allocation14 + $0xc] ss:$16 sps:$4 sm:$0xff]  }
 0x387   :  { %8716 = vrsqrt.f32 %v4558_v41  ;;  %v4586_v45 = vunpack.c.l.s4 %v9085_v63  ;;  %v7829_v1 = vcombine.low %v1131_v42, %v1135_v2  ;;  %v7831_v33 = vcombine.low %v1132_v36, %v1136_v59  ;;  %v8298_v32 = vld [vmem:[#allocation14 + $0x4] ss:$16 sps:$4 sm:$0xff]   ;;  %v8305_v42 = vld [vmem:[#allocation14 + $0x28] ss:$16 sps:$4 sm:$0xff]   ;;  %v8313_v36 = vld [vmem:[#allocation14 + $0x4c] ss:$16 sps:$4 sm:$0xff]  }
 0x388   :  { %8718 = vrsqrt.f32 %v4560_v27  ;;  %v7838_v25 = vcombine.high %v1139_v9, %v1143_v43  ;;  %v7840_v19 = vcombine.high %v1140_v50, %v1144_v4  ;;  %v7837_v11 = vcombine.low %v1139_v9, %v1143_v43  ;;  %v8304_v41 = vld [vmem:[#allocation14 + $0x24] ss:$16 sps:$4 sm:$0xff]   ;;  %v8307_v27 = vld [vmem:[#allocation14 + $0x2c] ss:$16 sps:$4 sm:$0xff]   ;;  %v8308_v59 = vld [vmem:[#allocation14 + $0x40] ss:$16 sps:$4 sm:$0xff]  }
 0x389   :  { %4229 = vmatpush1.bf16.msra.mxu0 %v7813_v21  ;;  %4393 = vmatpush1.bf16.msra.mxu1 %v7815_v58  ;;  %v4587_v44 = vunpack.c.0.s8 %v4586_v45  ;;  %v7839_v5 = vcombine.low %v1140_v50, %v1144_v4  ;;  %v7846_v49 = vcombine.high %v1147_v20, %v1151_v51  ;;  %v7848_v28 = vcombine.high %v1148_v53, %v1152_v10  ;;  %v8296_v58 = vld [vmem:[#allocation14] ss:$16 sps:$4 sm:$0xff]   ;;  %v8310_v2 = vld [vmem:[#allocation14 + $0x44] ss:$16 sps:$4 sm:$0xff]   ;;  %v8317_v63 = vld [vmem:[#allocation14 + $0x68] ss:$16 sps:$4 sm:$0xff]  }
 0x38a   :  { %4230 = vmatprep.subr.bf16.mxu0 %v7822_v35  ;;  %4394 = vmatprep.subr.bf16.mxu1 %v7824_v40  ;;  %v7845_v14 = vcombine.low %v1147_v20, %v1151_v51  ;;  %v7847_v3 = vcombine.low %v1148_v53, %v1152_v10  ;;  %v8299_v35 = vld [vmem:[#allocation14 + $0x8] ss:$16 sps:$4 sm:$0xff]   ;;  %v8302_v40 = vld [vmem:[#allocation14 + $0x20] ss:$16 sps:$4 sm:$0xff]   ;;  %v8322_v45 = vld [vmem:[#allocation14 + $0x84] ss:$16 sps:$4 sm:$0xff]  }
 0x38b   :  { %v9644_v24 = vsub.s32 %v4587_v44, %v9342_v12  ;;  %v8320_v9 = vld [vmem:[#allocation14 + $0x80] ss:$16 sps:$4 sm:$0xff]   ;;  %v8323_v43 = vld [vmem:[#allocation14 + $0x88] ss:$16 sps:$4 sm:$0xff]   ;;  %v8328_v50 = vld [vmem:[#allocation14 + $0xa4] ss:$16 sps:$4 sm:$0xff]  }
 0x38c   :  { %v8331_v4 = vld [vmem:[#allocation14 + $0xac] ss:$16 sps:$4 sm:$0xff]   ;;  %v8335_v20 = vld [vmem:[#allocation14 + $0xc8] ss:$16 sps:$4 sm:$0xff]   ;;  %v8340_v51 = vld [vmem:[#allocation14 + $0xe4] ss:$16 sps:$4 sm:$0xff]  }
 0x38d   :  { %4231 = vmatpush1.bf16.msra.mxu0 %v7821_v60  ;;  %4395 = vmatpush1.bf16.msra.mxu1 %v7823_v62  ;;  %v8316_v60 = vld [vmem:[#allocation14 + $0x64] ss:$16 sps:$4 sm:$0xff]   ;;  %v8319_v62 = vld [vmem:[#allocation14 + $0x6c] ss:$16 sps:$4 sm:$0xff]   ;;  %v8338_v10 = vld [vmem:[#allocation14 + $0xe0] ss:$16 sps:$4 sm:$0xff]  }
 0x38e   :  { %4232 = vmatprep.subr.bf16.mxu0 %v7830_v31  ;;  %4396 = vmatprep.subr.bf16.mxu1 %v7832_v47  ;;  %v8314_v31 = vld [vmem:[#allocation14 + $0x60] ss:$16 sps:$4 sm:$0xff]   ;;  %v8325_v47 = vld [vmem:[#allocation14 + $0x8c] ss:$16 sps:$4 sm:$0xff]  }
 0x38f   :  { %v8713_v57 = vpop.eup %8712  ;;  %v8337_v44 = vld [vmem:[#allocation14 + $0xcc] ss:$16 sps:$4 sm:$0xff]  }
 0x390   :  { %v8715_v48 = vpop.eup %8714  ;;  %v8343_v53 = vld [vmem:[#allocation14 + $0xec] ss:$16 sps:$4 sm:$0xff]  }
 0x391   :  { %4233 = vmatpush1.bf16.msra.mxu0 %v7829_v1  ;;  %4397 = vmatpush1.bf16.msra.mxu1 %v7831_v33  ;;  %v8717_v30 = vpop.eup %8716  ;;  %v8326_v1 = vld [vmem:[#allocation14 + $0xa0] ss:$16 sps:$4 sm:$0xff]   ;;  %v8329_v33 = vld [vmem:[#allocation14 + $0xa8] ss:$16 sps:$4 sm:$0xff]  }
 0x392   :  { %4234 = vmatprep.subr.bf16.mxu0 %v7838_v25  ;;  %4398 = vmatprep.subr.bf16.mxu1 %v7840_v19  ;;  %v8719_v39 = vpop.eup %8718  ;;  %v4581_v55 = vcombine.low %v8713_v57, %v8717_v30  ;;  %v8334_v25 = vld [vmem:[#allocation14 + $0xc4] ss:$16 sps:$4 sm:$0xff]   ;;  %v8332_v19 = vld [vmem:[#allocation14 + $0xc0] ss:$16 sps:$4 sm:$0xff]   ;;  %v8355_v30 = vld [vmem:[#allocation14 + $0x12c] ss:$16 sps:$4 sm:$0xff]  }
 0x393   :  { %v4582_v54 = vcombine.low %v8715_v48, %v8719_v39  ;;  %v8346_v57 = vld [vmem:[#allocation14 + $0x104] ss:$16 sps:$4 sm:$0xff]   ;;  %v8347_v48 = vld [vmem:[#allocation14 + $0x108] ss:$16 sps:$4 sm:$0xff]   ;;  %v8350_v39 = vld [vmem:[#allocation14 + $0x120] ss:$16 sps:$4 sm:$0xff]  }
 0x394   :  { %v9647_v21 = vrot.slane %v4581_v55, %v9644_v24  ;;  %v8353_v55 = vld [vmem:[#allocation14 + $0x128] ss:$16 sps:$4 sm:$0xff]  }
 0x395   :  { %4235 = vmatpush1.bf16.msra.mxu0 %v7837_v11  ;;  %4399 = vmatpush1.bf16.msra.mxu1 %v7839_v5  ;;  %v9650_v29 = vrot.slane %v4582_v54, %v9644_v24  ;;  %v8341_v11 = vld [vmem:[#allocation14 + $0xe8] ss:$16 sps:$4 sm:$0xff]   ;;  %v8349_v5 = vld [vmem:[#allocation14 + $0x10c] ss:$16 sps:$4 sm:$0xff]  }
 0x396   :  { %4236 = vmatprep.subr.bf16.mxu0 %v7846_v49  ;;  %4400 = vmatprep.subr.bf16.mxu1 %v7848_v28  ;;  %v8344_v49 = vld [vmem:[#allocation14 + $0x100] ss:$16 sps:$4 sm:$0xff]   ;;  %v8352_v28 = vld [vmem:[#allocation14 + $0x124] ss:$16 sps:$4 sm:$0xff]   ;;  %v8361_v54 = vld [vmem:[#allocation14 + $0x14c] ss:$16 sps:$4 sm:$0xff]  }
 0x397   :  { %v4613_v12 = vcombine.low %v9647_v21, %v9650_v29 }
 0x399   :  { %4237 = vmatpush1.bf16.msra.mxu0 %v7845_v14  ;;  %4401 = vmatpush1.bf16.msra.mxu1 %v7847_v3  ;;  %v8358_v14 = vld [vmem:[#allocation14 + $0x144] ss:$16 sps:$4 sm:$0xff]   ;;  %v8356_v3 = vld [vmem:[#allocation14 + $0x140] ss:$16 sps:$4 sm:$0xff]  }
 0x39a   :  { %6387 = vmatprep.subr.bf16.mxu0 %v8298_v32  ;;  %6551 = vmatprep.subr.bf16.mxu1 %v8301_v26  ;;  %v8359_v32 = vld [vmem:[#allocation14 + $0x148] ss:$16 sps:$4 sm:$0xff]   ;;  %v8364_v26 = vld [vmem:[#allocation14 + $0x164] ss:$16 sps:$4 sm:$0xff]  }
 0x39c   :  { %4239 = vmatmul.mubr.bf16.vlgmr.msra.gmra.mrb[12].mxu0 %v9428_v61  ;;  %4403 = vmatmul.mubr.bf16.vlgmr.msra.gmra.mrb[12].mxu1 %v9428_v61  ;;  %v8311_v61 = vld [vmem:[#allocation14 + $0x48] ss:$16 sps:$4 sm:$0xff]  }
 0x39d   :  { %6388 = vmatpush1.bf16.msra.mxu0 %v8296_v58  ;;  %6552 = vmatpush1.bf16.msra.mxu1 %v8299_v35  ;;  %v8367_v58 = vld [vmem:[#allocation14 + $0x16c] ss:$16 sps:$4 sm:$0xff]   ;;  %v8362_v35 = vld [vmem:[#allocation14 + $0x160] ss:$16 sps:$4 sm:$0xff]  }
 0x39e   :  { %6389 = vmatprep.subr.bf16.mxu0 %v8304_v41  ;;  %6553 = vmatprep.subr.bf16.mxu1 %v8307_v27  ;;  %v8365_v41 = vld [vmem:[#allocation14 + $0x168] ss:$16 sps:$4 sm:$0xff]   ;;  %v8370_v27 = vld [vmem:[#allocation14 + $0x184] ss:$16 sps:$4 sm:$0xff]  }
 0x3a1   :  { %6390 = vmatpush1.bf16.msra.mxu0 %v8302_v40  ;;  %6554 = vmatpush1.bf16.msra.mxu1 %v8305_v42  ;;  %v8373_v40 = vld [vmem:[#allocation14 + $0x18c] ss:$16 sps:$4 sm:$0xff]   ;;  %v8368_v42 = vld [vmem:[#allocation14 + $0x180] ss:$16 sps:$4 sm:$0xff]  }
 0x3a2   :  { %6391 = vmatprep.subr.bf16.mxu0 %v8310_v2  ;;  %6555 = vmatprep.subr.bf16.mxu1 %v8313_v36  ;;  %v8371_v2 = vld [vmem:[#allocation14 + $0x188] ss:$16 sps:$4 sm:$0xff]   ;;  %v8376_v36 = vld [vmem:[#allocation14 + $0x1a4] ss:$16 sps:$4 sm:$0xff]  }
 0x3a5   :  { %6392 = vmatpush1.bf16.msra.mxu0 %v8308_v59  ;;  %6556 = vmatpush1.bf16.msra.mxu1 %v8311_v61  ;;  %v8374_v59 = vld [vmem:[#allocation14 + $0x1a0] ss:$16 sps:$4 sm:$0xff]   ;;  %v8377_v61 = vld [vmem:[#allocation14 + $0x1a8] ss:$16 sps:$4 sm:$0xff]  }
 0x3a6   :  { %6393 = vmatprep.subr.bf16.mxu0 %v8316_v60  ;;  %6557 = vmatprep.subr.bf16.mxu1 %v8319_v62  ;;  %v8379_v60 = vld [vmem:[#allocation14 + $0x1ac] ss:$16 sps:$4 sm:$0xff]   ;;  %v8382_v62 = vld [vmem:[#allocation14 + $0x1c4] ss:$16 sps:$4 sm:$0xff]  }
 0x3a9   :  { %6394 = vmatpush1.bf16.msra.mxu0 %v8314_v31  ;;  %6558 = vmatpush1.bf16.msra.mxu1 %v8317_v63  ;;  %v8385_v31 = vld [vmem:[#allocation14 + $0x1cc] ss:$16 sps:$4 sm:$0xff]   ;;  %v8380_v63 = vld [vmem:[#allocation14 + $0x1c0] ss:$16 sps:$4 sm:$0xff]  }
 0x3aa   :  { %6395 = vmatprep.subr.bf16.mxu0 %v8322_v45  ;;  %6559 = vmatprep.subr.bf16.mxu1 %v8325_v47  ;;  %v8383_v45 = vld [vmem:[#allocation14 + $0x1c8] ss:$16 sps:$4 sm:$0xff]   ;;  %v8388_v47 = vld [vmem:[#allocation14 + $0x1e4] ss:$16 sps:$4 sm:$0xff]  }
 0x3ad   :  { %6396 = vmatpush1.bf16.msra.mxu0 %v8320_v9  ;;  %6560 = vmatpush1.bf16.msra.mxu1 %v8323_v43  ;;  %v8391_v9 = vld [vmem:[#allocation14 + $0x1ec] ss:$16 sps:$4 sm:$0xff]   ;;  %v8386_v43 = vld [vmem:[#allocation14 + $0x1e0] ss:$16 sps:$4 sm:$0xff]  }
 0x3ae   :  { %6397 = vmatprep.subr.bf16.mxu0 %v8328_v50  ;;  %6561 = vmatprep.subr.bf16.mxu1 %v8331_v4  ;;  %v8389_v50 = vld [vmem:[#allocation14 + $0x1e8] ss:$16 sps:$4 sm:$0xff]   ;;  %v8394_v4 = vld [vmem:[#allocation14 + $0x204] ss:$16 sps:$4 sm:$0xff]  }
 0x3b1   :  { %6398 = vmatpush1.bf16.msra.mxu0 %v8326_v1  ;;  %6562 = vmatpush1.bf16.msra.mxu1 %v8329_v33  ;;  %v8397_v1 = vld [vmem:[#allocation14 + $0x20c] ss:$16 sps:$4 sm:$0xff]   ;;  %v1174_v33 = vrot.slane %v9446_v0, %v9404_v18 }
 0x3b2   :  { %6399 = vmatprep.subr.bf16.mxu0 %v8334_v25  ;;  %6563 = vmatprep.subr.bf16.mxu1 %v8337_v44  ;;  %v1182_v25 = vrot.slane %v9446_v0, %v9424_v6  ;;  %v1178_v44 = vrot.slane %v9446_v0, %v9387_v38 }
 0x3b5   :  { %6400 = vmatpush1.bf16.msra.mxu0 %v8332_v19  ;;  %6564 = vmatpush1.bf16.msra.mxu1 %v8335_v20  ;;  %v1186_v19 = vrot.slane %v9446_v0, %v9407_v22 }
 0x3b6   :  { %6401 = vmatprep.subr.bf16.mxu0 %v8340_v51  ;;  %6565 = vmatprep.subr.bf16.mxu1 %v8343_v53 }
 0x3b9   :  { %6402 = vmatpush1.bf16.msra.mxu0 %v8338_v10  ;;  %6566 = vmatpush1.bf16.msra.mxu1 %v8341_v11 }
 0x3ba   :  { %6403 = vmatprep.subr.bf16.mxu0 %v8346_v57  ;;  %6567 = vmatprep.subr.bf16.mxu1 %v8349_v5 }
 0x3bd   :  { %6404 = vmatpush1.bf16.msra.mxu0 %v8344_v49  ;;  %6568 = vmatpush1.bf16.msra.mxu1 %v8347_v48 }
 0x3be   :  { %6405 = vmatprep.subr.bf16.mxu0 %v8352_v28  ;;  %6569 = vmatprep.subr.bf16.mxu1 %v8355_v30 }
 0x3c1   :  { %6406 = vmatpush1.bf16.msra.mxu0 %v8350_v39  ;;  %6570 = vmatpush1.bf16.msra.mxu1 %v8353_v55 }
 0x3c2   :  { %6407 = vmatprep.subr.bf16.mxu0 %v8358_v14  ;;  %6571 = vmatprep.subr.bf16.mxu1 %v8361_v54 }
 0x3c5   :  { %6408 = vmatpush1.bf16.msra.mxu0 %v8356_v3  ;;  %6572 = vmatpush1.bf16.msra.mxu1 %v8359_v32 }
 0x3c6   :  { %6409 = vmatprep.subr.bf16.mxu0 %v8364_v26  ;;  %6573 = vmatprep.subr.bf16.mxu1 %v8367_v58 }
 0x3c9   :  { %6410 = vmatpush1.bf16.msra.mxu0 %v8362_v35  ;;  %6574 = vmatpush1.bf16.msra.mxu1 %v8365_v41 }
 0x3ca   :  { %6411 = vmatprep.subr.bf16.mxu0 %v8370_v27  ;;  %6575 = vmatprep.subr.bf16.mxu1 %v8373_v40 }
 0x3cd   :  { %6412 = vmatpush1.bf16.msra.mxu0 %v8368_v42  ;;  %6576 = vmatpush1.bf16.msra.mxu1 %v8371_v2 }
 0x3ce   :  { %6413 = vmatprep.subr.bf16.mxu0 %v8376_v36  ;;  %6577 = vmatprep.subr.bf16.mxu1 %v8379_v60 }
 0x3d1   :  { %6414 = vmatpush1.bf16.msra.mxu0 %v8374_v59  ;;  %6578 = vmatpush1.bf16.msra.mxu1 %v8377_v61 }
 0x3d2   :  { %6415 = vmatprep.subr.bf16.mxu0 %v8382_v62  ;;  %6579 = vmatprep.subr.bf16.mxu1 %v8385_v31 }
 0x3d5   :  { %6416 = vmatpush1.bf16.msra.mxu0 %v8380_v63  ;;  %6580 = vmatpush1.bf16.msra.mxu1 %v8383_v45 }
 0x3d6   :  { %6417 = vmatprep.subr.bf16.mxu0 %v8388_v47  ;;  %6581 = vmatprep.subr.bf16.mxu1 %v8391_v9 }
 0x3d9   :  { %6418 = vmatpush1.bf16.msra.mxu0 %v8386_v43  ;;  %6582 = vmatpush1.bf16.msra.mxu1 %v8389_v50 }
 0x3da   :  { %6428 = vmatprep.subr.bf16.mxu0 %v8394_v4  ;;  %6592 = vmatprep.subr.bf16.mxu1 %v8397_v1 }
 0x46f   :  { %v4240_v20 = vpop.f32.mrb[12].mxu0  ;;  %v4404_v53 = vpop.f32.mrb[12].mxu1 }
 0x470   :  { %v9664_v51 = vadd.f32 %v4240_v20, %v1174_v33  ;;  %v4242_v10 = vpop.f32.mrb[13].mxu0  ;;  %v9666_v11 = vadd.f32 %v4404_v53, %v1182_v25  ;;  %v4406_v5 = vpop.f32.mrb[13].mxu1 }
 0x471   :  { %v9668_v57 = vadd.f32 %v4242_v10, %v1178_v44  ;;  %v4244_v49 = vpop.f32.mrb[14].mxu0  ;;  %v9673_v30 = vadd.f32 %v4406_v5, %v1186_v19  ;;  %v4408_v39 = vpop.f32.mrb[14].mxu1 }
 0x472   :  { %v4437_v48 = vrot.slane %v9664_v51, 4  ;;  %v4473_v28 = vmul.f32 %v9664_v51, %v9664_v51  ;;  %v4245_v0 = vpop.f32.mrb[15].mxu0  ;;  %v4449_v55 = vrot.slane %v9666_v11, 4  ;;  %v4475_v14 = vmul.f32 %v9666_v11, %v9666_v11  ;;  %v4409_v32 = vpop.f32.mrb[15].mxu1 }
 0x473   :  { %v4443_v54 = vrot.slane %v9668_v57, 4  ;;  %v4474_v3 = vmul.f32 %v9668_v57, %v9668_v57  ;;  %v4455_v35 = vrot.slane %v9673_v30, 4  ;;  %v4476_v41 = vmul.f32 %v9673_v30, %v9673_v30 }
 0x474   :  { %v4438_v26 = vadd.f32 %v9664_v51, %v4437_v48  ;;  %v4501_v58 = vrot.slane %v4473_v28, 4  ;;  %v4450_v27 = vadd.f32 %v9666_v11, %v4449_v55  ;;  %v4513_v40 = vrot.slane %v4475_v14, 4 }
 0x475   :  { %v4444_v42 = vadd.f32 %v9668_v57, %v4443_v54  ;;  %v4507_v2 = vrot.slane %v4474_v3, 4  ;;  %v4456_v61 = vadd.f32 %v9673_v30, %v4455_v35  ;;  %v4519_v60 = vrot.slane %v4476_v41, 4 }
 0x476   :  { %v4439_v36 = vrot.slane %v4438_v26, 2  ;;  %v4502_v59 = vadd.f32 %v4501_v58, %v4473_v28  ;;  %v4451_v62 = vrot.slane %v4450_v27, 2  ;;  %v4514_v31 = vadd.f32 %v4513_v40, %v4475_v14 }
 0x477   :  { %v4445_v63 = vrot.slane %v4444_v42, 2  ;;  %v4508_v45 = vadd.f32 %v4507_v2, %v4474_v3  ;;  %v4457_v43 = vrot.slane %v4456_v61, 2  ;;  %v4520_v50 = vadd.f32 %v4519_v60, %v4476_v41 }
 0x478   :  { %v4440_v47 = vadd.f32 %v4439_v36, %v4438_v26  ;;  %v4503_v9 = vrot.slane %v4502_v59, 2  ;;  %v4452_v4 = vadd.f32 %v4451_v62, %v4450_v27  ;;  %v4515_v1 = vrot.slane %v4514_v31, 2 }
 0x479   :  { %v4446_v33 = vadd.f32 %v4445_v63, %v4444_v42  ;;  %v4509_v25 = vrot.slane %v4508_v45, 2  ;;  %v4458_v20 = vadd.f32 %v4457_v43, %v4456_v61  ;;  %v4521_v53 = vrot.slane %v4520_v50, 2 }
 0x47a   :  { %v4441_v44 = vrot.slane %v4440_v47, 1  ;;  %v4504_v19 = vadd.f32 %v4503_v9, %v4502_v59  ;;  %v4453_v10 = vrot.slane %v4452_v4, 1  ;;  %v4516_v5 = vadd.f32 %v4515_v1, %v4514_v31 }
 0x47b   :  { %v4447_v49 = vrot.slane %v4446_v33, 1  ;;  %v4510_v48 = vadd.f32 %v4509_v25, %v4508_v45  ;;  %v4459_v0 = vrot.slane %v4458_v20, 1  ;;  %v4522_v55 = vadd.f32 %v4521_v53, %v4520_v50 }
 0x47c   :  { %v4442_v28 = vadd.f32 %v4441_v44, %v4440_v47  ;;  %v4505_v39 = vrot.slane %v4504_v19, 1  ;;  %v4454_v14 = vadd.f32 %v4453_v10, %v4452_v4  ;;  %v4517_v54 = vrot.slane %v4516_v5, 1 }
 0x47d   :  { %v4448_v3 = vadd.f32 %v4447_v49, %v4446_v33  ;;  %v4511_v32 = vrot.slane %v4510_v48, 1  ;;  %v4460_v35 = vadd.f32 %v4459_v0, %v4458_v20  ;;  %v4523_v41 = vrot.slane %v4522_v55, 1 }
 0x47e   :  { %v4465_v26 = vmul.f32 0.125, %v4442_v28  ;;  %v4506_v58 = vadd.f32 %v4505_v39, %v4504_v19  ;;  %v4467_v27 = vmul.f32 0.125, %v4454_v14  ;;  %v4518_v40 = vadd.f32 %v4517_v54, %v4516_v5 }
 0x47f   :  { %v4466_v42 = vmul.f32 0.125, %v4448_v3  ;;  %v4512_v2 = vadd.f32 %v4511_v32, %v4510_v48  ;;  %v4468_v61 = vmul.f32 0.125, %v4460_v35  ;;  %v4524_v60 = vadd.f32 %v4523_v41, %v4522_v55  ;;  %v4411_v35 = vld [vmem:[#allocation11] sm:$0xff] }
 0x480   :  { %v4529_v36 = vmul.f32 0.125, %v4506_v58  ;;  %v4537_v59 = vmul.f32 %v4465_v26, %v4465_v26  ;;  %v4531_v62 = vmul.f32 0.125, %v4518_v40  ;;  %v4539_v31 = vmul.f32 %v4467_v27, %v4467_v27 }
 0x481   :  { %v4530_v63 = vmul.f32 0.125, %v4512_v2  ;;  %v4538_v45 = vmul.f32 %v4466_v42, %v4466_v42  ;;  %v4532_v9 = vmul.f32 0.125, %v4524_v60  ;;  %v4540_v43 = vmul.f32 %v4468_v61, %v4468_v61 }
 0x482   :  { %v4545_v47 = vsub.f32 %v4529_v36, %v4537_v59  ;;  %v4547_v50 = vsub.f32 %v4531_v62, %v4539_v31  ;;  %v4621_v32 = vrot.slane %v4613_v12, %v9644_v24 }
 0x483   :  { %v4546_v4 = vsub.f32 %v4530_v63, %v4538_v45  ;;  %v4548_v33 = vsub.f32 %v4532_v9, %v4540_v43 }
 0x484   :  { %v4553_v1 = vmax.f32 %v4545_v47, 0.0  ;;  %v4555_v25 = vmax.f32 %v4547_v50, 0.0 }
 0x485   :  { %v4554_v44 = vmax.f32 %v4546_v4, 0.0  ;;  %v4556_v20 = vmax.f32 %v4548_v33, 0.0 }
 0x486   :  { %v4561_v19 = vadd.f32 1e-05, %v4553_v1  ;;  %v4563_v53 = vadd.f32 1e-05, %v4555_v25 }
 0x487   :  { %v4562_v10 = vadd.f32 1e-05, %v4554_v44  ;;  %v4564_v5 = vadd.f32 1e-05, %v4556_v20 }
 0x488   :  { %8720 = vrsqrt.f32 %v4561_v19 }
 0x489   :  { %8722 = vrsqrt.f32 %v4563_v53 }
 0x48a   :  { %8724 = vrsqrt.f32 %v4562_v10  ;;  %v4412_v10 = vld [vmem:[#allocation13] sm:$0xff] }
 0x48b   :  { %8726 = vrsqrt.f32 %v4564_v5 }
 0x492   :  { %v8721_v49 = vpop.eup %8720 }
 0x493   :  { %v8723_v48 = vpop.eup %8722 }
 0x494   :  { %v8725_v28 = vpop.eup %8724 }
 0x495   :  { %v8727_v39 = vpop.eup %8726  ;;  %v4583_v0 = vcombine.low %v8721_v49, %v8725_v28 }
 0x496   :  { %v4584_v55 = vcombine.low %v8723_v48, %v8727_v39 }
 0x497   :  { %v4605_v14 = vrot.slane %v4583_v0, %v9644_v24 }
 0x498   :  { %v4612_v54 = vrot.slane %v4584_v55, %v9644_v24 }
 0x49a   :  { %v4614_v3 = vcombine.low %v4605_v14, %v4612_v54 }
 0x49c   :  { %v4628_v58 = vrot.slane %v4614_v3, %v9644_v24 }
 0x49e   :  { %v4629_v41 = vcombine.low %v4621_v32, %v4628_v58 }
 0x4a0   :  { %v4631_v40 = vmul.f32 %v4629_v41, %v4411_v35 }
 0x4a2   :  { %v4652_v2 = vrot.slane %v4631_v40, %v9404_v18  ;;  %v4656_v36 = vrot.slane %v4631_v40, %v9387_v38  ;;  %v4660_v59 = vrot.slane %v4631_v40, %v9424_v6  ;;  %v4664_v60 = vrot.slane %v4631_v40, %v9407_v22 }
 0x4a3   :  { %v4636_v62 = vrot.slane %v4631_v40, %v9345_v13  ;;  %v4640_v31 = vrot.slane %v4631_v40, %v9350_v15  ;;  %v4644_v21 = vrot.slane %v4631_v40, %v9384_v34  ;;  %v4648_v29 = vrot.slane %v4631_v40, %v9355_v17 }
 0x4a4   :  { %v4677_v12 = vmul.f32 %v4652_v2, %v4465_v26  ;;  %v4678_v63 = vmul.f32 %v4656_v36, %v4466_v42  ;;  %v4679_v45 = vmul.f32 %v4660_v59, %v4467_v27  ;;  %v4680_v47 = vmul.f32 %v4664_v60, %v4468_v61 }
 0x4a5   :  { %v4747_v9 = vmul.f32 %v9673_v30, %v4664_v60  ;;  %v4673_v43 = vmul.f32 %v4636_v62, %v9600_v56  ;;  %v4674_v50 = vmul.f32 %v4640_v31, %v9610_v46  ;;  %v4675_v4 = vmul.f32 %v4644_v21, %v9602_v37  ;;  %v8395_v60 = vld [vmem:[#allocation14 + $0x208] ss:$16 sps:$4 sm:$0xff]  }
 0x4a6   :  { %v4691_v1 = vcombine.low %v4677_v12, %v4678_v63  ;;  %v4692_v33 = vcombine.low %v4679_v45, %v4680_v47  ;;  %v4676_v25 = vmul.f32 %v4648_v29, %v9612_v52  ;;  %v4741_v44 = vmul.f32 %v9552_v16, %v4640_v31  ;;  %v8398_v63 = vld [vmem:[#allocation14 + $0x220] ss:$16 sps:$4 sm:$0xff]   ;;  %v8401_v45 = vld [vmem:[#allocation14 + $0x228] ss:$16 sps:$4 sm:$0xff]   ;;  %v8406_v47 = vld [vmem:[#allocation14 + $0x244] ss:$16 sps:$4 sm:$0xff]  }
 0x4a7   :  { %v4689_v19 = vcombine.low %v4673_v43, %v4674_v50  ;;  %v4740_v26 = vmul.f32 %v9544_v7, %v4636_v62  ;;  %v4743_v27 = vmul.f32 %v9554_v23, %v4648_v29  ;;  %v4745_v46 = vmul.f32 %v9668_v57, %v4656_v36  ;;  %v8403_v29 = vld [vmem:[#allocation14 + $0x22c] ss:$16 sps:$4 sm:$0xff]   ;;  %v8404_v43 = vld [vmem:[#allocation14 + $0x240] ss:$16 sps:$4 sm:$0xff]   ;;  %v8407_v50 = vld [vmem:[#allocation14 + $0x248] ss:$16 sps:$4 sm:$0xff]  }
 0x4a8   :  { %v4713_v42 = vrot.slane %v4691_v1, %v9644_v24  ;;  %v4720_v30 = vrot.slane %v4692_v33, %v9644_v24  ;;  %v4690_v56 = vcombine.low %v4675_v4, %v4676_v25  ;;  %v4744_v61 = vmul.f32 %v9664_v51, %v4652_v2  ;;  %v8412_v4 = vld [vmem:[#allocation14 + $0x264] ss:$16 sps:$4 sm:$0xff]   ;;  %v8415_v1 = vld [vmem:[#allocation14 + $0x26c] ss:$16 sps:$4 sm:$0xff]   ;;  %v8410_v33 = vld [vmem:[#allocation14 + $0x260] ss:$16 sps:$4 sm:$0xff]  }
 0x4a9   :  { %v4699_v37 = vrot.slane %v4689_v19, %v9644_v24  ;;  %v4746_v52 = vmul.f32 %v9666_v11, %v4660_v59  ;;  %v4742_v48 = vmul.f32 %v9546_v8, %v4644_v21  ;;  %v8392_v59 = vld [vmem:[#allocation14 + $0x200] ss:$16 sps:$4 sm:$0xff]   ;;  %v8400_v21 = vld [vmem:[#allocation14 + $0x224] ss:$16 sps:$4 sm:$0xff]   ;;  %v8413_v25 = vld [vmem:[#allocation14 + $0x268] ss:$16 sps:$4 sm:$0xff]  }
 0x4aa   :  { %v4722_v20 = vcombine.low %v4713_v42, %v4720_v30  ;;  %v4706_v16 = vrot.slane %v4690_v56, %v9644_v24  ;;  %v8421_v19 = vld [vmem:[#allocation14 + $0x28c] ss:$16 sps:$4 sm:$0xff]   ;;  %v8424_v42 = vld [vmem:[#allocation14 + $0x2a4] ss:$16 sps:$4 sm:$0xff]   ;;  %v8422_v56 = vld [vmem:[#allocation14 + $0x2a0] ss:$16 sps:$4 sm:$0xff]  }
 0x4ab   :  { %v8427_v30 = vld [vmem:[#allocation14 + $0x2ac] ss:$16 sps:$4 sm:$0xff]  }
 0x4ac   :  { %v4736_v7 = vrot.slane %v4722_v20, %v9644_v24  ;;  %v4721_v53 = vcombine.low %v4699_v37, %v4706_v16  ;;  %v8430_v37 = vld [vmem:[#allocation14 + $0x2c4] ss:$16 sps:$4 sm:$0xff]   ;;  %v8431_v20 = vld [vmem:[#allocation14 + $0x2c8] ss:$16 sps:$4 sm:$0xff]  }
 0x4ad   :  { %v8436_v16 = vld [vmem:[#allocation14 + $0x2e4] ss:$16 sps:$4 sm:$0xff]  }
 0x4ae   :  { %v4729_v23 = vrot.slane %v4721_v53, %v9644_v24  ;;  %v8434_v53 = vld [vmem:[#allocation14 + $0x2e0] ss:$16 sps:$4 sm:$0xff]  }
 0x4b0   :  { %v4737_v5 = vcombine.low %v4729_v23, %v4736_v7  ;;  %v8439_v7 = vld [vmem:[#allocation14 + $0x2ec] ss:$16 sps:$4 sm:$0xff]   ;;  %v8437_v23 = vld [vmem:[#allocation14 + $0x2e8] ss:$16 sps:$4 sm:$0xff]  }
 0x4b2   :  { %v4739_v49 = vsub.f32 %v4412_v10, %v4737_v5  ;;  %v8442_v10 = vld [vmem:[#allocation14 + $0x304] ss:$16 sps:$4 sm:$0xff]   ;;  %v8445_v5 = vld [vmem:[#allocation14 + $0x30c] ss:$16 sps:$4 sm:$0xff]  }
 0x4b4   :  { %v4756_v57 = vrot.slane %v4739_v49, %v9350_v15  ;;  %v4752_v28 = vrot.slane %v4739_v49, %v9345_v13  ;;  %v4764_v51 = vrot.slane %v4739_v49, %v9355_v17  ;;  %v4760_v11 = vrot.slane %v4739_v49, %v9384_v34 }
 0x4b5   :  { %v4772_v39 = vrot.slane %v4739_v49, %v9387_v38  ;;  %v4768_v0 = vrot.slane %v4739_v49, %v9404_v18  ;;  %v4780_v55 = vrot.slane %v4739_v49, %v9407_v22  ;;  %v4776_v14 = vrot.slane %v4739_v49, %v9424_v6  ;;  %v8440_v49 = vld [vmem:[#allocation14 + $0x300] ss:$16 sps:$4 sm:$0xff]  }
 0x4b6   :  { %v4790_v54 = vadd.f32 %v4756_v57, %v4741_v44  ;;  %v4789_v3 = vadd.f32 %v4752_v28, %v4740_v26  ;;  %v4792_v32 = vadd.f32 %v4764_v51, %v4743_v27  ;;  %v9729_v8 = vadd.f32 %v4760_v11, %v4742_v48  ;;  %v8418_v44 = vld [vmem:[#allocation14 + $0x284] ss:$16 sps:$4 sm:$0xff]   ;;  %v8416_v26 = vld [vmem:[#allocation14 + $0x280] ss:$16 sps:$4 sm:$0xff]   ;;  %v8419_v27 = vld [vmem:[#allocation14 + $0x288] ss:$16 sps:$4 sm:$0xff]  }
 0x4b7   :  { %v9731_v58 = vadd.f32 %v4772_v39, %v4745_v46  ;;  %v9733_v35 = vadd.f32 %v4768_v0, %v4744_v61  ;;  %v9735_v41 = vadd.f32 %v4780_v55, %v4747_v9  ;;  %v9737_v40 = vadd.f32 %v4776_v14, %v4746_v52  ;;  %v8409_v9 = vld [vmem:[#allocation14 + $0x24c] ss:$16 sps:$4 sm:$0xff]   ;;  %v8425_v46 = vld [vmem:[#allocation14 + $0x2a8] ss:$16 sps:$4 sm:$0xff]   ;;  %v8428_v52 = vld [vmem:[#allocation14 + $0x2c0] ss:$16 sps:$4 sm:$0xff]  }
 0x4b8   :  { %vm4798_vm10 = vcmp.gt.f32.partialorder %v4790_v54, 0.0  ;;  %v4806_v38 = vmul.f32 0.2, %v4790_v54  ;;  %vm4797_vm11 = vcmp.gt.f32.partialorder %v4789_v3, 0.0  ;;  %v4805_v18 = vmul.f32 0.2, %v4789_v3 }
 0x4b9   :  { %vm4800_vm12 = vcmp.gt.f32.partialorder %v4792_v32, 0.0  ;;  %v4808_v22 = vmul.f32 0.2, %v4792_v32  ;;  %v8433_v61 = vld [vmem:[#allocation14 + $0x2cc] ss:$16 sps:$4 sm:$0xff]   ;;  %vm4799_vm13 = vcmp.gt.f32.partialorder %v9729_v8, 0.0 }
 0x4ba   :  { %v4814_v6 = vsel %vm4798_vm10, %v4790_v54, %v4806_v38  ;;  %v4813_v2 = vsel %vm4797_vm11, %v4789_v3, %v4805_v18  ;;  %v8443_v48 = vld [vmem:[#allocation14 + $0x308] ss:$16 sps:$4 sm:$0xff]   ;;  %v8448_v57 = vld [vmem:[#allocation14 + $0x324] ss:$16 sps:$4 sm:$0xff]   ;;  %v8451_v28 = vld [vmem:[#allocation14 + $0x32c] ss:$16 sps:$4 sm:$0xff]  }
 0x4bb   :  { %v4822_v36 = vpack.c.bf16 %v4814_v6, %v4814_v6  ;;  %v4821_v62 = vpack.c.bf16 %v4813_v2, %v4813_v2  ;;  %v4816_v31 = vsel %vm4800_vm12, %v4792_v32, %v4808_v22  ;;  %v8446_v51 = vld [vmem:[#allocation14 + $0x320] ss:$16 sps:$4 sm:$0xff]   ;;  %v8449_v11 = vld [vmem:[#allocation14 + $0x328] ss:$16 sps:$4 sm:$0xff]   ;;  %v8454_v39 = vld [vmem:[#allocation14 + $0x344] ss:$16 sps:$4 sm:$0xff]  }
 0x4bc   :  { %v4824_v12 = vpack.c.bf16 %v4816_v31, %v4816_v31  ;;  %v8457_v0 = vld [vmem:[#allocation14 + $0x34c] ss:$16 sps:$4 sm:$0xff]   ;;  %v8452_v55 = vld [vmem:[#allocation14 + $0x340] ss:$16 sps:$4 sm:$0xff]   ;;  %v8455_v14 = vld [vmem:[#allocation14 + $0x348] ss:$16 sps:$4 sm:$0xff]  }
 0x4bd   :  { %6419 = vmatprep.mubr.bf16.mxu0 %v4822_v36  ;;  %6583 = vmatprep.mubr.bf16.mxu1 %v4822_v36  ;;  %v8460_v54 = vld [vmem:[#allocation14 + $0x364] ss:$16 sps:$4 sm:$0xff]   ;;  %v8463_v3 = vld [vmem:[#allocation14 + $0x36c] ss:$16 sps:$4 sm:$0xff]   ;;  %v8458_v32 = vld [vmem:[#allocation14 + $0x360] ss:$16 sps:$4 sm:$0xff]  }
 0x4be   :  { %6420 = vmatmul.mubr.bf16.vlgmr.msra.gmra.mrb[16].mxu0 %v4821_v62  ;;  %6584 = vmatmul.mubr.bf16.vlgmr.msra.gmra.mrb[16].mxu1 %v4821_v62  ;;  %v8461_v38 = vld [vmem:[#allocation14 + $0x368] ss:$16 sps:$4 sm:$0xff]   ;;  %v8466_v18 = vld [vmem:[#allocation14 + $0x384] ss:$16 sps:$4 sm:$0xff]   ;;  %v8469_v22 = vld [vmem:[#allocation14 + $0x38c] ss:$16 sps:$4 sm:$0xff]  }
 0x4bf   :  { %6429 = vmatpush1.bf16.msra.mxu0 %v8392_v59  ;;  %6593 = vmatpush1.bf16.msra.mxu1 %v8395_v60  ;;  %v8464_v6 = vld [vmem:[#allocation14 + $0x380] ss:$16 sps:$4 sm:$0xff]   ;;  %v8467_v2 = vld [vmem:[#allocation14 + $0x388] ss:$16 sps:$4 sm:$0xff]   ;;  %v8472_v36 = vld [vmem:[#allocation14 + $0x3a4] ss:$16 sps:$4 sm:$0xff]  }
 0x4c0   :  { %6460 = vmatprep.mubr.bf16.mxu0 %v4824_v12  ;;  %6624 = vmatprep.mubr.bf16.mxu1 %v4824_v12  ;;  %v8475_v59 = vld [vmem:[#allocation14 + $0x3ac] ss:$16 sps:$4 sm:$0xff]   ;;  %v8470_v60 = vld [vmem:[#allocation14 + $0x3a0] ss:$16 sps:$4 sm:$0xff]   ;;  %v8473_v62 = vld [vmem:[#allocation14 + $0x3a8] ss:$16 sps:$4 sm:$0xff]  }
 0x4c1   :  { %6430 = vmatprep.subr.bf16.mxu0 %v8400_v21  ;;  %6594 = vmatprep.subr.bf16.mxu1 %v8403_v29  ;;  %v8478_v31 = vld [vmem:[#allocation14 + $0x3c4] ss:$16 sps:$4 sm:$0xff]   ;;  %v8481_v21 = vld [vmem:[#allocation14 + $0x3cc] ss:$16 sps:$4 sm:$0xff]   ;;  %v8476_v29 = vld [vmem:[#allocation14 + $0x3c0] ss:$16 sps:$4 sm:$0xff]  }
 0x4c2   :  { %v8479_v12 = vld [vmem:[#allocation14 + $0x3c8] ss:$16 sps:$4 sm:$0xff]   ;;  %vm4802_vm14 = vcmp.gt.f32.partialorder %v9731_v58, 0.0  ;;  %vm4801_vm15 = vcmp.gt.f32.partialorder %v9733_v35, 0.0  ;;  %vm4804_vm0 = vcmp.gt.f32.partialorder %v9735_v41, 0.0  ;;  %vm4803_vm1 = vcmp.gt.f32.partialorder %v9737_v40, 0.0 }
 0x4c3   :  { %6431 = vmatpush1.bf16.msra.mxu0 %v8398_v63  ;;  %6595 = vmatpush1.bf16.msra.mxu1 %v8401_v45  ;;  %v8484_v63 = vld [vmem:[#allocation14 + $0x3e4] ss:$16 sps:$4 sm:$0xff]   ;;  %v8487_v45 = vld [vmem:[#allocation14 + $0x3ec] ss:$16 sps:$4 sm:$0xff]  }
 0x4c4   :  { %6432 = vmatprep.subr.bf16.mxu0 %v8406_v47  ;;  %6596 = vmatprep.subr.bf16.mxu1 %v8409_v9  ;;  %v4807_v47 = vmul.f32 0.2, %v9729_v8  ;;  %v4810_v9 = vmul.f32 0.2, %v9731_v58 }
 0x4c7   :  { %6433 = vmatpush1.bf16.msra.mxu0 %v8404_v43  ;;  %6597 = vmatpush1.bf16.msra.mxu1 %v8407_v50  ;;  %v8482_v43 = vld [vmem:[#allocation14 + $0x3e0] ss:$16 sps:$4 sm:$0xff]   ;;  %v8485_v50 = vld [vmem:[#allocation14 + $0x3e8] ss:$16 sps:$4 sm:$0xff]  }
 0x4c8   :  { %6434 = vmatprep.subr.bf16.mxu0 %v8412_v4  ;;  %6598 = vmatprep.subr.bf16.mxu1 %v8415_v1  ;;  %v8490_v4 = vld [vmem:[#allocation14 + $0x404] ss:$16 sps:$4 sm:$0xff]   ;;  %v8493_v1 = vld [vmem:[#allocation14 + $0x40c] ss:$16 sps:$4 sm:$0xff]  }
 0x4cb   :  { %6435 = vmatpush1.bf16.msra.mxu0 %v8410_v33  ;;  %6599 = vmatpush1.bf16.msra.mxu1 %v8413_v25  ;;  %v4815_v33 = vsel %vm4799_vm13, %v9729_v8, %v4807_v47  ;;  %v4818_v25 = vsel %vm4802_vm14, %v9731_v58, %v4810_v9  ;;  %v8497_v8 = vld [vmem:[#allocation14 + $0x428] ss:$16 sps:$4 sm:$0xff]   ;;  %v8505_v58 = vld [vmem:[#allocation14 + $0x44c] ss:$16 sps:$4 sm:$0xff]   ;;  %v8562_v47 = vld [vmem:[#allocation14 + $0x584] ss:$16 sps:$4 sm:$0xff]  }
 0x4cc   :  { %6436 = vmatprep.subr.bf16.mxu0 %v8418_v44  ;;  %6600 = vmatprep.subr.bf16.mxu1 %v8421_v19  ;;  %v8488_v44 = vld [vmem:[#allocation14 + $0x400] ss:$16 sps:$4 sm:$0xff]   ;;  %v4823_v19 = vpack.c.bf16 %v4815_v33, %v4815_v33  ;;  %v8565_v9 = vld [vmem:[#allocation14 + $0x58c] ss:$16 sps:$4 sm:$0xff]  }
 0x4cd   :  { %v8566_v33 = vld [vmem:[#allocation14 + $0x5a0] ss:$16 sps:$4 sm:$0xff]  }
 0x4cf   :  { %6437 = vmatpush1.bf16.msra.mxu0 %v8416_v26  ;;  %6601 = vmatpush1.bf16.msra.mxu1 %v8419_v27  ;;  %v8491_v26 = vld [vmem:[#allocation14 + $0x408] ss:$16 sps:$4 sm:$0xff]   ;;  %v4826_v27 = vpack.c.bf16 %v4818_v25, %v4818_v25 }
 0x4d0   :  { %6438 = vmatprep.subr.bf16.mxu0 %v8424_v42  ;;  %6602 = vmatprep.subr.bf16.mxu1 %v8427_v30  ;;  %v8496_v42 = vld [vmem:[#allocation14 + $0x424] ss:$16 sps:$4 sm:$0xff]   ;;  %v8499_v30 = vld [vmem:[#allocation14 + $0x42c] ss:$16 sps:$4 sm:$0xff]   ;;  %v8569_v25 = vld [vmem:[#allocation14 + $0x5a8] ss:$16 sps:$4 sm:$0xff]  }
 0x4d3   :  { %6439 = vmatpush1.bf16.msra.mxu0 %v8422_v56  ;;  %6603 = vmatpush1.bf16.msra.mxu1 %v8425_v46  ;;  %v8494_v56 = vld [vmem:[#allocation14 + $0x420] ss:$16 sps:$4 sm:$0xff]   ;;  %v8502_v46 = vld [vmem:[#allocation14 + $0x444] ss:$16 sps:$4 sm:$0xff]  }
 0x4d4   :  { %6440 = vmatprep.subr.bf16.mxu0 %v8430_v37  ;;  %6604 = vmatprep.subr.bf16.mxu1 %v8433_v61  ;;  %v8500_v37 = vld [vmem:[#allocation14 + $0x440] ss:$16 sps:$4 sm:$0xff]   ;;  %v8503_v61 = vld [vmem:[#allocation14 + $0x448] ss:$16 sps:$4 sm:$0xff]  }
 0x4d7   :  { %6441 = vmatpush1.bf16.msra.mxu0 %v8428_v52  ;;  %6605 = vmatpush1.bf16.msra.mxu1 %v8431_v20  ;;  %v8508_v52 = vld [vmem:[#allocation14 + $0x464] ss:$16 sps:$4 sm:$0xff]   ;;  %v8511_v20 = vld [vmem:[#allocation14 + $0x46c] ss:$16 sps:$4 sm:$0xff]  }
 0x4d8   :  { %6442 = vmatprep.subr.bf16.mxu0 %v8436_v16  ;;  %6606 = vmatprep.subr.bf16.mxu1 %v8439_v7  ;;  %v8506_v16 = vld [vmem:[#allocation14 + $0x460] ss:$16 sps:$4 sm:$0xff]   ;;  %v8509_v7 = vld [vmem:[#allocation14 + $0x468] ss:$16 sps:$4 sm:$0xff]  }
 0x4db   :  { %6443 = vmatpush1.bf16.msra.mxu0 %v8434_v53  ;;  %6607 = vmatpush1.bf16.msra.mxu1 %v8437_v23  ;;  %v8514_v53 = vld [vmem:[#allocation14 + $0x484] ss:$16 sps:$4 sm:$0xff]   ;;  %v8517_v23 = vld [vmem:[#allocation14 + $0x48c] ss:$16 sps:$4 sm:$0xff]  }
 0x4dc   :  { %6444 = vmatprep.subr.bf16.mxu0 %v8442_v10  ;;  %6608 = vmatprep.subr.bf16.mxu1 %v8445_v5  ;;  %v8512_v10 = vld [vmem:[#allocation14 + $0x480] ss:$16 sps:$4 sm:$0xff]   ;;  %v8515_v5 = vld [vmem:[#allocation14 + $0x488] ss:$16 sps:$4 sm:$0xff]  }
 0x4df   :  { %6445 = vmatpush1.bf16.msra.mxu0 %v8440_v49  ;;  %6609 = vmatpush1.bf16.msra.mxu1 %v8443_v48  ;;  %v8520_v49 = vld [vmem:[#allocation14 + $0x4a4] ss:$16 sps:$4 sm:$0xff]   ;;  %v8523_v48 = vld [vmem:[#allocation14 + $0x4ac] ss:$16 sps:$4 sm:$0xff]  }
 0x4e0   :  { %6446 = vmatprep.subr.bf16.mxu0 %v8448_v57  ;;  %6610 = vmatprep.subr.bf16.mxu1 %v8451_v28  ;;  %v8518_v57 = vld [vmem:[#allocation14 + $0x4a0] ss:$16 sps:$4 sm:$0xff]   ;;  %v8521_v28 = vld [vmem:[#allocation14 + $0x4a8] ss:$16 sps:$4 sm:$0xff]  }
 0x4e3   :  { %6447 = vmatpush1.bf16.msra.mxu0 %v8446_v51  ;;  %6611 = vmatpush1.bf16.msra.mxu1 %v8449_v11  ;;  %v8526_v51 = vld [vmem:[#allocation14 + $0x4c4] ss:$16 sps:$4 sm:$0xff]   ;;  %v8529_v11 = vld [vmem:[#allocation14 + $0x4cc] ss:$16 sps:$4 sm:$0xff]  }
 0x4e4   :  { %6448 = vmatprep.subr.bf16.mxu0 %v8454_v39  ;;  %6612 = vmatprep.subr.bf16.mxu1 %v8457_v0  ;;  %v8524_v39 = vld [vmem:[#allocation14 + $0x4c0] ss:$16 sps:$4 sm:$0xff]   ;;  %v8527_v0 = vld [vmem:[#allocation14 + $0x4c8] ss:$16 sps:$4 sm:$0xff]  }
 0x4e7   :  { %6449 = vmatpush1.bf16.msra.mxu0 %v8452_v55  ;;  %6613 = vmatpush1.bf16.msra.mxu1 %v8455_v14  ;;  %v8532_v55 = vld [vmem:[#allocation14 + $0x4e4] ss:$16 sps:$4 sm:$0xff]   ;;  %v8535_v14 = vld [vmem:[#allocation14 + $0x4ec] ss:$16 sps:$4 sm:$0xff]  }
 0x4e8   :  { %6450 = vmatprep.subr.bf16.mxu0 %v8460_v54  ;;  %6614 = vmatprep.subr.bf16.mxu1 %v8463_v3  ;;  %v8530_v54 = vld [vmem:[#allocation14 + $0x4e0] ss:$16 sps:$4 sm:$0xff]   ;;  %v8533_v3 = vld [vmem:[#allocation14 + $0x4e8] ss:$16 sps:$4 sm:$0xff]  }
 0x4eb   :  { %6451 = vmatpush1.bf16.msra.mxu0 %v8458_v32  ;;  %6615 = vmatpush1.bf16.msra.mxu1 %v8461_v38  ;;  %v8538_v32 = vld [vmem:[#allocation14 + $0x504] ss:$16 sps:$4 sm:$0xff]   ;;  %v8541_v38 = vld [vmem:[#allocation14 + $0x50c] ss:$16 sps:$4 sm:$0xff]  }
 0x4ec   :  { %6452 = vmatprep.subr.bf16.mxu0 %v8466_v18  ;;  %6616 = vmatprep.subr.bf16.mxu1 %v8469_v22  ;;  %v8536_v18 = vld [vmem:[#allocation14 + $0x500] ss:$16 sps:$4 sm:$0xff]   ;;  %v8539_v22 = vld [vmem:[#allocation14 + $0x508] ss:$16 sps:$4 sm:$0xff]  }
 0x4ef   :  { %6453 = vmatpush1.bf16.msra.mxu0 %v8464_v6  ;;  %6617 = vmatpush1.bf16.msra.mxu1 %v8467_v2  ;;  %v8544_v6 = vld [vmem:[#allocation14 + $0x524] ss:$16 sps:$4 sm:$0xff]   ;;  %v8547_v2 = vld [vmem:[#allocation14 + $0x52c] ss:$16 sps:$4 sm:$0xff]  }
 0x4f0   :  { %6454 = vmatprep.subr.bf16.mxu0 %v8472_v36  ;;  %6618 = vmatprep.subr.bf16.mxu1 %v8475_v59  ;;  %v8542_v36 = vld [vmem:[#allocation14 + $0x520] ss:$16 sps:$4 sm:$0xff]   ;;  %v8545_v59 = vld [vmem:[#allocation14 + $0x528] ss:$16 sps:$4 sm:$0xff]  }
 0x4f3   :  { %6455 = vmatpush1.bf16.msra.mxu0 %v8470_v60  ;;  %6619 = vmatpush1.bf16.msra.mxu1 %v8473_v62  ;;  %v8550_v60 = vld [vmem:[#allocation14 + $0x544] ss:$16 sps:$4 sm:$0xff]   ;;  %v8553_v62 = vld [vmem:[#allocation14 + $0x54c] ss:$16 sps:$4 sm:$0xff]  }
 0x4f4   :  { %6456 = vmatprep.subr.bf16.mxu0 %v8478_v31  ;;  %6620 = vmatprep.subr.bf16.mxu1 %v8481_v21  ;;  %v8548_v31 = vld [vmem:[#allocation14 + $0x540] ss:$16 sps:$4 sm:$0xff]   ;;  %v8551_v21 = vld [vmem:[#allocation14 + $0x548] ss:$16 sps:$4 sm:$0xff]  }
 0x4f7   :  { %6457 = vmatpush1.bf16.msra.mxu0 %v8476_v29  ;;  %6621 = vmatpush1.bf16.msra.mxu1 %v8479_v12  ;;  %v8556_v29 = vld [vmem:[#allocation14 + $0x564] ss:$16 sps:$4 sm:$0xff]   ;;  %v8559_v12 = vld [vmem:[#allocation14 + $0x56c] ss:$16 sps:$4 sm:$0xff]  }
 0x4f8   :  { %6458 = vmatprep.subr.bf16.mxu0 %v8484_v63  ;;  %6622 = vmatprep.subr.bf16.mxu1 %v8487_v45  ;;  %v8554_v63 = vld [vmem:[#allocation14 + $0x560] ss:$16 sps:$4 sm:$0xff]   ;;  %v8557_v45 = vld [vmem:[#allocation14 + $0x568] ss:$16 sps:$4 sm:$0xff]  }
 0x4fb   :  { %6459 = vmatpush1.bf16.msra.mxu0 %v8482_v43  ;;  %6623 = vmatpush1.bf16.msra.mxu1 %v8485_v50  ;;  %v8560_v43 = vld [vmem:[#allocation14 + $0x580] ss:$16 sps:$4 sm:$0xff]   ;;  %v8563_v50 = vld [vmem:[#allocation14 + $0x588] ss:$16 sps:$4 sm:$0xff]  }
 0x4fc   :  { %6469 = vmatprep.subr.bf16.mxu0 %v8490_v4  ;;  %6633 = vmatprep.subr.bf16.mxu1 %v8493_v1  ;;  %v8568_v4 = vld [vmem:[#allocation14 + $0x5a4] ss:$16 sps:$4 sm:$0xff]   ;;  %v8571_v1 = vld [vmem:[#allocation14 + $0x5ac] ss:$16 sps:$4 sm:$0xff]  }
 0x4fe   :  { %6461 = vmatmul.mubr.bf16.vlgmr.msra.gmra.mrb[16].mxu0 %v4823_v19  ;;  %6625 = vmatmul.mubr.bf16.vlgmr.msra.gmra.mrb[16].mxu1 %v4823_v19  ;;  %v8577_v19 = vld [vmem:[#allocation14 + $0x5cc] ss:$16 sps:$4 sm:$0xff]  }
 0x4ff   :  { %6470 = vmatpush1.bf16.msra.mxu0 %v8488_v44  ;;  %6501 = vmatprep.mubr.bf16.mxu0 %v4826_v27  ;;  %v8574_v44 = vld [vmem:[#allocation14 + $0x5c4] ss:$16 sps:$4 sm:$0xff]  }
 0x500   :  { %6634 = vmatpush1.bf16.msra.mxu1 %v8491_v26  ;;  %6665 = vmatprep.mubr.bf16.mxu1 %v4826_v27  ;;  %v8572_v26 = vld [vmem:[#allocation14 + $0x5c0] ss:$16 sps:$4 sm:$0xff]   ;;  %v8575_v27 = vld [vmem:[#allocation14 + $0x5c8] ss:$16 sps:$4 sm:$0xff]  }
 0x501   :  { %6471 = vmatprep.subr.bf16.mxu0 %v8496_v42  ;;  %6635 = vmatprep.subr.bf16.mxu1 %v8499_v30  ;;  %v8580_v42 = vld [vmem:[#allocation14 + $0x5e4] ss:$16 sps:$4 sm:$0xff]   ;;  %v8583_v30 = vld [vmem:[#allocation14 + $0x5ec] ss:$16 sps:$4 sm:$0xff]  }
 0x503   :  { %6472 = vmatpush1.bf16.msra.mxu0 %v8494_v56  ;;  %v4809_v56 = vmul.f32 0.2, %v9733_v35 }
 0x504   :  { %6636 = vmatpush1.bf16.msra.mxu1 %v8497_v8  ;;  %6473 = vmatprep.subr.bf16.mxu0 %v8502_v46  ;;  %v8578_v8 = vld [vmem:[#allocation14 + $0x5e0] ss:$16 sps:$4 sm:$0xff]   ;;  %v4812_v46 = vmul.f32 0.2, %v9735_v41 }
 0x505   :  { %6637 = vmatprep.subr.bf16.mxu1 %v8505_v58  ;;  %v8581_v58 = vld [vmem:[#allocation14 + $0x5e8] ss:$16 sps:$4 sm:$0xff]  }
 0x507   :  { %6474 = vmatpush1.bf16.msra.mxu0 %v8500_v37  ;;  %v8586_v37 = vld [vmem:[#allocation14 + $0x604] ss:$16 sps:$4 sm:$0xff]  }
 0x508   :  { %6638 = vmatpush1.bf16.msra.mxu1 %v8503_v61  ;;  %6475 = vmatprep.subr.bf16.mxu0 %v8508_v52  ;;  %v4817_v61 = vsel %vm4801_vm15, %v9733_v35, %v4809_v56  ;;  %v8589_v52 = vld [vmem:[#allocation14 + $0x60c] ss:$16 sps:$4 sm:$0xff]   ;;  %v8593_v35 = vld [vmem:[#allocation14 + $0x628] ss:$16 sps:$4 sm:$0xff]   ;;  %v8656_v56 = vld [vmem:[#allocation14 + $0x780] ss:$16 sps:$4 sm:$0xff]  }
 0x509   :  { %6639 = vmatprep.subr.bf16.mxu1 %v8511_v20  ;;  %v8584_v20 = vld [vmem:[#allocation14 + $0x600] ss:$16 sps:$4 sm:$0xff]  }
 0x50b   :  { %6476 = vmatpush1.bf16.msra.mxu0 %v8506_v16  ;;  %v4820_v16 = vsel %vm4804_vm0, %v9735_v41, %v4812_v46  ;;  %v8596_v41 = vld [vmem:[#allocation14 + $0x640] ss:$16 sps:$4 sm:$0xff]   ;;  %v8664_v46 = vld [vmem:[#allocation14 + $0x7a4] ss:$16 sps:$4 sm:$0xff]  }
 0x50c   :  { %6640 = vmatpush1.bf16.msra.mxu1 %v8509_v7  ;;  %6477 = vmatprep.subr.bf16.mxu0 %v8514_v53  ;;  %v4825_v7 = vpack.c.bf16 %v4817_v61, %v4817_v61  ;;  %v8587_v53 = vld [vmem:[#allocation14 + $0x608] ss:$16 sps:$4 sm:$0xff]  }
 0x50d   :  { %6641 = vmatprep.subr.bf16.mxu1 %v8517_v23  ;;  %v8592_v23 = vld [vmem:[#allocation14 + $0x624] ss:$16 sps:$4 sm:$0xff]   ;;  %v8665_v61 = vld [vmem:[#allocation14 + $0x7a8] ss:$16 sps:$4 sm:$0xff]  }
 0x50f   :  { %6478 = vmatpush1.bf16.msra.mxu0 %v8512_v10  ;;  %v4828_v10 = vpack.c.bf16 %v4820_v16, %v4820_v16  ;;  %v8668_v16 = vld [vmem:[#allocation14 + $0x7c0] ss:$16 sps:$4 sm:$0xff]  }
 0x510   :  { %6642 = vmatpush1.bf16.msra.mxu1 %v8515_v5  ;;  %6479 = vmatprep.subr.bf16.mxu0 %v8520_v49  ;;  %v8595_v5 = vld [vmem:[#allocation14 + $0x62c] ss:$16 sps:$4 sm:$0xff]   ;;  %v8590_v49 = vld [vmem:[#allocation14 + $0x620] ss:$16 sps:$4 sm:$0xff]  }
 0x511   :  { %6643 = vmatprep.subr.bf16.mxu1 %v8523_v48  ;;  %v8598_v48 = vld [vmem:[#allocation14 + $0x644] ss:$16 sps:$4 sm:$0xff]  }
 0x513   :  { %6480 = vmatpush1.bf16.msra.mxu0 %v8518_v57  ;;  %v8601_v57 = vld [vmem:[#allocation14 + $0x64c] ss:$16 sps:$4 sm:$0xff]  }
 0x514   :  { %6644 = vmatpush1.bf16.msra.mxu1 %v8521_v28  ;;  %6481 = vmatprep.subr.bf16.mxu0 %v8526_v51  ;;  %v8599_v28 = vld [vmem:[#allocation14 + $0x648] ss:$16 sps:$4 sm:$0xff]   ;;  %v8604_v51 = vld [vmem:[#allocation14 + $0x664] ss:$16 sps:$4 sm:$0xff]  }
 0x515   :  { %6645 = vmatprep.subr.bf16.mxu1 %v8529_v11  ;;  %v8607_v11 = vld [vmem:[#allocation14 + $0x66c] ss:$16 sps:$4 sm:$0xff]  }
 0x517   :  { %6482 = vmatpush1.bf16.msra.mxu0 %v8524_v39  ;;  %v8602_v39 = vld [vmem:[#allocation14 + $0x660] ss:$16 sps:$4 sm:$0xff]  }
 0x518   :  { %6646 = vmatpush1.bf16.msra.mxu1 %v8527_v0  ;;  %6483 = vmatprep.subr.bf16.mxu0 %v8532_v55  ;;  %v8605_v0 = vld [vmem:[#allocation14 + $0x668] ss:$16 sps:$4 sm:$0xff]   ;;  %v8610_v55 = vld [vmem:[#allocation14 + $0x684] ss:$16 sps:$4 sm:$0xff]  }
 0x519   :  { %6647 = vmatprep.subr.bf16.mxu1 %v8535_v14  ;;  %v8613_v14 = vld [vmem:[#allocation14 + $0x68c] ss:$16 sps:$4 sm:$0xff]  }
 0x51b   :  { %6484 = vmatpush1.bf16.msra.mxu0 %v8530_v54  ;;  %v8608_v54 = vld [vmem:[#allocation14 + $0x680] ss:$16 sps:$4 sm:$0xff]  }
 0x51c   :  { %6648 = vmatpush1.bf16.msra.mxu1 %v8533_v3  ;;  %6485 = vmatprep.subr.bf16.mxu0 %v8538_v32  ;;  %v8611_v3 = vld [vmem:[#allocation14 + $0x688] ss:$16 sps:$4 sm:$0xff]   ;;  %v8616_v32 = vld [vmem:[#allocation14 + $0x6a4] ss:$16 sps:$4 sm:$0xff]  }
 0x51d   :  { %6649 = vmatprep.subr.bf16.mxu1 %v8541_v38  ;;  %v8619_v38 = vld [vmem:[#allocation14 + $0x6ac] ss:$16 sps:$4 sm:$0xff]  }
 0x51f   :  { %6486 = vmatpush1.bf16.msra.mxu0 %v8536_v18  ;;  %v8614_v18 = vld [vmem:[#allocation14 + $0x6a0] ss:$16 sps:$4 sm:$0xff]  }
 0x520   :  { %6650 = vmatpush1.bf16.msra.mxu1 %v8539_v22  ;;  %6487 = vmatprep.subr.bf16.mxu0 %v8544_v6  ;;  %v8617_v22 = vld [vmem:[#allocation14 + $0x6a8] ss:$16 sps:$4 sm:$0xff]   ;;  %v8622_v6 = vld [vmem:[#allocation14 + $0x6c4] ss:$16 sps:$4 sm:$0xff]  }
 0x521   :  { %6651 = vmatprep.subr.bf16.mxu1 %v8547_v2  ;;  %v8625_v2 = vld [vmem:[#allocation14 + $0x6cc] ss:$16 sps:$4 sm:$0xff]  }
 0x523   :  { %6488 = vmatpush1.bf16.msra.mxu0 %v8542_v36  ;;  %v8620_v36 = vld [vmem:[#allocation14 + $0x6c0] ss:$16 sps:$4 sm:$0xff]  }
 0x524   :  { %6652 = vmatpush1.bf16.msra.mxu1 %v8545_v59  ;;  %6489 = vmatprep.subr.bf16.mxu0 %v8550_v60  ;;  %v8623_v59 = vld [vmem:[#allocation14 + $0x6c8] ss:$16 sps:$4 sm:$0xff]   ;;  %v8628_v60 = vld [vmem:[#allocation14 + $0x6e4] ss:$16 sps:$4 sm:$0xff]  }
 0x525   :  { %6653 = vmatprep.subr.bf16.mxu1 %v8553_v62  ;;  %v8631_v62 = vld [vmem:[#allocation14 + $0x6ec] ss:$16 sps:$4 sm:$0xff]  }
 0x527   :  { %6490 = vmatpush1.bf16.msra.mxu0 %v8548_v31  ;;  %v8626_v31 = vld [vmem:[#allocation14 + $0x6e0] ss:$16 sps:$4 sm:$0xff]  }
 0x528   :  { %6654 = vmatpush1.bf16.msra.mxu1 %v8551_v21  ;;  %6491 = vmatprep.subr.bf16.mxu0 %v8556_v29  ;;  %v8629_v21 = vld [vmem:[#allocation14 + $0x6e8] ss:$16 sps:$4 sm:$0xff]   ;;  %v8634_v29 = vld [vmem:[#allocation14 + $0x704] ss:$16 sps:$4 sm:$0xff]  }
 0x529   :  { %6655 = vmatprep.subr.bf16.mxu1 %v8559_v12  ;;  %v8637_v12 = vld [vmem:[#allocation14 + $0x70c] ss:$16 sps:$4 sm:$0xff]  }
 0x52b   :  { %6492 = vmatpush1.bf16.msra.mxu0 %v8554_v63  ;;  %v8632_v63 = vld [vmem:[#allocation14 + $0x700] ss:$16 sps:$4 sm:$0xff]  }
 0x52c   :  { %6656 = vmatpush1.bf16.msra.mxu1 %v8557_v45  ;;  %6493 = vmatprep.subr.bf16.mxu0 %v8562_v47  ;;  %v8635_v45 = vld [vmem:[#allocation14 + $0x708] ss:$16 sps:$4 sm:$0xff]   ;;  %v8640_v47 = vld [vmem:[#allocation14 + $0x724] ss:$16 sps:$4 sm:$0xff]  }
 0x52d   :  { %6657 = vmatprep.subr.bf16.mxu1 %v8565_v9  ;;  %v8643_v9 = vld [vmem:[#allocation14 + $0x72c] ss:$16 sps:$4 sm:$0xff]  }
 0x52f   :  { %6494 = vmatpush1.bf16.msra.mxu0 %v8560_v43  ;;  %v8638_v43 = vld [vmem:[#allocation14 + $0x720] ss:$16 sps:$4 sm:$0xff]  }
 0x530   :  { %6658 = vmatpush1.bf16.msra.mxu1 %v8563_v50  ;;  %6495 = vmatprep.subr.bf16.mxu0 %v8568_v4  ;;  %v8641_v50 = vld [vmem:[#allocation14 + $0x728] ss:$16 sps:$4 sm:$0xff]   ;;  %v8646_v4 = vld [vmem:[#allocation14 + $0x744] ss:$16 sps:$4 sm:$0xff]  }
 0x531   :  { %6659 = vmatprep.subr.bf16.mxu1 %v8571_v1  ;;  %v8649_v1 = vld [vmem:[#allocation14 + $0x74c] ss:$16 sps:$4 sm:$0xff]  }
 0x533   :  { %6496 = vmatpush1.bf16.msra.mxu0 %v8566_v33  ;;  %v8644_v33 = vld [vmem:[#allocation14 + $0x740] ss:$16 sps:$4 sm:$0xff]  }
 0x534   :  { %6660 = vmatpush1.bf16.msra.mxu1 %v8569_v25  ;;  %6497 = vmatprep.subr.bf16.mxu0 %v8574_v44  ;;  %v8647_v25 = vld [vmem:[#allocation14 + $0x748] ss:$16 sps:$4 sm:$0xff]   ;;  %v8652_v44 = vld [vmem:[#allocation14 + $0x764] ss:$16 sps:$4 sm:$0xff]  }
 0x535   :  { %6661 = vmatprep.subr.bf16.mxu1 %v8577_v19  ;;  %v8655_v19 = vld [vmem:[#allocation14 + $0x76c] ss:$16 sps:$4 sm:$0xff]  }
 0x537   :  { %6498 = vmatpush1.bf16.msra.mxu0 %v8572_v26  ;;  %v8650_v26 = vld [vmem:[#allocation14 + $0x760] ss:$16 sps:$4 sm:$0xff]  }
 0x538   :  { %6662 = vmatpush1.bf16.msra.mxu1 %v8575_v27  ;;  %6499 = vmatprep.subr.bf16.mxu0 %v8580_v42  ;;  %v8653_v27 = vld [vmem:[#allocation14 + $0x768] ss:$16 sps:$4 sm:$0xff]   ;;  %v8658_v42 = vld [vmem:[#allocation14 + $0x784] ss:$16 sps:$4 sm:$0xff]  }
 0x539   :  { %6663 = vmatprep.subr.bf16.mxu1 %v8583_v30  ;;  %v8661_v30 = vld [vmem:[#allocation14 + $0x78c] ss:$16 sps:$4 sm:$0xff]  }
 0x53b   :  { %6500 = vmatpush1.bf16.msra.mxu0 %v8578_v8  ;;  %v8659_v8 = vld [vmem:[#allocation14 + $0x788] ss:$16 sps:$4 sm:$0xff]  }
 0x53c   :  { %6664 = vmatpush1.bf16.msra.mxu1 %v8581_v58  ;;  %6510 = vmatprep.subr.bf16.mxu0 %v8586_v37  ;;  %v8667_v58 = vld [vmem:[#allocation14 + $0x7ac] ss:$16 sps:$4 sm:$0xff]   ;;  %v8662_v37 = vld [vmem:[#allocation14 + $0x7a0] ss:$16 sps:$4 sm:$0xff]  }
 0x53d   :  { %6674 = vmatprep.subr.bf16.mxu1 %v8589_v52  ;;  %v8670_v52 = vld [vmem:[#allocation14 + $0x7c4] ss:$16 sps:$4 sm:$0xff]  }
 0x53e   :  { %6502 = vmatmul.mubr.bf16.vlgmr.msra.gmra.mrb[16].mxu0 %v4825_v7 }
 0x53f   :  { %6666 = vmatmul.mubr.bf16.vlgmr.msra.gmra.mrb[16].mxu1 %v4825_v7  ;;  %6511 = vmatpush1.bf16.msra.mxu0 %v8584_v20  ;;  %v8673_v20 = vld [vmem:[#allocation14 + $0x7cc] ss:$16 sps:$4 sm:$0xff]   ;;  %v8671_v7 = vld [vmem:[#allocation14 + $0x7c8] ss:$16 sps:$4 sm:$0xff]  }
 0x540   :  { %6542 = vmatprep.mubr.bf16.mxu0 %v4828_v10  ;;  %6675 = vmatpush1.bf16.msra.mxu1 %v8587_v53  ;;  %v8676_v53 = vld [vmem:[#allocation14 + $0x7e4] ss:$16 sps:$4 sm:$0xff]  }
 0x541   :  { %6706 = vmatprep.mubr.bf16.mxu1 %v4828_v10  ;;  %6512 = vmatprep.subr.bf16.mxu0 %v8592_v23  ;;  %v8679_v23 = vld [vmem:[#allocation14 + $0x7ec] ss:$16 sps:$4 sm:$0xff]   ;;  %v4811_v10 = vmul.f32 0.2, %v9737_v40 }
 0x542   :  { %6676 = vmatprep.subr.bf16.mxu1 %v8595_v5  ;;  %v8674_v5 = vld [vmem:[#allocation14 + $0x7e0] ss:$16 sps:$4 sm:$0xff]  }
 0x543   :  { %6513 = vmatpush1.bf16.msra.mxu0 %v8590_v49  ;;  %v8677_v49 = vld [vmem:[#allocation14 + $0x7e8] ss:$16 sps:$4 sm:$0xff]  }
 0x544   :  { %6677 = vmatpush1.bf16.msra.mxu1 %v8593_v35  ;;  %6514 = vmatprep.subr.bf16.mxu0 %v8598_v48  ;;  %v4819_v35 = vsel %vm4803_vm1, %v9737_v40, %v4811_v10  ;;  %v8688_v40 = vld [vmem:[#allocation20 + $0x50] sm:$0xff]  }
 0x545   :  { %6678 = vmatprep.subr.bf16.mxu1 %v8601_v57  ;;  %v4827_v48 = vpack.c.bf16 %v4819_v35, %v4819_v35  ;;  %v8680_v57 = vld [vmem:[#allocation20 + $0x40] sm:$0xff]  }
 0x547   :  { %6515 = vmatpush1.bf16.msra.mxu0 %v8596_v41  ;;  %v8681_v41 = vld [vmem:[#allocation20 + $0xc0] sm:$0xff]  }
 0x548   :  { %6679 = vmatpush1.bf16.msra.mxu1 %v8599_v28  ;;  %6516 = vmatprep.subr.bf16.mxu0 %v8604_v51  ;;  %v8682_v28 = vld [vmem:[#allocation20] sm:$0xff]  }
 0x549   :  { %6680 = vmatprep.subr.bf16.mxu1 %v8607_v11  ;;  %v8683_v51 = vld [vmem:[#allocation20 + $0x80] sm:$0xff]   ;;  %v8684_v11 = vld [vmem:[#allocation20 + $0x48] sm:$0xff]  }
 0x54b   :  { %6517 = vmatpush1.bf16.msra.mxu0 %v8602_v39  ;;  %v8685_v39 = vld [vmem:[#allocation20 + $0xc8] sm:$0xff]  }
 0x54c   :  { %6681 = vmatpush1.bf16.msra.mxu1 %v8605_v0  ;;  %6518 = vmatprep.subr.bf16.mxu0 %v8610_v55  ;;  %v8686_v0 = vld [vmem:[#allocation20 + $0x8] sm:$0xff]  }
 0x54d   :  { %6682 = vmatprep.subr.bf16.mxu1 %v8613_v14  ;;  %v8687_v55 = vld [vmem:[#allocation20 + $0x88] sm:$0xff]   ;;  %v8689_v14 = vld [vmem:[#allocation20 + $0xd0] sm:$0xff]  }
 0x54f   :  { %6519 = vmatpush1.bf16.msra.mxu0 %v8608_v54  ;;  %v8690_v54 = vld [vmem:[#allocation20 + $0x10] sm:$0xff]  }
 0x550   :  { %6683 = vmatpush1.bf16.msra.mxu1 %v8611_v3  ;;  %6520 = vmatprep.subr.bf16.mxu0 %v8616_v32  ;;  %v8691_v3 = vld [vmem:[#allocation20 + $0x90] sm:$0xff]   ;;  %v8692_v32 = vld [vmem:[#allocation20 + $0x58] sm:$0xff]  }
 0x551   :  { %6684 = vmatprep.subr.bf16.mxu1 %v8619_v38  ;;  %v8693_v38 = vld [vmem:[#allocation20 + $0xd8] sm:$0xff]  }
 0x553   :  { %6521 = vmatpush1.bf16.msra.mxu0 %v8614_v18  ;;  %v8694_v18 = vld [vmem:[#allocation20 + $0x18] sm:$0xff]  }
 0x554   :  { %6685 = vmatpush1.bf16.msra.mxu1 %v8617_v22  ;;  %6522 = vmatprep.subr.bf16.mxu0 %v8622_v6  ;;  %v8695_v22 = vld [vmem:[#allocation20 + $0x98] sm:$0xff]   ;;  %v8696_v6 = vld [vmem:[#allocation20 + $0x60] sm:$0xff]  }
 0x555   :  { %6686 = vmatprep.subr.bf16.mxu1 %v8625_v2  ;;  %v8697_v2 = vld [vmem:[#allocation20 + $0xe0] sm:$0xff]  }
 0x557   :  { %6523 = vmatpush1.bf16.msra.mxu0 %v8620_v36  ;;  %v8698_v36 = vld [vmem:[#allocation20 + $0x20] sm:$0xff]  }
 0x558   :  { %6687 = vmatpush1.bf16.msra.mxu1 %v8623_v59  ;;  %6524 = vmatprep.subr.bf16.mxu0 %v8628_v60  ;;  %v8699_v59 = vld [vmem:[#allocation20 + $0xa0] sm:$0xff]   ;;  %v8700_v60 = vld [vmem:[#allocation20 + $0x68] sm:$0xff]  }
 0x559   :  { %6688 = vmatprep.subr.bf16.mxu1 %v8631_v62  ;;  %v8701_v62 = vld [vmem:[#allocation20 + $0xe8] sm:$0xff]  }
 0x55b   :  { %6525 = vmatpush1.bf16.msra.mxu0 %v8626_v31  ;;  %v8702_v31 = vld [vmem:[#allocation20 + $0x28] sm:$0xff]  }
 0x55c   :  { %6689 = vmatpush1.bf16.msra.mxu1 %v8629_v21  ;;  %6526 = vmatprep.subr.bf16.mxu0 %v8634_v29  ;;  %v8703_v21 = vld [vmem:[#allocation20 + $0xa8] sm:$0xff]   ;;  %v8704_v29 = vld [vmem:[#allocation20 + $0x70] sm:$0xff]  }
 0x55d   :  { %6690 = vmatprep.subr.bf16.mxu1 %v8637_v12  ;;  %v8705_v12 = vld [vmem:[#allocation20 + $0xf0] sm:$0xff]  }
 0x55f   :  { %6527 = vmatpush1.bf16.msra.mxu0 %v8632_v63  ;;  %v8706_v63 = vld [vmem:[#allocation20 + $0x30] sm:$0xff]  }
 0x560   :  { %6691 = vmatpush1.bf16.msra.mxu1 %v8635_v45  ;;  %6528 = vmatprep.subr.bf16.mxu0 %v8640_v47  ;;  %v8707_v45 = vld [vmem:[#allocation20 + $0xb0] sm:$0xff]   ;;  %v8708_v47 = vld [vmem:[#allocation20 + $0x78] sm:$0xff]  }
 0x561   :  { %6692 = vmatprep.subr.bf16.mxu1 %v8643_v9  ;;  %v8709_v9 = vld [vmem:[#allocation20 + $0xf8] sm:$0xff]  }
 0x563   :  { %6529 = vmatpush1.bf16.msra.mxu0 %v8638_v43  ;;  %v8710_v43 = vld [vmem:[#allocation20 + $0x38] sm:$0xff]  }
 0x564   :  { %6693 = vmatpush1.bf16.msra.mxu1 %v8641_v50  ;;  %6530 = vmatprep.subr.bf16.mxu0 %v8646_v4  ;;  %v8711_v50 = vld [vmem:[#allocation20 + $0xb8] sm:$0xff]   ;;  %v5085_v4 = vld [vmem:[#allocation16] sm:$0xf] }
 0x565   :  { %6694 = vmatprep.subr.bf16.mxu1 %v8649_v1  ;;  %v5090_v1 = vrot.slane %v5085_v4, %v9345_v13 }
 0x567   :  { %6531 = vmatpush1.bf16.msra.mxu0 %v8644_v33  ;;  %v5098_v33 = vrot.slane %v5085_v4, %v9384_v34 }
 0x568   :  { %6695 = vmatpush1.bf16.msra.mxu1 %v8647_v25  ;;  %6532 = vmatprep.subr.bf16.mxu0 %v8652_v44  ;;  %v5094_v25 = vrot.slane %v5085_v4, %v9350_v15  ;;  %v5102_v44 = vrot.slane %v5085_v4, %v9355_v17 }
 0x569   :  { %6696 = vmatprep.subr.bf16.mxu1 %v8655_v19 }
 0x56b   :  { %6533 = vmatpush1.bf16.msra.mxu0 %v8650_v26 }
 0x56c   :  { %6697 = vmatpush1.bf16.msra.mxu1 %v8653_v27  ;;  %6534 = vmatprep.subr.bf16.mxu0 %v8658_v42 }
 0x56d   :  { %6698 = vmatprep.subr.bf16.mxu1 %v8661_v30 }
 0x56f   :  { %6535 = vmatpush1.bf16.msra.mxu0 %v8656_v56 }
 0x570   :  { %6699 = vmatpush1.bf16.msra.mxu1 %v8659_v8  ;;  %6536 = vmatprep.subr.bf16.mxu0 %v8664_v46 }
 0x571   :  { %6700 = vmatprep.subr.bf16.mxu1 %v8667_v58 }
 0x573   :  { %6537 = vmatpush1.bf16.msra.mxu0 %v8662_v37 }
 0x574   :  { %6701 = vmatpush1.bf16.msra.mxu1 %v8665_v61  ;;  %6538 = vmatprep.subr.bf16.mxu0 %v8670_v52 }
 0x575   :  { %6702 = vmatprep.subr.bf16.mxu1 %v8673_v20 }
 0x577   :  { %6539 = vmatpush1.bf16.msra.mxu0 %v8668_v16 }
 0x578   :  { %6703 = vmatpush1.bf16.msra.mxu1 %v8671_v7  ;;  %6540 = vmatprep.subr.bf16.mxu0 %v8676_v53 }
 0x579   :  { %6704 = vmatprep.subr.bf16.mxu1 %v8679_v23 }
 0x57b   :  { %6541 = vmatpush1.bf16.msra.mxu0 %v8674_v5 }
 0x57c   :  { %6705 = vmatpush1.bf16.msra.mxu1 %v8677_v49  ;;  %8138 = vmatprep.subr.bf16.mxu0 %v8680_v57 }
 0x57d   :  { %8160 = vmatprep.subr.bf16.mxu1 %v8681_v41 }
 0x57e   :  { %6543 = vmatmul.mubr.bf16.vlgmr.msra.gmra.mrb[16].mxu0 %v4827_v48 }
 0x57f   :  { %6707 = vmatmul.mubr.bf16.vlgmr.msra.gmra.mrb[16].mxu1 %v4827_v48  ;;  %8139 = vmatpush3.bf16.msra.mxu0 %v8682_v28 }
 0x580   :  { %8161 = vmatpush3.bf16.msra.mxu1 %v8683_v51  ;;  %8140 = vmatprep.subr.bf16.mxu0 %v8684_v11 }
 0x581   :  { %8162 = vmatprep.subr.bf16.mxu1 %v8685_v39 }
 0x583   :  { %8141 = vmatpush3.bf16.msra.mxu0 %v8686_v0 }
 0x584   :  { %8163 = vmatpush3.bf16.msra.mxu1 %v8687_v55  ;;  %8142 = vmatprep.subr.bf16.mxu0 %v8688_v40 }
 0x585   :  { %8164 = vmatprep.subr.bf16.mxu1 %v8689_v14 }
 0x587   :  { %8143 = vmatpush3.bf16.msra.mxu0 %v8690_v54 }
 0x588   :  { %8165 = vmatpush3.bf16.msra.mxu1 %v8691_v3  ;;  %8144 = vmatprep.subr.bf16.mxu0 %v8692_v32 }
 0x589   :  { %8166 = vmatprep.subr.bf16.mxu1 %v8693_v38 }
 0x58b   :  { %8145 = vmatpush3.bf16.msra.mxu0 %v8694_v18 }
 0x58c   :  { %8167 = vmatpush3.bf16.msra.mxu1 %v8695_v22  ;;  %8146 = vmatprep.subr.bf16.mxu0 %v8696_v6 }
 0x58d   :  { %8168 = vmatprep.subr.bf16.mxu1 %v8697_v2 }
 0x58f   :  { %8147 = vmatpush3.bf16.msra.mxu0 %v8698_v36 }
 0x590   :  { %8169 = vmatpush3.bf16.msra.mxu1 %v8699_v59  ;;  %8148 = vmatprep.subr.bf16.mxu0 %v8700_v60 }
 0x591   :  { %8170 = vmatprep.subr.bf16.mxu1 %v8701_v62 }
 0x593   :  { %8149 = vmatpush3.bf16.msra.mxu0 %v8702_v31 }
 0x594   :  { %8171 = vmatpush3.bf16.msra.mxu1 %v8703_v21  ;;  %8150 = vmatprep.subr.bf16.mxu0 %v8704_v29 }
 0x595   :  { %8172 = vmatprep.subr.bf16.mxu1 %v8705_v12 }
 0x597   :  { %8151 = vmatpush3.bf16.msra.mxu0 %v8706_v63 }
 0x598   :  { %8173 = vmatpush3.bf16.msra.mxu1 %v8707_v45  ;;  %8152 = vmatprep.subr.bf16.mxu0 %v8708_v47 }
 0x599   :  { %8174 = vmatprep.subr.bf16.mxu1 %v8709_v9 }
 0x59b   :  { %8153 = vmatpush3.bf16.msra.mxu0 %v8710_v43 }
 0x59c   :  { %8175 = vmatpush3.bf16.msra.mxu1 %v8711_v50 }
 0x651   :  { %v6544_v19 = vpop.f32.mrb[16].mxu0 }
 0x652   :  { %v9758_v26 = vadd.f32 %v6544_v19, %v5090_v1  ;;  %v6708_v27 = vpop.f32.mrb[16].mxu1  ;;  %v6546_v42 = vpop.f32.mrb[17].mxu0 }
 0x653   :  { %v9760_v30 = vadd.f32 %v6708_v27, %v5098_v33  ;;  %v9762_v56 = vadd.f32 %v6546_v42, %v5094_v25  ;;  %v6710_v8 = vpop.f32.mrb[17].mxu1  ;;  %v6548_v46 = vpop.f32.mrb[18].mxu0 }
 0x654   :  { %v6717_v58 = vrot.slane %v9758_v26, 4  ;;  %v6745_v37 = vmul.f32 %v9758_v26, %v9758_v26  ;;  %v9767_v61 = vadd.f32 %v6710_v8, %v5102_v44  ;;  %v6712_v52 = vpop.f32.mrb[18].mxu1  ;;  %v6549_v20 = vpop.f32.mrb[19].mxu0 }
 0x655   :  { %v6729_v16 = vrot.slane %v9760_v30, 4  ;;  %v6747_v7 = vmul.f32 %v9760_v30, %v9760_v30  ;;  %v6723_v53 = vrot.slane %v9762_v56, 4  ;;  %v6746_v23 = vmul.f32 %v9762_v56, %v9762_v56  ;;  %v6713_v10 = vpop.f32.mrb[19].mxu1 }
 0x656   :  { %v6718_v5 = vadd.f32 %v9758_v26, %v6717_v58  ;;  %v6749_v49 = vrot.slane %v6745_v37, 4  ;;  %v6735_v35 = vrot.slane %v9767_v61, 4  ;;  %v6748_v48 = vmul.f32 %v9767_v61, %v9767_v61 }
 0x657   :  { %v6730_v57 = vadd.f32 %v9760_v30, %v6729_v16  ;;  %v6761_v41 = vrot.slane %v6747_v7, 4  ;;  %v6724_v28 = vadd.f32 %v9762_v56, %v6723_v53  ;;  %v6755_v51 = vrot.slane %v6746_v23, 4 }
 0x658   :  { %v6719_v11 = vrot.slane %v6718_v5, 2  ;;  %v6750_v39 = vadd.f32 %v6749_v49, %v6745_v37  ;;  %v6736_v0 = vadd.f32 %v9767_v61, %v6735_v35  ;;  %v6767_v55 = vrot.slane %v6748_v48, 4 }
 0x659   :  { %v6731_v40 = vrot.slane %v6730_v57, 2  ;;  %v6762_v14 = vadd.f32 %v6761_v41, %v6747_v7  ;;  %v6725_v54 = vrot.slane %v6724_v28, 2  ;;  %v6756_v3 = vadd.f32 %v6755_v51, %v6746_v23 }
 0x65a   :  { %v6720_v32 = vadd.f32 %v6719_v11, %v6718_v5  ;;  %v6751_v38 = vrot.slane %v6750_v39, 2  ;;  %v6737_v18 = vrot.slane %v6736_v0, 2  ;;  %v6768_v22 = vadd.f32 %v6767_v55, %v6748_v48 }
 0x65b   :  { %v6732_v6 = vadd.f32 %v6731_v40, %v6730_v57  ;;  %v6763_v2 = vrot.slane %v6762_v14, 2  ;;  %v6726_v36 = vadd.f32 %v6725_v54, %v6724_v28  ;;  %v6757_v59 = vrot.slane %v6756_v3, 2 }
 0x65c   :  { %v6721_v60 = vrot.slane %v6720_v32, 1  ;;  %v6752_v62 = vadd.f32 %v6751_v38, %v6750_v39  ;;  %v6738_v31 = vadd.f32 %v6737_v18, %v6736_v0  ;;  %v6769_v21 = vrot.slane %v6768_v22, 2 }
 0x65d   :  { %v6733_v29 = vrot.slane %v6732_v6, 1  ;;  %v6764_v12 = vadd.f32 %v6763_v2, %v6762_v14  ;;  %v6727_v63 = vrot.slane %v6726_v36, 1  ;;  %v6758_v45 = vadd.f32 %v6757_v59, %v6756_v3 }
 0x65e   :  { %v6722_v47 = vadd.f32 %v6721_v60, %v6720_v32  ;;  %v6753_v9 = vrot.slane %v6752_v62, 1  ;;  %v6739_v43 = vrot.slane %v6738_v31, 1  ;;  %v6770_v50 = vadd.f32 %v6769_v21, %v6768_v22  ;;  %v6715_v60 = vld [vmem:[#allocation17] sm:$0xf] }
 0x65f   :  { %v6734_v4 = vadd.f32 %v6733_v29, %v6732_v6  ;;  %v6765_v1 = vrot.slane %v6764_v12, 1  ;;  %v6728_v33 = vadd.f32 %v6727_v63, %v6726_v36  ;;  %v6759_v25 = vrot.slane %v6758_v45, 1 }
 0x660   :  { %v6741_v44 = vmul.f32 0.125, %v6722_v47  ;;  %v6754_v19 = vadd.f32 %v6753_v9, %v6752_v62  ;;  %v6740_v27 = vadd.f32 %v6739_v43, %v6738_v31  ;;  %v6771_v42 = vrot.slane %v6770_v50, 1 }
 0x661   :  { %v6743_v8 = vmul.f32 0.125, %v6734_v4  ;;  %v6766_v46 = vadd.f32 %v6765_v1, %v6764_v12  ;;  %v6742_v58 = vmul.f32 0.125, %v6728_v33  ;;  %v6760_v37 = vadd.f32 %v6759_v25, %v6758_v45 }
 0x662   :  { %v6773_v52 = vmul.f32 0.125, %v6754_v19  ;;  %v6777_v20 = vmul.f32 %v6741_v44, %v6741_v44  ;;  %v6744_v16 = vmul.f32 0.125, %v6740_v27  ;;  %v6772_v7 = vadd.f32 %v6771_v42, %v6770_v50 }
 0x663   :  { %v6775_v53 = vmul.f32 0.125, %v6766_v46  ;;  %v6779_v23 = vmul.f32 %v6743_v8, %v6743_v8  ;;  %v6774_v10 = vmul.f32 0.125, %v6760_v37  ;;  %v6778_v5 = vmul.f32 %v6742_v58, %v6742_v58  ;;  %v6716_v37 = vld [vmem:[#allocation19] sm:$0xf] }
 0x664   :  { %v6781_v49 = vsub.f32 %v6773_v52, %v6777_v20  ;;  %v6776_v35 = vmul.f32 0.125, %v6772_v7  ;;  %v6780_v48 = vmul.f32 %v6744_v16, %v6744_v16 }
 0x665   :  { %v6783_v57 = vsub.f32 %v6775_v53, %v6779_v23  ;;  %v6782_v41 = vsub.f32 %v6774_v10, %v6778_v5 }
 0x666   :  { %v6785_v28 = vmax.f32 %v6781_v49, 0.0  ;;  %v6784_v51 = vsub.f32 %v6776_v35, %v6780_v48 }
 0x667   :  { %v6787_v11 = vmax.f32 %v6783_v57, 0.0  ;;  %v6786_v39 = vmax.f32 %v6782_v41, 0.0  ;;  %v8105_v41 = vld [vmem:[#allocation22] ss:$0 sm:$0xff] }
 0x668   :  { %v6789_v0 = vadd.f32 1e-05, %v6785_v28  ;;  %v6788_v55 = vmax.f32 %v6784_v51, 0.0 }
 0x669   :  { %v6791_v40 = vadd.f32 1e-05, %v6787_v11  ;;  %v6790_v14 = vadd.f32 1e-05, %v6786_v39 }
 0x66a   :  { %8728 = vrsqrt.f32 %v6789_v0  ;;  %v6792_v54 = vadd.f32 1e-05, %v6788_v55 }
 0x66b   :  { %8730 = vrsqrt.f32 %v6791_v40 }
 0x66c   :  { %8732 = vrsqrt.f32 %v6790_v14 }
 0x66d   :  { %8734 = vrsqrt.f32 %v6792_v54 }
 0x674   :  { %v8729_v3 = vpop.eup %8728 }
 0x675   :  { %v8731_v32 = vpop.eup %8730 }
 0x676   :  { %v8733_v38 = vpop.eup %8732 }
 0x677   :  { %v8735_v18 = vpop.eup %8734  ;;  %v6801_v22 = vcombine.low %v8729_v3, %v8733_v38 }
 0x678   :  { %v6802_v6 = vcombine.low %v8731_v32, %v8735_v18 }
 0x679   :  { %v6809_v2 = vrot.slane %v6801_v22, %v9644_v24 }
 0x67a   :  { %v6816_v36 = vrot.slane %v6802_v6, %v9644_v24 }
 0x67c   :  { %v6817_v59 = vcombine.low %v6809_v2, %v6816_v36 }
 0x67e   :  { %v6824_v62 = vrot.slane %v6817_v59, %v9644_v24 }
 0x680   :  { %v6826_v31 = vmul.f32 %v6824_v62, %v6715_v60 }
 0x682   :  { %v6839_v21 = vrot.slane %v6826_v31, %v9384_v34  ;;  %v6843_v29 = vrot.slane %v6826_v31, %v9355_v17  ;;  %v6831_v12 = vrot.slane %v6826_v31, %v9345_v13  ;;  %v6835_v63 = vrot.slane %v6826_v31, %v9350_v15 }
 0x684   :  { %v6850_v45 = vmul.f32 %v6839_v21, %v6743_v8  ;;  %v6851_v47 = vmul.f32 %v6843_v29, %v6744_v16  ;;  %v6885_v9 = vmul.f32 %v9767_v61, %v6843_v29  ;;  %v6848_v43 = vmul.f32 %v6831_v12, %v6741_v44 }
 0x685   :  { %v6849_v50 = vmul.f32 %v6835_v63, %v6742_v58  ;;  %v6883_v4 = vmul.f32 %v9762_v56, %v6835_v63  ;;  %v6882_v1 = vmul.f32 %v9758_v26, %v6831_v12  ;;  %v6884_v33 = vmul.f32 %v9760_v30, %v6839_v21 }
 0x686   :  { %v6857_v25 = vcombine.low %v6850_v45, %v6851_v47 }
 0x687   :  { %v6856_v19 = vcombine.low %v6848_v43, %v6849_v50 }
 0x688   :  { %v6871_v27 = vrot.slane %v6857_v25, %v9644_v24 }
 0x689   :  { %v6864_v42 = vrot.slane %v6856_v19, %v9644_v24 }
 0x68b   :  { %v6872_v46 = vcombine.low %v6864_v42, %v6871_v27 }
 0x68d   :  { %v6879_v8 = vrot.slane %v6872_v46, %v9644_v24 }
 0x68f   :  { %v6881_v52 = vsub.f32 %v6716_v37, %v6879_v8 }
 0x691   :  { %v6894_v61 = vrot.slane %v6881_v52, %v9350_v15  ;;  %v6902_v44 = vrot.slane %v6881_v52, %v9355_v17  ;;  %v6890_v56 = vrot.slane %v6881_v52, %v9345_v13  ;;  %v6898_v26 = vrot.slane %v6881_v52, %v9384_v34 }
 0x693   :  { %v6908_v30 = vadd.f32 %v6894_v61, %v6883_v4  ;;  %v6910_v58 = vadd.f32 %v6902_v44, %v6885_v9  ;;  %v6907_v20 = vadd.f32 %v6890_v56, %v6882_v1  ;;  %v6909_v16 = vadd.f32 %v6898_v26, %v6884_v33 }
 0x695   :  { %vm6912_vm2 = vcmp.gt.f32.partialorder %v6908_v30, 0.0  ;;  %v6916_v7 = vmul.f32 0.2, %v6908_v30  ;;  %vm6914_vm3 = vcmp.gt.f32.partialorder %v6910_v58, 0.0  ;;  %v6918_v53 = vmul.f32 0.2, %v6910_v58 }
 0x696   :  { %vm6911_vm4 = vcmp.gt.f32.partialorder %v6907_v20, 0.0  ;;  %v6915_v23 = vmul.f32 0.2, %v6907_v20  ;;  %vm6913_vm5 = vcmp.gt.f32.partialorder %v6909_v16, 0.0  ;;  %v6917_v24 = vmul.f32 0.2, %v6909_v16 }
 0x697   :  { %v6920_v10 = vsel %vm6912_vm2, %v6908_v30, %v6916_v7  ;;  %v6922_v15 = vsel %vm6914_vm3, %v6910_v58, %v6918_v53 }
 0x698   :  { %v6924_v5 = vpack.c.bf16 %v6920_v10, %v6920_v10  ;;  %v6926_v17 = vpack.c.bf16 %v6922_v15, %v6922_v15  ;;  %v6919_v49 = vsel %vm6911_vm4, %v6907_v20, %v6915_v23  ;;  %v6921_v13 = vsel %vm6913_vm5, %v6909_v16, %v6917_v24 }
 0x699   :  { %v6923_v35 = vpack.c.bf16 %v6919_v49, %v6919_v49  ;;  %v6925_v34 = vpack.c.bf16 %v6921_v13, %v6921_v13 }
 0x69a   :  { %7222 = vmatprep.mubr.bf16.mxu0 %v6924_v5  ;;  %7262 = vmatprep.mubr.bf16.mxu1 %v6926_v17 }
 0x69b   :  { %7223 = vmatmul.mubr.bf16.vlgmr.msra.gmra.mrb[20].mxu0 %v6923_v35  ;;  %7263 = vmatmul.mubr.bf16.vlgmr.msra.gmra.mrb[20].mxu1 %v6925_v34 }
 0x76e   :  { %v8154_v48 = vpop.f32.mrb[20].mxu0  ;;  %v8176_v57 = vpop.f32.mrb[20].mxu1 }
 0x76f   :  { %v8155_v28 = vpop.f32.mrb[21].mxu0  ;;  %v8177_v51 = vpop.f32.mrb[21].mxu1 }
 0x770   :  { %v8156_v11 = vadd.f32 %v8155_v28, %v8154_v48  ;;  %v8178_v39 = vadd.f32 %v8177_v51, %v8176_v57  ;;  %v8157_v0 = vpop.f32.mrb[22].mxu0  ;;  %v8179_v55 = vpop.f32.mrb[22].mxu1 }
 0x771   :  { %v8158_v40 = vpop.f32.mrb[23].mxu0  ;;  %v8180_v14 = vpop.f32.mrb[23].mxu1 }
 0x772   :  { %v7225_v54 = vadd.f32 %v8156_v11, %v8105_v41 }
 0x774   :  { %v7265_v3 = vadd.f32 %v8178_v39, %v7225_v54 }
 0x776   :  { %v7270_v32 = vsub.f32 0.0, %v7265_v3 }
 0x778   :  { %v7271_v38 = vmul.f32 1.442695, %v7270_v32 }
 0x77a   :  { %8736 = vpow2.f32 %v7271_v38 }
 0x784   :  { %v8737_v18 = vpop.eup %8736 }
 0x785   :  { %v7273_v22 = vadd.f32 1.0, %v8737_v18 }
 0x787   :  { %8738 = vrcp.f32 %v7273_v22 }
 0x791   :  { %v8739_v6 = vpop.eup %8738 }
 0x792   :  { %7275 = vst [vmem:[#allocation23] sm:$0xff] %v8739_v6 }
 0x793   :  { %9038 = shalt.err (!%p9035_p10)
}
 0x794   :  { %s9039_s16 = scalar_lea.hbm %s9825_s13, 128 }
 0x795   :  { %p9040_p11 = scmp.ne.s32.totalorder %s9825_s13, %s9039_s16  ;;  %p9043_p12 = scmp.lt.u32.totalorder %s9039_s16, %s9825_s13 }
 0x797   :  { %p9045_p13 = pnand %p9043_p12, %p9040_p11 }
 0x799   :  { %9048 = shalt.err (!%p9045_p13)
}
 0x79a   :  { %7285 = dma.vmem_to_hbm [thread:$0]  %s7283_s26, 128, %s9825_s13, [#allocation4]  }
 0x79b   :  { %9063 = dma.done.wait [#allocation4], 128  }
 0x79c   :  { %9064 = vsyncadd [#allocation4], 4294967168 }
 0x79d   :  { %7289 = vsyncpa [#allocation3], 1 }
 0x79e   :  { %7290 = vsyncpa [#allocation6], 1 }
 0x79f   :  { %7291 = vsyncpa [#allocation9], 1 }
 0x7a0   :  { %7292 = vsyncpa [#allocation12], 1 }
 0x7a1   :  { %7293 = vsyncpa [#allocation15], 1 }
 0x7a2   :  { %7294 = vsyncpa [#allocation18], 1 }
 0x7a3   :  { %7295 = vsyncpa [#allocation21], 1 }
 0x7a4   :  { %7296 = vsyncpa [#allocation4], 1 }

</bundles_post_ra>
